<compile_context>
chip_gen: v6e
topology: v6e:2x2x1
jax: 0.10.0
libtpu: 0.0.40
codegen_flags: <defaults>
</compile_context>

<pallas_src>
import functools

import numpy as np

import jax
import jax.numpy as jnp
from jax.experimental import pallas as pl
from jax.experimental.pallas import tpu as pltpu


# Row indices of the packed per-channel vector array (see vargblock_s2_forward).
_S1, _T1, _A1, _S2, _T2, _A2, _S3, _T3, _A3, _S4, _T4, _AOUT = range(12)


# ----------------------------------------------------------------------------
# Fused Pallas kernel: the whole VarGBlock_S2 (batch folded into the M rows).
# ----------------------------------------------------------------------------
def _vargblock_kernel(patches_ref, w1_ref, w2_ref, w3_ref, w4_ref, vec_ref,
                      mask_ref, o_ref, xn2_ref, p3_ref,
                      *, k, h_out, w_out, c_b, c3):
    f32, bf16 = jnp.float32, jnp.bfloat16
    rows = o_ref.shape[0]          # n * h_out * w_out
    pad = k // 2

    vec = vec_ref[...]             # (12, 3*c_b) packed BN scale/shift + alphas

    # ---- Stage 1: [shortcut | branch1 | branch2] kxk stride-2 grouped convs.
    # All three read the same im2col patches; their block-diag-densified
    # weights are concatenated along cout -> one bf16 MXU matmul, f32 acc.
    h1 = jnp.dot(patches_ref[...], w1_ref[...], preferred_element_type=f32)
    h1 = h1 * vec[_S1] + vec[_T1]
    h1 = jnp.where(h1 >= 0.0, h1, vec[_A1] * h1)

    # ---- Stage 2: the three 1x1 grouped point convs as one block-diag matmul.
    # (sc_point has isRelu=False: its alpha slice is 1.0 -> identity.)
    h2 = jnp.dot(h1.astype(bf16), w2_ref[...], preferred_element_type=f32)
    h2 = h2 * vec[_S2] + vec[_T2]
    h2 = jnp.where(h2 >= 0.0, h2, vec[_A2] * h2)

    sc = h2[:, :c_b]                                     # shortcut path
    xn = h2[:, c_b:2 * c_b] + h2[:, 2 * c_b:3 * c_b]     # x1 + x2

    # ---- Stage 3: kxk stride-1 grouped conv on xn (varGConvBlock_3 conv).
    # Rows of xn are (batch, i, j) row-major, so tap (dh, dw) of output row p
    # is row (p + dh*w_out + dw) of xn.  Write xn twice into a doubled buffer
    # so every tap is one contiguous, statically-offset row window; multiply
    # by the precomputed boundary mask and pack lane-dense into a single
    # (rows, k*k*c_b) patch matrix -> ONE K=k*k*c_b MXU matmul.
    xn2_ref[pl.ds(0, rows), :] = xn
    xn2_ref[pl.ds(rows, rows), :] = xn
    mask = mask_ref[...]                                 # (rows, k*k) 0/1 f32
    for kh in range(k):
        for kw in range(k):
            t = kh * k + kw
            off = (kh - pad) * w_out + (kw - pad)
            tap = xn2_ref[pl.ds(off % rows, rows), :]    # rows (p+off) mod rows
            p3_ref[:, pl.ds(t * c_b, c_b)] = tap * mask[:, t:t + 1]
    h3 = jnp.dot(p3_ref[...].astype(bf16), w3_ref[...],
                 preferred_element_type=f32)
    h3 = h3 * vec[_S3, :c3] + vec[_T3, :c3]
    h3 = jnp.where(h3 >= 0.0, h3, vec[_A3, :c3] * h3)

    # ---- Stage 4: 1x1 point conv back to c_b channels (no PReLU in the unit).
    h4 = jnp.dot(h3.astype(bf16), w4_ref[...], preferred_element_type=f32)
    h4 = h4 * vec[_S4, :c_b] + vec[_T4, :c_b]

    # ---- Residual add + final PReLU.
    out = sc + h4
    out = jnp.where(out >= 0.0, out, vec[_AOUT, :c_b] * out)
    o_ref[...] = out


# ----------------------------------------------------------------------------
# Parameter helpers
# ----------------------------------------------------------------------------
def _dense_from_grouped(w_g, cin, groups):
    """Grouped conv weight (Cout, Cin/groups, k, k) -> dense (k*k, Cin, Cout)."""
    cout, cin_g, kh, kw = w_g.shape
    cout_g = cout // groups
    w_r = jnp.transpose(w_g, (2, 3, 1, 0)).reshape(kh * kw, cin_g, cout)
    w_dense = jnp.zeros((kh * kw, cin, cout), jnp.float32)
    for g in range(groups):
        w_dense = w_dense.at[:, g * cin_g:(g + 1) * cin_g,
                             g * cout_g:(g + 1) * cout_g].set(
            w_r[:, :, g * cout_g:(g + 1) * cout_g])
    return w_dense


def _block_diag(mats):
    nr = sum(m.shape[0] for m in mats)
    nc = sum(m.shape[1] for m in mats)
    out = jnp.zeros((nr, nc), jnp.float32)
    r = c = 0
    for m in mats:
        out = out.at[r:r + m.shape[0], c:c + m.shape[1]].set(m)
        r += m.shape[0]
        c += m.shape[1]
    return out


def make_unit_params(key, cin, cout, k, S):
    """Params for one Conv(grouped)+BN(+PReLU) unit, BN folded (eval mode)."""
    groups = cin // S
    cin_g = cin // groups
    k1, k2, k3, k4, k5 = jax.random.split(key, 5)
    w_g = 0.1 * jax.random.normal(k1, (cout, cin_g, k, k), jnp.float32)
    gamma = 1.0 + 0.1 * jax.random.normal(k2, (cout,), jnp.float32)
    beta = 0.1 * jax.random.normal(k3, (cout,), jnp.float32)
    mean = 0.1 * jax.random.normal(k4, (cout,), jnp.float32)
    var = 0.5 + jax.random.uniform(k5, (cout,), jnp.float32)
    eps = 1e-5
    scale = gamma / jnp.sqrt(var + eps)
    shift = beta - mean * scale
    return dict(
        w=_dense_from_grouped(w_g, cin, groups),   # (k*k, cin, cout) dense
        w_g=w_g,
        groups=groups,
        scale=scale[None, :],
        shift=shift[None, :],
        alpha=jnp.array([[0.25]], jnp.float32),    # PyTorch PReLU default (scalar)
    )


# ----------------------------------------------------------------------------
# Full VarGBlock_S2 forward (one pallas_call)
# ----------------------------------------------------------------------------
def vargblock_s2_forward(x_nchw, params, *, k, stride):
    x = jnp.transpose(x_nchw, (0, 2, 3, 1)).astype(jnp.float32)   # NCHW -> NHWC
    n, h, w, cin = x.shape
    pad = k // 2
    h_out = (h + 2 * pad - k) // stride + 1
    w_out = (w + 2 * pad - k) // stride + 1
    m = h_out * w_out
    rows = n * m                                  # batch folded into matmul M
    c_b = params["b1_conv"]["w"].shape[-1]        # planes
    c3 = params["b3_conv"]["w"].shape[-1]         # 2*planes
    kk_cin = k * k * cin

    # --- im2col for the stride-2 stage (plain XLA, emitted in bf16) ----------
    # TODO(synk): for large feature maps build the patches in-kernel from a
    # padded NHWC tile to avoid writing k*k x the input bytes to HBM.
    xp = jnp.pad(x, ((0, 0), (pad, pad), (pad, pad), (0, 0)))
    taps = []
    for kh in range(k):
        for kw in range(k):
            taps.append(xp[:, kh:kh + stride * (h_out - 1) + 1:stride,
                           kw:kw + stride * (w_out - 1) + 1:stride, :])
    patches = jnp.concatenate(taps, axis=-1).reshape(rows, kk_cin)
    patches = patches.astype(jnp.bfloat16)

    # --- fuse weights (bf16 MXU operands) -------------------------------------
    def flat_w(p):
        kk, ci, co = p["w"].shape
        return p["w"].reshape(kk * ci, co)

    s1_units = ("sc_conv", "b1_conv", "b2_conv")
    s2_units = ("sc_point", "b1_point", "b2_point")

    w1 = jnp.concatenate([flat_w(params[u]) for u in s1_units],
                         axis=-1).astype(jnp.bfloat16)            # (k*k*cin, 3*c_b)
    w2 = _block_diag([flat_w(params[u]) for u in s2_units]
                     ).astype(jnp.bfloat16)                       # (3*c_b, 3*c_b)
    w3 = flat_w(params["b3_conv"]).astype(jnp.bfloat16)           # (k*k*c_b, c3)
    w4 = flat_w(params["b3_point"]).astype(jnp.bfloat16)          # (c3, c_b)

    # --- pack the 12 per-channel BN/PReLU vectors into ONE (12, 3*c_b) array --
    def bc(v, width):
        return jnp.broadcast_to(jnp.asarray(v, jnp.float32).reshape(()), (width,))

    def pad_row(v):
        v = jnp.asarray(v, jnp.float32).reshape(-1)
        return jnp.pad(v, (0, 3 * c_b - v.shape[0]))

    s1 = jnp.concatenate([params[u]["scale"].reshape(-1) for u in s1_units])
    t1 = jnp.concatenate([params[u]["shift"].reshape(-1) for u in s1_units])
    a1 = jnp.concatenate([bc(params[u]["alpha"][0, 0], c_b) for u in s1_units])
    s2 = jnp.concatenate([params[u]["scale"].reshape(-1) for u in s2_units])
    t2 = jnp.concatenate([params[u]["shift"].reshape(-1) for u in s2_units])
    # sc_point has isRelu=False: alpha == 1.0 encodes "pass negatives through".
    # NOTE: assumes the PyTorch-default scalar PReLU (num_parameters=1).
    a2 = jnp.concatenate([bc(1.0, c_b),
                          bc(params["b1_point"]["alpha"][0, 0], c_b),
                          bc(params["b2_point"]["alpha"][0, 0], c_b)])
    s3 = params["b3_conv"]["scale"].reshape(-1)
    t3 = params["b3_conv"]["shift"].reshape(-1)
    a3 = bc(params["b3_conv"]["alpha"][0, 0], c3)
    s4 = params["b3_point"]["scale"].reshape(-1)
    t4 = params["b3_point"]["shift"].reshape(-1)
    aout = bc(params["prelu_alpha"][0, 0], c_b)
    vec = jnp.stack([pad_row(v) for v in
                     (s1, t1, a1, s2, t2, a2, s3, t3, a3, s4, t4, aout)],
                    axis=0)                                        # (12, 3*c_b)

    # --- precomputed stage-3 boundary masks (compile-time constant) -----------
    p_idx = np.arange(rows)
    i_idx = (p_idx % m) // w_out
    j_idx = p_idx % w_out
    mk = []
    for kh in range(k):
        for kw in range(k):
            dh, dw = kh - pad, kw - pad
            mk.append((i_idx + dh >= 0) & (i_idx + dh < h_out) &
                      (j_idx + dw >= 0) & (j_idx + dw < w_out))
    mask = jnp.asarray(np.stack(mk, axis=1).astype(np.float32))    # (rows, k*k)

    kern = functools.partial(_vargblock_kernel, k=k, h_out=h_out, w_out=w_out,
                             c_b=c_b, c3=c3)

    out = pl.pallas_call(
        kern,
        out_shape=jax.ShapeDtypeStruct((rows, c_b), jnp.float32),
        grid=(1,),
        in_specs=[
            pl.BlockSpec((rows, kk_cin), lambda i: (0, 0)),
            pl.BlockSpec((kk_cin, 3 * c_b), lambda i: (0, 0)),
            pl.BlockSpec((3 * c_b, 3 * c_b), lambda i: (0, 0)),
            pl.BlockSpec((k * k * c_b, c3), lambda i: (0, 0)),
            pl.BlockSpec((c3, c_b), lambda i: (0, 0)),
            pl.BlockSpec((12, 3 * c_b), lambda i: (0, 0)),
            pl.BlockSpec((rows, k * k), lambda i: (0, 0)),
        ],
        out_specs=pl.BlockSpec((rows, c_b), lambda i: (0, 0)),
        scratch_shapes=[
            pltpu.VMEM((2 * rows, c_b), jnp.float32),      # doubled xn buffer
            pltpu.VMEM((rows, k * k * c_b), jnp.float32),  # stage-3 patch matrix
        ],
        compiler_params=pltpu.CompilerParams(
            dimension_semantics=("arbitrary",)),
    )(patches, w1, w2, w3, w4, vec, mask)

    out = out.reshape(n, h_out, w_out, c_b)
    return jnp.transpose(out, (0, 3, 1, 2))                        # NHWC -> NCHW


# ----------------------------------------------------------------------------
# Pure-JAX reference (grouped convs via lax.conv_general_dilated)
# ----------------------------------------------------------------------------
def _ref_unit(x, p, k, stride, relu):
    pad = k // 2
    w_hwio = jnp.transpose(p["w_g"], (2, 3, 1, 0))
    y = jax.lax.conv_general_dilated(
        x, w_hwio, (stride, stride), [(pad, pad), (pad, pad)],
        dimension_numbers=("NHWC", "HWIO", "NHWC"),
        feature_group_count=p["groups"],
        precision=jax.lax.Precision.HIGHEST)
    y = y * p["scale"][0] + p["shift"][0]
    if relu:
        y = jnp.where(y >= 0.0, y, p["alpha"][0, 0] * y)
    return y


def ref_forward(x_nchw, params, *, k, stride):
    x = jnp.transpose(x_nchw, (0, 2, 3, 1)).astype(jnp.float32)
    sc = _ref_unit(x, params["sc_conv"], k, stride, True)
    sc = _ref_unit(sc, params["sc_point"], 1, 1, False)
    b1 = _ref_unit(x, params["b1_conv"], k, stride, True)
    b1 = _ref_unit(b1, params["b1_point"], 1, 1, True)
    b2 = _ref_unit(x, params["b2_conv"], k, stride, True)
    b2 = _ref_unit(b2, params["b2_point"], 1, 1, True)
    xn = b1 + b2
    xn = _ref_unit(xn, params["b3_conv"], k, 1, True)
    xn = _ref_unit(xn, params["b3_point"], 1, 1, False)
    out = sc + xn
    a = params["prelu_alpha"][0, 0]
    out = jnp.where(out >= 0.0, out, a * out)
    return jnp.transpose(out, (0, 3, 1, 2))


# ----------------------------------------------------------------------------
if __name__ == "__main__":
    # Module config: VarGBlock_S2(in_plances=16, kernel_size=3, stride=2, S=8)
    in_planes, kernel_size, stride, S = 16, 3, 2, 8
    planes = 2 * in_planes
    N, H, W = 2, 16, 16

    key = jax.random.PRNGKey(0)
    keys = jax.random.split(key, 9)
    params = {
        "b1_conv":  make_unit_params(keys[0], in_planes, planes, kernel_size, S),
        "b1_point": make_unit_params(keys[1], planes, planes, 1, S),
        "b2_conv":  make_unit_params(keys[2], in_planes, planes, kernel_size, S),
        "b2_point": make_unit_params(keys[3], planes, planes, 1, S),
        "b3_conv":  make_unit_params(keys[4], planes, 2 * planes, kernel_size, S),
        "b3_point": make_unit_params(keys[5], 2 * planes, planes, 1, S),
        "sc_conv":  make_unit_params(keys[6], in_planes, planes, kernel_size, S),
        "sc_point": make_unit_params(keys[7], planes, planes, 1, S),
        "prelu_alpha": jnp.array([[0.25]], jnp.float32),
    }

    x = jax.random.normal(keys[8], (N, in_planes, H, W), jnp.float32)

    fwd = jax.jit(functools.partial(vargblock_s2_forward,
                                    k=kernel_size, stride=stride))
    out = jax.block_until_ready(fwd(x, params))
    assert out.shape == (N, planes, H // stride, W // stride), out.shape

    ref = ref_forward(x, params, k=kernel_size, stride=stride)
    abs_err = float(jnp.max(jnp.abs(out - ref)))
    rel_err = abs_err / (float(jnp.max(jnp.abs(ref))) + 1e-9)
    # bf16 MXU operands with f32 accumulation: expect ~1-2% relative-to-max
    # error vs the f32 HIGHEST-precision conv reference; far above that would
    # indicate a real structural bug.
    assert rel_err < 5e-2, f"rel_err={rel_err:.4g} (abs_err={abs_err:.4g})"

    print("KERNEL_OK")
</pallas_src>

<mosaic_0001>
module attributes {stable_mosaic.version = 11 : i64} {
  func.func @_vargblock_kernel(%arg0: i32, %arg1: memref<128x144xbf16, #tpu.memory_space<vmem>>, %arg2: memref<144x96xbf16, #tpu.memory_space<vmem>>, %arg3: memref<96x96xbf16, #tpu.memory_space<vmem>>, %arg4: memref<288x64xbf16, #tpu.memory_space<vmem>>, %arg5: memref<64x32xbf16, #tpu.memory_space<vmem>>, %arg6: memref<12x96xf32, #tpu.memory_space<vmem>>, %arg7: memref<128x9xf32, #tpu.memory_space<vmem>>, %arg8: memref<128x32xf32, #tpu.memory_space<vmem>>, %arg9: memref<256x32xf32, #tpu.memory_space<vmem>>, %arg10: memref<128x288xf32, #tpu.memory_space<vmem>>) attributes {dimension_semantics = [#tpu.dimension_semantics<arbitrary>], iteration_bounds = array<i64: 1>, scalar_prefetch = 0 : i64, scratch_operands = 2 : i64, tpu.core_type = #tpu.core_type<tc>, window_params = [{pipeline_mode = #tpu.pipeline_mode<synchronous>, transform_indices = @transform_0, window_bounds = array<i64: 128, 144>}, {pipeline_mode = #tpu.pipeline_mode<synchronous>, transform_indices = @transform_1, window_bounds = array<i64: 144, 96>}, {pipeline_mode = #tpu.pipeline_mode<synchronous>, transform_indices = @transform_2, window_bounds = array<i64: 96, 96>}, {pipeline_mode = #tpu.pipeline_mode<synchronous>, transform_indices = @transform_3, window_bounds = array<i64: 288, 64>}, {pipeline_mode = #tpu.pipeline_mode<synchronous>, transform_indices = @transform_4, window_bounds = array<i64: 64, 32>}, {pipeline_mode = #tpu.pipeline_mode<synchronous>, transform_indices = @transform_5, window_bounds = array<i64: 12, 96>}, {pipeline_mode = #tpu.pipeline_mode<synchronous>, transform_indices = @transform_6, window_bounds = array<i64: 128, 9>}, {pipeline_mode = #tpu.pipeline_mode<synchronous>, transform_indices = @transform_7, window_bounds = array<i64: 128, 32>}]} {
    %c0 = arith.constant 0 : index
    %c0_0 = arith.constant 0 : index
    %0 = vector.load %arg6[%c0, %c0_0] : memref<12x96xf32, #tpu.memory_space<vmem>>, vector<12x96xf32>
    %c0_1 = arith.constant 0 : index
    %c0_2 = arith.constant 0 : index
    %1 = vector.load %arg1[%c0_1, %c0_2] : memref<128x144xbf16, #tpu.memory_space<vmem>>, vector<128x144xbf16>
    %c0_3 = arith.constant 0 : index
    %c0_4 = arith.constant 0 : index
    %2 = vector.load %arg2[%c0_3, %c0_4] : memref<144x96xbf16, #tpu.memory_space<vmem>>, vector<144x96xbf16>
    %cst = arith.constant dense<0.000000e+00> : vector<128x96xf32>
    %3 = tpu.matmul %1, %2, %cst {dimension_numbers = #tpu.dot_dimension_numbers<[1], [0], [0], [1], [0, 0, 1, 1], [], []>} : vector<128x144xbf16>, vector<144x96xbf16>, vector<128x96xf32> -> vector<128x96xf32>
    %4 = vector.extract_strided_slice %0 {offsets = [0, 0], sizes = [1, 96], strides = [1, 1]} : vector<12x96xf32> to vector<1x96xf32>
    %5 = vector.shape_cast %4 : vector<1x96xf32> to vector<96xf32>
    %6 = vector.shape_cast %5 : vector<96xf32> to vector<1x96xf32>
    %7 = vector.broadcast %6 : vector<1x96xf32> to vector<128x96xf32>
    %8 = arith.mulf %3, %7 : vector<128x96xf32>
    %9 = vector.extract_strided_slice %0 {offsets = [1, 0], sizes = [1, 96], strides = [1, 1]} : vector<12x96xf32> to vector<1x96xf32>
    %10 = vector.shape_cast %9 : vector<1x96xf32> to vector<96xf32>
    %11 = vector.shape_cast %10 : vector<96xf32> to vector<1x96xf32>
    %12 = vector.broadcast %11 : vector<1x96xf32> to vector<128x96xf32>
    %13 = arith.addf %8, %12 : vector<128x96xf32>
    %cst_5 = arith.constant 0.000000e+00 : f32
    %14 = vector.broadcast %cst_5 : f32 to vector<128x96xf32>
    %15 = arith.cmpf oge, %13, %14 : vector<128x96xf32>
    %16 = vector.extract_strided_slice %0 {offsets = [2, 0], sizes = [1, 96], strides = [1, 1]} : vector<12x96xf32> to vector<1x96xf32>
    %17 = vector.shape_cast %16 : vector<1x96xf32> to vector<96xf32>
    %18 = vector.shape_cast %17 : vector<96xf32> to vector<1x96xf32>
    %19 = vector.broadcast %18 : vector<1x96xf32> to vector<128x96xf32>
    %20 = arith.mulf %19, %13 : vector<128x96xf32>
    %21 = arith.select %15, %13, %20 : vector<128x96xi1>, vector<128x96xf32>
    %22 = arith.truncf %21 : vector<128x96xf32> to vector<128x96xbf16>
    %c0_6 = arith.constant 0 : index
    %c0_7 = arith.constant 0 : index
    %23 = vector.load %arg3[%c0_6, %c0_7] : memref<96x96xbf16, #tpu.memory_space<vmem>>, vector<96x96xbf16>
    %cst_8 = arith.constant dense<0.000000e+00> : vector<128x96xf32>
    %24 = tpu.matmul %22, %23, %cst_8 {dimension_numbers = #tpu.dot_dimension_numbers<[1], [0], [0], [1], [0, 0, 1, 1], [], []>} : vector<128x96xbf16>, vector<96x96xbf16>, vector<128x96xf32> -> vector<128x96xf32>
    %25 = vector.extract_strided_slice %0 {offsets = [3, 0], sizes = [1, 96], strides = [1, 1]} : vector<12x96xf32> to vector<1x96xf32>
    %26 = vector.shape_cast %25 : vector<1x96xf32> to vector<96xf32>
    %27 = vector.shape_cast %26 : vector<96xf32> to vector<1x96xf32>
    %28 = vector.broadcast %27 : vector<1x96xf32> to vector<128x96xf32>
    %29 = arith.mulf %24, %28 : vector<128x96xf32>
    %30 = vector.extract_strided_slice %0 {offsets = [4, 0], sizes = [1, 96], strides = [1, 1]} : vector<12x96xf32> to vector<1x96xf32>
    %31 = vector.shape_cast %30 : vector<1x96xf32> to vector<96xf32>
    %32 = vector.shape_cast %31 : vector<96xf32> to vector<1x96xf32>
    %33 = vector.broadcast %32 : vector<1x96xf32> to vector<128x96xf32>
    %34 = arith.addf %29, %33 : vector<128x96xf32>
    %cst_9 = arith.constant 0.000000e+00 : f32
    %35 = vector.broadcast %cst_9 : f32 to vector<128x96xf32>
    %36 = arith.cmpf oge, %34, %35 : vector<128x96xf32>
    %37 = vector.extract_strided_slice %0 {offsets = [5, 0], sizes = [1, 96], strides = [1, 1]} : vector<12x96xf32> to vector<1x96xf32>
    %38 = vector.shape_cast %37 : vector<1x96xf32> to vector<96xf32>
    %39 = vector.shape_cast %38 : vector<96xf32> to vector<1x96xf32>
    %40 = vector.broadcast %39 : vector<1x96xf32> to vector<128x96xf32>
    %41 = arith.mulf %40, %34 : vector<128x96xf32>
    %42 = arith.select %36, %34, %41 : vector<128x96xi1>, vector<128x96xf32>
    %43 = vector.extract_strided_slice %42 {offsets = [0, 0], sizes = [128, 32], strides = [1, 1]} : vector<128x96xf32> to vector<128x32xf32>
    %44 = vector.extract_strided_slice %42 {offsets = [0, 32], sizes = [128, 32], strides = [1, 1]} : vector<128x96xf32> to vector<128x32xf32>
    %45 = vector.extract_strided_slice %42 {offsets = [0, 64], sizes = [128, 32], strides = [1, 1]} : vector<128x96xf32> to vector<128x32xf32>
    %46 = arith.addf %44, %45 : vector<128x32xf32>
    %c0_10 = arith.constant 0 : index
    %c0_11 = arith.constant 0 : index
    %47 = vector.load %arg9[%c0_10, %c0_11] : memref<256x32xf32, #tpu.memory_space<vmem>>, vector<128x32xf32>
    tpu.vector_store %arg9[%c0_10, %c0_11], %46 {strides = array<i32>} : memref<256x32xf32, #tpu.memory_space<vmem>>, vector<128x32xf32>,
    %c128 = arith.constant 128 : index
    %c0_12 = arith.constant 0 : index
    %48 = vector.load %arg9[%c128, %c0_12] : memref<256x32xf32, #tpu.memory_space<vmem>>, vector<128x32xf32>
    tpu.vector_store %arg9[%c128, %c0_12], %46 {strides = array<i32>} : memref<256x32xf32, #tpu.memory_space<vmem>>, vector<128x32xf32>,
    %c0_13 = arith.constant 0 : index
    %c0_14 = arith.constant 0 : index
    %49 = vector.load %arg7[%c0_13, %c0_14] : memref<128x9xf32, #tpu.memory_space<vmem>>, vector<128x9xf32>
    %c119 = arith.constant 119 : index
    %c0_15 = arith.constant 0 : index
    %50 = vector.load %arg9[%c119, %c0_15] : memref<256x32xf32, #tpu.memory_space<vmem>>, vector<128x32xf32>
    %51 = vector.extract_strided_slice %49 {offsets = [0, 0], sizes = [128, 1], strides = [1, 1]} : vector<128x9xf32> to vector<128x1xf32>
    %52 = vector.broadcast %51 : vector<128x1xf32> to vector<128x32xf32>
    %53 = arith.mulf %50, %52 : vector<128x32xf32>
    %c0_16 = arith.constant 0 : index
    %c0_17 = arith.constant 0 : index
    %54 = vector.load %arg10[%c0_16, %c0_17] : memref<128x288xf32, #tpu.memory_space<vmem>>, vector<128x32xf32>
    tpu.vector_store %arg10[%c0_16, %c0_17], %53 {strides = array<i32>} : memref<128x288xf32, #tpu.memory_space<vmem>>, vector<128x32xf32>,
    %c120 = arith.constant 120 : index
    %c0_18 = arith.constant 0 : index
    %55 = vector.load %arg9[%c120, %c0_18] : memref<256x32xf32, #tpu.memory_space<vmem>>, vector<128x32xf32>
    %56 = vector.extract_strided_slice %49 {offsets = [0, 1], sizes = [128, 1], strides = [1, 1]} : vector<128x9xf32> to vector<128x1xf32>
    %57 = vector.broadcast %56 : vector<128x1xf32> to vector<128x32xf32>
    %58 = arith.mulf %55, %57 : vector<128x32xf32>
    %c0_19 = arith.constant 0 : index
    %c32 = arith.constant 32 : index
    %59 = vector.load %arg10[%c0_19, %c32] : memref<128x288xf32, #tpu.memory_space<vmem>>, vector<128x32xf32>
    tpu.vector_store %arg10[%c0_19, %c32], %58 {strides = array<i32>} : memref<128x288xf32, #tpu.memory_space<vmem>>, vector<128x32xf32>,
    %c121 = arith.constant 121 : index
    %c0_20 = arith.constant 0 : index
    %60 = vector.load %arg9[%c121, %c0_20] : memref<256x32xf32, #tpu.memory_space<vmem>>, vector<128x32xf32>
    %61 = vector.extract_strided_slice %49 {offsets = [0, 2], sizes = [128, 1], strides = [1, 1]} : vector<128x9xf32> to vector<128x1xf32>
    %62 = vector.broadcast %61 : vector<128x1xf32> to vector<128x32xf32>
    %63 = arith.mulf %60, %62 : vector<128x32xf32>
    %c0_21 = arith.constant 0 : index
    %c64 = arith.constant 64 : index
    %64 = vector.load %arg10[%c0_21, %c64] : memref<128x288xf32, #tpu.memory_space<vmem>>, vector<128x32xf32>
    tpu.vector_store %arg10[%c0_21, %c64], %63 {strides = array<i32>} : memref<128x288xf32, #tpu.memory_space<vmem>>, vector<128x32xf32>,
    %c127 = arith.constant 127 : index
    %c0_22 = arith.constant 0 : index
    %65 = vector.load %arg9[%c127, %c0_22] : memref<256x32xf32, #tpu.memory_space<vmem>>, vector<128x32xf32>
    %66 = vector.extract_strided_slice %49 {offsets = [0, 3], sizes = [128, 1], strides = [1, 1]} : vector<128x9xf32> to vector<128x1xf32>
    %67 = vector.broadcast %66 : vector<128x1xf32> to vector<128x32xf32>
    %68 = arith.mulf %65, %67 : vector<128x32xf32>
    %c0_23 = arith.constant 0 : index
    %c96 = arith.constant 96 : index
    %69 = vector.load %arg10[%c0_23, %c96] : memref<128x288xf32, #tpu.memory_space<vmem>>, vector<128x32xf32>
    tpu.vector_store %arg10[%c0_23, %c96], %68 {strides = array<i32>} : memref<128x288xf32, #tpu.memory_space<vmem>>, vector<128x32xf32>,
    %c0_24 = arith.constant 0 : index
    %c0_25 = arith.constant 0 : index
    %70 = vector.load %arg9[%c0_24, %c0_25] : memref<256x32xf32, #tpu.memory_space<vmem>>, vector<128x32xf32>
    %71 = vector.extract_strided_slice %49 {offsets = [0, 4], sizes = [128, 1], strides = [1, 1]} : vector<128x9xf32> to vector<128x1xf32>
    %72 = vector.broadcast %71 : vector<128x1xf32> to vector<128x32xf32>
    %73 = arith.mulf %70, %72 : vector<128x32xf32>
    %c0_26 = arith.constant 0 : index
    %c128_27 = arith.constant 128 : index
    %74 = vector.load %arg10[%c0_26, %c128_27] : memref<128x288xf32, #tpu.memory_space<vmem>>, vector<128x32xf32>
    tpu.vector_store %arg10[%c0_26, %c128_27], %73 {strides = array<i32>} : memref<128x288xf32, #tpu.memory_space<vmem>>, vector<128x32xf32>,
    %c1 = arith.constant 1 : index
    %c0_28 = arith.constant 0 : index
    %75 = vector.load %arg9[%c1, %c0_28] : memref<256x32xf32, #tpu.memory_space<vmem>>, vector<128x32xf32>
    %76 = vector.extract_strided_slice %49 {offsets = [0, 5], sizes = [128, 1], strides = [1, 1]} : vector<128x9xf32> to vector<128x1xf32>
    %77 = vector.broadcast %76 : vector<128x1xf32> to vector<128x32xf32>
    %78 = arith.mulf %75, %77 : vector<128x32xf32>
    %c0_29 = arith.constant 0 : index
    %c160 = arith.constant 160 : index
    %79 = vector.load %arg10[%c0_29, %c160] : memref<128x288xf32, #tpu.memory_space<vmem>>, vector<128x32xf32>
    tpu.vector_store %arg10[%c0_29, %c160], %78 {strides = array<i32>} : memref<128x288xf32, #tpu.memory_space<vmem>>, vector<128x32xf32>,
    %c7 = arith.constant 7 : index
    %c0_30 = arith.constant 0 : index
    %80 = vector.load %arg9[%c7, %c0_30] : memref<256x32xf32, #tpu.memory_space<vmem>>, vector<128x32xf32>
    %81 = vector.extract_strided_slice %49 {offsets = [0, 6], sizes = [128, 1], strides = [1, 1]} : vector<128x9xf32> to vector<128x1xf32>
    %82 = vector.broadcast %81 : vector<128x1xf32> to vector<128x32xf32>
    %83 = arith.mulf %80, %82 : vector<128x32xf32>
    %c0_31 = arith.constant 0 : index
    %c192 = arith.constant 192 : index
    %84 = vector.load %arg10[%c0_31, %c192] : memref<128x288xf32, #tpu.memory_space<vmem>>, vector<128x32xf32>
    tpu.vector_store %arg10[%c0_31, %c192], %83 {strides = array<i32>} : memref<128x288xf32, #tpu.memory_space<vmem>>, vector<128x32xf32>,
    %c8 = arith.constant 8 : index
    %c0_32 = arith.constant 0 : index
    %85 = vector.load %arg9[%c8, %c0_32] : memref<256x32xf32, #tpu.memory_space<vmem>>, vector<128x32xf32>
    %86 = vector.extract_strided_slice %49 {offsets = [0, 7], sizes = [128, 1], strides = [1, 1]} : vector<128x9xf32> to vector<128x1xf32>
    %87 = vector.broadcast %86 : vector<128x1xf32> to vector<128x32xf32>
    %88 = arith.mulf %85, %87 : vector<128x32xf32>
    %c0_33 = arith.constant 0 : index
    %c224 = arith.constant 224 : index
    %89 = vector.load %arg10[%c0_33, %c224] : memref<128x288xf32, #tpu.memory_space<vmem>>, vector<128x32xf32>
    tpu.vector_store %arg10[%c0_33, %c224], %88 {strides = array<i32>} : memref<128x288xf32, #tpu.memory_space<vmem>>, vector<128x32xf32>,
    %c9 = arith.constant 9 : index
    %c0_34 = arith.constant 0 : index
    %90 = vector.load %arg9[%c9, %c0_34] : memref<256x32xf32, #tpu.memory_space<vmem>>, vector<128x32xf32>
    %91 = vector.extract_strided_slice %49 {offsets = [0, 8], sizes = [128, 1], strides = [1, 1]} : vector<128x9xf32> to vector<128x1xf32>
    %92 = vector.broadcast %91 : vector<128x1xf32> to vector<128x32xf32>
    %93 = arith.mulf %90, %92 : vector<128x32xf32>
    %c0_35 = arith.constant 0 : index
    %c256 = arith.constant 256 : index
    %94 = vector.load %arg10[%c0_35, %c256] : memref<128x288xf32, #tpu.memory_space<vmem>>, vector<128x32xf32>
    tpu.vector_store %arg10[%c0_35, %c256], %93 {strides = array<i32>} : memref<128x288xf32, #tpu.memory_space<vmem>>, vector<128x32xf32>,
    %c0_36 = arith.constant 0 : index
    %c0_37 = arith.constant 0 : index
    %95 = vector.load %arg10[%c0_36, %c0_37] : memref<128x288xf32, #tpu.memory_space<vmem>>, vector<128x288xf32>
    %96 = arith.truncf %95 : vector<128x288xf32> to vector<128x288xbf16>
    %c0_38 = arith.constant 0 : index
    %c0_39 = arith.constant 0 : index
    %97 = vector.load %arg4[%c0_38, %c0_39] : memref<288x64xbf16, #tpu.memory_space<vmem>>, vector<288x64xbf16>
    %cst_40 = arith.constant dense<0.000000e+00> : vector<128x64xf32>
    %98 = tpu.matmul %96, %97, %cst_40 {dimension_numbers = #tpu.dot_dimension_numbers<[1], [0], [0], [1], [0, 0, 1, 1], [], []>} : vector<128x288xbf16>, vector<288x64xbf16>, vector<128x64xf32> -> vector<128x64xf32>
    %99 = vector.extract_strided_slice %0 {offsets = [6, 0], sizes = [1, 64], strides = [1, 1]} : vector<12x96xf32> to vector<1x64xf32>
    %100 = vector.shape_cast %99 : vector<1x64xf32> to vector<64xf32>
    %101 = vector.shape_cast %100 : vector<64xf32> to vector<1x64xf32>
    %102 = vector.broadcast %101 : vector<1x64xf32> to vector<128x64xf32>
    %103 = arith.mulf %98, %102 : vector<128x64xf32>
    %104 = vector.extract_strided_slice %0 {offsets = [7, 0], sizes = [1, 64], strides = [1, 1]} : vector<12x96xf32> to vector<1x64xf32>
    %105 = vector.shape_cast %104 : vector<1x64xf32> to vector<64xf32>
    %106 = vector.shape_cast %105 : vector<64xf32> to vector<1x64xf32>
    %107 = vector.broadcast %106 : vector<1x64xf32> to vector<128x64xf32>
    %108 = arith.addf %103, %107 : vector<128x64xf32>
    %cst_41 = arith.constant 0.000000e+00 : f32
    %109 = vector.broadcast %cst_41 : f32 to vector<128x64xf32>
    %110 = arith.cmpf oge, %108, %109 : vector<128x64xf32>
    %111 = vector.extract_strided_slice %0 {offsets = [8, 0], sizes = [1, 64], strides = [1, 1]} : vector<12x96xf32> to vector<1x64xf32>
    %112 = vector.shape_cast %111 : vector<1x64xf32> to vector<64xf32>
    %113 = vector.shape_cast %112 : vector<64xf32> to vector<1x64xf32>
    %114 = vector.broadcast %113 : vector<1x64xf32> to vector<128x64xf32>
    %115 = arith.mulf %114, %108 : vector<128x64xf32>
    %116 = arith.select %110, %108, %115 : vector<128x64xi1>, vector<128x64xf32>
    %117 = arith.truncf %116 : vector<128x64xf32> to vector<128x64xbf16>
    %c0_42 = arith.constant 0 : index
    %c0_43 = arith.constant 0 : index
    %118 = vector.load %arg5[%c0_42, %c0_43] : memref<64x32xbf16, #tpu.memory_space<vmem>>, vector<64x32xbf16>
    %cst_44 = arith.constant dense<0.000000e+00> : vector<128x32xf32>
    %119 = tpu.matmul %117, %118, %cst_44 {dimension_numbers = #tpu.dot_dimension_numbers<[1], [0], [0], [1], [0, 0, 1, 1], [], []>} : vector<128x64xbf16>, vector<64x32xbf16>, vector<128x32xf32> -> vector<128x32xf32>
    %120 = vector.extract_strided_slice %0 {offsets = [9, 0], sizes = [1, 32], strides = [1, 1]} : vector<12x96xf32> to vector<1x32xf32>
    %121 = vector.shape_cast %120 : vector<1x32xf32> to vector<32xf32>
    %122 = vector.shape_cast %121 : vector<32xf32> to vector<1x32xf32>
    %123 = vector.broadcast %122 : vector<1x32xf32> to vector<128x32xf32>
    %124 = arith.mulf %119, %123 : vector<128x32xf32>
    %125 = vector.extract_strided_slice %0 {offsets = [10, 0], sizes = [1, 32], strides = [1, 1]} : vector<12x96xf32> to vector<1x32xf32>
    %126 = vector.shape_cast %125 : vector<1x32xf32> to vector<32xf32>
    %127 = vector.shape_cast %126 : vector<32xf32> to vector<1x32xf32>
    %128 = vector.broadcast %127 : vector<1x32xf32> to vector<128x32xf32>
    %129 = arith.addf %124, %128 : vector<128x32xf32>
    %130 = arith.addf %43, %129 : vector<128x32xf32>
    %cst_45 = arith.constant 0.000000e+00 : f32
    %131 = vector.broadcast %cst_45 : f32 to vector<128x32xf32>
    %132 = arith.cmpf oge, %130, %131 : vector<128x32xf32>
    %133 = vector.extract_strided_slice %0 {offsets = [11, 0], sizes = [1, 32], strides = [1, 1]} : vector<12x96xf32> to vector<1x32xf32>
    %134 = vector.shape_cast %133 : vector<1x32xf32> to vector<32xf32>
    %135 = vector.shape_cast %134 : vector<32xf32> to vector<1x32xf32>
    %136 = vector.broadcast %135 : vector<1x32xf32> to vector<128x32xf32>
    %137 = arith.mulf %136, %130 : vector<128x32xf32>
    %138 = arith.select %132, %130, %137 : vector<128x32xi1>, vector<128x32xf32>
    %c0_46 = arith.constant 0 : index
    %c0_47 = arith.constant 0 : index
    %139 = vector.load %arg8[%c0_46, %c0_47] : memref<128x32xf32, #tpu.memory_space<vmem>>, vector<128x32xf32>
    tpu.vector_store %arg8[%c0_46, %c0_47], %138 {strides = array<i32>} : memref<128x32xf32, #tpu.memory_space<vmem>>, vector<128x32xf32>,
    return
  }
  func.func @transform_0(%arg0: i32) -> (i32, i32) {
    %c0_i32 = arith.constant 0 : i32
    %c0_i32_0 = arith.constant 0 : i32
    %c0_i32_1 = arith.constant 0 : i32
    return %c0_i32, %c0_i32_0 : i32, i32
  }
  func.func @transform_1(%arg0: i32) -> (i32, i32) {
    %c0_i32 = arith.constant 0 : i32
    %c0_i32_0 = arith.constant 0 : i32
    %c0_i32_1 = arith.constant 0 : i32
    return %c0_i32, %c0_i32_0 : i32, i32
  }
  func.func @transform_2(%arg0: i32) -> (i32, i32) {
    %c0_i32 = arith.constant 0 : i32
    %c0_i32_0 = arith.constant 0 : i32
    %c0_i32_1 = arith.constant 0 : i32
    return %c0_i32, %c0_i32_0 : i32, i32
  }
  func.func @transform_3(%arg0: i32) -> (i32, i32) {
    %c0_i32 = arith.constant 0 : i32
    %c0_i32_0 = arith.constant 0 : i32
    %c0_i32_1 = arith.constant 0 : i32
    return %c0_i32, %c0_i32_0 : i32, i32
  }
  func.func @transform_4(%arg0: i32) -> (i32, i32) {
    %c0_i32 = arith.constant 0 : i32
    %c0_i32_0 = arith.constant 0 : i32
    %c0_i32_1 = arith.constant 0 : i32
    return %c0_i32, %c0_i32_0 : i32, i32
  }
  func.func @transform_5(%arg0: i32) -> (i32, i32) {
    %c0_i32 = arith.constant 0 : i32
    %c0_i32_0 = arith.constant 0 : i32
    %c0_i32_1 = arith.constant 0 : i32
    return %c0_i32, %c0_i32_0 : i32, i32
  }
  func.func @transform_6(%arg0: i32) -> (i32, i32) {
    %c0_i32 = arith.constant 0 : i32
    %c0_i32_0 = arith.constant 0 : i32
    %c0_i32_1 = arith.constant 0 : i32
    return %c0_i32, %c0_i32_0 : i32, i32
  }
  func.func @transform_7(%arg0: i32) -> (i32, i32) {
    %c0_i32 = arith.constant 0 : i32
    %c0_i32_0 = arith.constant 0 : i32
    %c0_i32_1 = arith.constant 0 : i32
    return %c0_i32, %c0_i32_0 : i32, i32
  }
}

</mosaic_0001>

<bundles_post_ra>
// kernel: vargblock_s2_forward.1
= control target key start
LH: loop header
LB: loop body
LE: loop exit
PB: predicated region body
PF: predicated region fallthrough
CT: control target
= control target key end

     0   :  { %v3546_v1 = vmov 0   ;;  %vm190_vm0 = vcmask 130048   ;;  %v3547_v28 = vmov 1   ;;  %s5388_s0 = inlined_call_operand.vmem [shape: bf16[128,144], index: 0, kind: input, shape index: {}]   ;;  %s5389_s1 = inlined_call_operand.vmem [shape: bf16[144,96], index: 1, kind: input, shape index: {}]   ;;  %s5390_s2 = inlined_call_operand.vmem [shape: bf16[96,96], index: 2, kind: input, shape index: {}]   ;;  %s5391_s3 = inlined_call_operand.vmem [shape: bf16[288,64], index: 3, kind: input, shape index: {}]   ;;  %s5392_s4 = inlined_call_operand.vmem [shape: bf16[64,32], index: 4, kind: input, shape index: {}]   ;;  %s5393_s5 = inlined_call_operand.vmem [shape: f32[12,96], index: 5, kind: input, shape index: {}]   ;;  %s5394_s6 = inlined_call_operand.vmem [shape: f32[128,9], index: 6, kind: input, shape index: {}]   ;;  %s5395_s7 = inlined_call_operand.hbm [shape: f32[128,32], index: 7, kind: output, shape index: {}]  }
   0x1   :  { %v3604_v0 = vld [vmem:[%s5394_s6 + $0x8] sm:$0xff]  ;;  %3395 = vset.pattern.permute.xlu1 %v3546_v1  ;;  %215 = vmatprep.subr.bf16.mxu0 %v3546_v1  ;;  %v3452_v2 = vld [vmem:[%s5389_s1 + $0x38] sm:$0xff]   ;;  %v3613_v3 = vld [vmem:[%s5394_s6 + $0x10] sm:$0xff] }
   0x2   :  { %890 = vperm.xlu1 %3395, %v3604_v0   ;;  %3394 = vset.pattern.permute.xlu0 %v3546_v1  ;;  %v3453_v4 = vld [vmem:[%s5389_s1 + $0x30] sm:$0xff]   ;;  %v3622_v5 = vld [vmem:[%s5394_s6 + $0x20] sm:$0xff]  ;;  %v3454_v6 = vld [vmem:[%s5389_s1 + $0x28] sm:$0xff]  }
   0x3   :  { %216 = vmatpush1.bf16.msra.mxu0 %v3452_v2  ;;  %v3631_v7 = vld [vmem:[%s5394_s6 + $0x30] sm:$0xff]  ;;  %v3455_v8 = vld [vmem:[%s5389_s1 + $0x20] sm:$0xff]   ;;  %v3456_v12 = vld [vmem:[%s5389_s1 + $0x18] sm:$0xff]  }
   0x4   :  { %217 = vmatprep.subr.bf16.mxu0 %v3546_v1  ;;  %v3639_v9 = vld [vmem:[%s5394_s6] sm:$0xff]  ;;  %v3658_v13 = vld [vmem:[%s5394_s6 + $0x18] sm:$0xff]  ;;  %v3665_v14 = vld [vmem:[%s5394_s6 + $0x50] sm:$0xff] }
   0x5   :  { %885 = vperm.xlu0 %3394, %v3639_v9   ;;  %v3463_v10 = vld [vmem:[%s5388_s0 + $0x4] ss:$8 sps:$4 sm:$0xff]   ;;  %v3457_v15 = vld [vmem:[%s5389_s1 + $0x10] sm:$0xff]   ;;  %v3688_v19 = vld [vmem:[%s5394_s6 + $0x38] sm:$0xff] }
   0x6   :  { %895 = vperm.xlu1 %3395, %v3613_v3   ;;  %v3649_v11 = vld [vmem:[%s5394_s6 + $0x40] sm:$0xff]  ;;  %3131 = vmatprep.mubr.msk.bf16.mxu0 %vm190_vm0, %v3463_v10  ;;  %v3673_v16 = vld [vmem:[%s5394_s6 + $0x28] sm:$0xff]  ;;  %v3694_v20 = vld [vmem:[%s5394_s6 + $0x70] sm:$0xff] }
   0x7   :  { %218 = vmatpush1.bf16.msra.mxu0 %v3453_v4  ;;  %v3680_v17 = vld [vmem:[%s5394_s6 + $0x60] sm:$0xff]  ;;  %v3458_v18 = vld [vmem:[%s5389_s1 + $0x8] sm:$0xff]   ;;  %v3712_v24 = vld [vmem:[%s5394_s6 + $0x58] sm:$0xff] }
   0x8   :  { %219 = vmatprep.subr.bf16.mxu0 %v3546_v1  ;;  %v3459_v21 = vld [vmem:[%s5389_s1] sm:$0xff]   ;;  %v3702_v22 = vld [vmem:[%s5394_s6 + $0x48] sm:$0xff]  ;;  %v3464_v26 = vld [vmem:[%s5388_s0 + $0x14] ss:$8 sps:$4 sm:$0xff]  }
   0x9   :  { %900 = vperm.xlu0 %3394, %v3658_v13   ;;  %v3460_v23 = vld [vmem:[%s5389_s1 + $0x40] sm:$0xff]   ;;  %v3725_v27 = vld [vmem:[%s5394_s6 + $0x68] sm:$0xff]  ;;  %v3732_v29 = vld [vmem:[%s5394_s6 + $0x78] sm:$0xff] }
   0xa   :  { %905 = vperm.xlu1 %3395, %v3622_v5   ;;  %v3461_v25 = vld [vmem:[%s5388_s0] ss:$8 sps:$4 sm:$0xff]   ;;  %v3466_v30 = vld [vmem:[%s5388_s0 + $0x10] ss:$8 sps:$4 sm:$0xff]   ;;  %v3467_v31 = vld [vmem:[%s5388_s0 + $0x24] ss:$8 sps:$4 sm:$0xff]  }
   0xb   :  { %220 = vmatpush1.bf16.msra.mxu0 %v3454_v6 }
   0xc   :  { %221 = vmatprep.subr.bf16.mxu0 %v3546_v1 }
   0xd   :  { %910 = vperm.xlu0 %3394, %v3673_v16  }
   0xe   :  { %915 = vperm.xlu1 %3395, %v3631_v7  }
   0xf   :  { %222 = vmatpush1.bf16.msra.mxu0 %v3455_v8 }
  0x10   :  { %223 = vmatprep.subr.bf16.mxu0 %v3546_v1 }
  0x11   :  { %920 = vperm.xlu0 %3394, %v3688_v19  }
  0x12   :  { %925 = vperm.xlu1 %3395, %v3649_v11  }
  0x13   :  { %224 = vmatpush1.bf16.msra.mxu0 %v3456_v12 }
  0x14   :  { %225 = vmatprep.subr.bf16.mxu0 %v3546_v1 }
  0x15   :  { %930 = vperm.xlu0 %3394, %v3702_v22  }
  0x16   :  { %935 = vperm.xlu1 %3395, %v3665_v14  }
  0x17   :  { %226 = vmatpush1.bf16.msra.mxu0 %v3457_v15 }
  0x18   :  { %227 = vmatprep.subr.bf16.mxu0 %v3546_v1 }
  0x19   :  { %940 = vperm.xlu0 %3394, %v3712_v24  }
  0x1a   :  { %945 = vperm.xlu1 %3395, %v3680_v17  }
  0x1b   :  { %228 = vmatpush1.bf16.msra.mxu0 %v3458_v18 }
  0x1c   :  { %229 = vmatprep.subr.bf16.mxu0 %v3546_v1 }
  0x1d   :  { %950 = vperm.xlu0 %3394, %v3725_v27  }
  0x1e   :  { %955 = vperm.xlu1 %3395, %v3694_v20  }
  0x1f   :  { %230 = vmatpush1.bf16.msra.mxu0 %v3459_v21 }
  0x20   :  { %245 = vmatprep.subr.bf16.mxu0 %v3546_v1 }
  0x21   :  { %960 = vperm.xlu0 %3394, %v3732_v29  }
  0x22   :  { %3396 = vset.pattern.permute.xlu1 %v3547_v28 }
  0x23   :  { %246 = vmatpush2.bf16.msra.mxu0 %v3460_v23  ;;  %1012 = vperm.xlu1 %3396, %v3639_v9  }
  0x26   :  { %248 = vmatmul.mubr.bf16.vlgmr.msra.gmra.mxu0 %v3461_v25 }
  0x27   :  { %1020 = vperm.xlu1 %3396, %v3613_v3   ;;  %3132 = vmatprep.mubr.msk.bf16.mxu0 %vm190_vm0, %v3464_v26 }
  0x2b   :  { %1024 = vperm.xlu1 %3396, %v3658_v13  }
  0x2c   :  { %12 = vsyncpa [#allocation5], 0  ;;  %3397 = vset.pattern.permute.xlu0 %v3547_v28  ;;  %v3469_v32 = vld [vmem:[%s5388_s0 + $0x20] ss:$8 sps:$4 sm:$0xff]   ;;  %v3470_v33 = vld [vmem:[%s5388_s0 + $0x34] ss:$8 sps:$4 sm:$0xff]  }
  0x2d   :  { %1016 = vperm.xlu0 %3397, %v3604_v0   ;;  %v3472_v34 = vld [vmem:[%s5388_s0 + $0x30] ss:$8 sps:$4 sm:$0xff]   ;;  %v3473_v35 = vld [vmem:[%s5388_s0 + $0x44] ss:$8 sps:$4 sm:$0xff]   ;;  %v3475_v36 = vld [vmem:[%s5388_s0 + $0x40] ss:$8 sps:$4 sm:$0xff]  }
  0x2e   :  { %256 = vmatmul.mubr.bf16.gmra.mxu0 %v3466_v30  ;;  %v3476_v37 = vld [vmem:[%s5388_s0 + $0x54] ss:$8 sps:$4 sm:$0xff]   ;;  %v5405_v38 = vmov 5   ;;  %v5409_v39 = vmov 2   ;;  %v3478_v40 = vld [vmem:[%s5388_s0 + $0x50] ss:$8 sps:$4 sm:$0xff]  }
  0x2f   :  { %1032 = vperm.xlu1 %3396, %v3673_v16   ;;  %3133 = vmatprep.mubr.msk.bf16.mxu0 %vm190_vm0, %v3467_v31  ;;  %v3479_v41 = vld [vmem:[%s5388_s0 + $0x64] ss:$8 sps:$4 sm:$0xff]   ;;  %v5406_v42 = vmov 6   ;;  %v3481_v43 = vld [vmem:[%s5388_s0 + $0x60] ss:$8 sps:$4 sm:$0xff]   ;;  %v5403_v47 = vmov 7  }
  0x30   :  { %v3482_v44 = vld [vmem:[%s5388_s0 + $0x74] ss:$8 sps:$4 sm:$0xff]   ;;  %v3485_v45 = vld [vmem:[%s5390_s2 + $0x28] sm:$0xff]   ;;  %v3484_v46 = vld [vmem:[%s5388_s0 + $0x70] ss:$8 sps:$4 sm:$0xff]   ;;  %v5407_v48 = vmov 3  }
  0x31   :  { %1028 = vperm.xlu0 %3397, %v3622_v5   ;;  %3291 = vmatprep.subr.bf16.mxu1 %v3485_v45  ;;  %v3486_v49 = vld [vmem:[%s5390_s2 + $0x20] sm:$0xff]   ;;  %v3487_v50 = vld [vmem:[%s5390_s2 + $0x18] sm:$0xff]   ;;  %v3488_v51 = vld [vmem:[%s5390_s2 + $0x10] sm:$0xff]   ;;  %v5401_v10 = vmov 4   ;;  %v5399_v26 = vmov 8   ;;  %vm460_vm3 = vcmask 785408  }
  0x32   :  { %3292 = vmatpush3.bf16.msra.mxu1 %v3485_v45  ;;  %v3489_v52 = vld [vmem:[%s5390_s2 + $0x8] sm:$0xff]   ;;  %v3490_v53 = vld [vmem:[%s5390_s2] sm:$0xff]   ;;  %s3556_s19 = smov 32   ;;  %s3557_s20 = smov 64  }
  0x33   :  { %1040 = vperm.xlu1 %3396, %v3688_v19   ;;  %3293 = vmatprep.subr.bf16.mxu1 %v3486_v49 }
  0x35   :  { %1036 = vperm.xlu0 %3397, %v3631_v7  }
  0x36   :  { %264 = vmatmul.mubr.bf16.gmra.mxu0 %v3469_v32  ;;  %3294 = vmatpush3.bf16.msra.mxu1 %v3486_v49  ;;  %v3974_v32 = vld [vmem:[%s5393_s5] sm:$0xff] }
  0x37   :  { %1048 = vperm.xlu1 %3396, %v3702_v22   ;;  %3134 = vmatprep.mubr.msk.bf16.mxu0 %vm190_vm0, %v3470_v33 }
  0x38   :  { %3295 = vmatprep.subr.bf16.mxu1 %v3487_v50 }
  0x39   :  { %1044 = vperm.xlu0 %3397, %v3649_v11  }
  0x3a   :  { %3296 = vmatpush3.bf16.msra.mxu1 %v3487_v50 }
  0x3b   :  { %1056 = vperm.xlu1 %3396, %v3712_v24   ;;  %3297 = vmatprep.subr.bf16.mxu1 %v3488_v51 }
  0x3d   :  { %1052 = vperm.xlu0 %3397, %v3665_v14  }
  0x3e   :  { %272 = vmatmul.mubr.bf16.gmra.mxu0 %v3472_v34  ;;  %3298 = vmatpush3.bf16.msra.mxu1 %v3488_v51 }
  0x3f   :  { %1064 = vperm.xlu1 %3396, %v3725_v27   ;;  %3135 = vmatprep.mubr.msk.bf16.mxu0 %vm190_vm0, %v3473_v35 }
  0x40   :  { %3299 = vmatprep.subr.bf16.mxu1 %v3489_v52 }
  0x41   :  { %1060 = vperm.xlu0 %3397, %v3680_v17  }
  0x42   :  { %3300 = vmatpush3.bf16.msra.mxu1 %v3489_v52 }
  0x43   :  { %1072 = vperm.xlu1 %3396, %v3732_v29   ;;  %3301 = vmatprep.subr.bf16.mxu1 %v3490_v53 }
  0x45   :  { %1068 = vperm.xlu0 %3397, %v3694_v20  }
  0x46   :  { %280 = vmatmul.mubr.bf16.gmra.mxu0 %v3475_v36  ;;  %3302 = vmatpush3.bf16.msra.mxu1 %v3490_v53 }
  0x47   :  { %3136 = vmatprep.mubr.msk.bf16.mxu0 %vm190_vm0, %v3476_v37  ;;  %3399 = vset.pattern.permute.xlu1 %v5405_v38 }
  0x48   :  { %1663 = vperm.xlu1 %3399, %v3613_v3  }
  0x49   :  { %3398 = vset.pattern.permute.xlu0 %v5409_v39 }
  0x4a   :  { %1189 = vperm.xlu0 %3398, %v3639_v9  }
  0x4c   :  { %1667 = vperm.xlu1 %3399, %v3658_v13  }
  0x4e   :  { %288 = vmatmul.mubr.bf16.gmra.mxu0 %v3478_v40  ;;  %1201 = vperm.xlu0 %3398, %v3658_v13  }
  0x4f   :  { %3137 = vmatprep.mubr.msk.bf16.mxu0 %vm190_vm0, %v3479_v41 }
  0x50   :  { %3400 = vset.pattern.permute.xlu1 %v5406_v42 }
  0x51   :  { %1843 = vperm.xlu1 %3400, %v3658_v13  }
  0x52   :  { %1205 = vperm.xlu0 %3398, %v3622_v5  }
  0x55   :  { %3401 = vset.pattern.permute.xlu1 %v5409_v39 }
  0x56   :  { %296 = vmatmul.mubr.bf16.gmra.mxu0 %v3481_v43  ;;  %1197 = vperm.xlu1 %3401, %v3613_v3  }
  0x57   :  { %3138 = vmatprep.mubr.msk.bf16.mxu0 %vm190_vm0, %v3482_v44  ;;  %1233 = vperm.xlu0 %3398, %v3712_v24  }
  0x5a   :  { %3402 = vset.pattern.permute.xlu1 %v5403_v47 }
  0x5b   :  { %2015 = vperm.xlu1 %3402, %v3613_v3   ;;  %1237 = vperm.xlu0 %3398, %v3680_v17  }
  0x5e   :  { %304 = vmatmul.mubr.bf16.gmra.mxu0 %v3484_v46 }
  0x5f   :  { %2019 = vperm.xlu1 %3402, %v3658_v13   ;;  %3430 = vset.pattern.permute.xlu0 %v5405_v38 }
  0x60   :  { %1675 = vperm.xlu0 %3430, %v3673_v16  }
  0x63   :  { %3403 = vset.pattern.permute.xlu1 %v5407_v48 }
  0x64   :  { %1378 = vperm.xlu1 %3403, %v3658_v13   ;;  %1679 = vperm.xlu0 %3430, %v3631_v7  }
  0x68   :  { %3404 = vset.pattern.permute.xlu1 %v5405_v38  ;;  %1659 = vperm.xlu0 %3430, %v3604_v0  }
  0x69   :  { %1671 = vperm.xlu1 %3404, %v3622_v5  }
  0x6c   :  { %1687 = vperm.xlu0 %3430, %v3649_v11  }
  0x6d   :  { %3405 = vset.pattern.permute.xlu1 %v5406_v42 }
  0x6e   :  { %1847 = vperm.xlu1 %3405, %v3622_v5  }
  0x70   :  { %1707 = vperm.xlu0 %3430, %v3725_v27  }
  0x72   :  { %1851 = vperm.xlu1 %3405, %v3673_v16  }
  0x74   :  { %1711 = vperm.xlu0 %3430, %v3694_v20  }
  0x76   :  { %3406 = vset.pattern.permute.xlu1 %v5409_v39 }
  0x77   :  { %1209 = vperm.xlu1 %3406, %v3673_v16  }
  0x78   :  { %3434 = vset.pattern.permute.xlu0 %v5406_v42 }
  0x79   :  { %1839 = vperm.xlu0 %3434, %v3613_v3  }
  0x7b   :  { %3407 = vset.pattern.permute.xlu1 %v5403_v47 }
  0x7c   :  { %2023 = vperm.xlu1 %3407, %v3622_v5  }
  0x7d   :  { %v3850_v54 = vpop.permute.xlu1 %890  ;;  %1859 = vperm.xlu0 %3434, %v3688_v19  }
  0x7e   :  { %5415 = vst [vmem:[#allocation7_spill] sm:$0xff] %v3850_v54 }
  0x80   :  { %3408 = vset.pattern.permute.xlu1 %v5407_v48  ;;  %v3947_v15 = vpop.permute.xlu0 %885 }
  0x81   :  { %v3854_v55 = vpop.permute.xlu1 %895  ;;  %1382 = vperm.xlu1 %3408, %v3622_v5   ;;  %1831 = vperm.xlu0 %3434, %v3639_v9   ;;  %5428 = vst [vmem:[#allocation20_spill] sm:$0xff] %v3947_v15 }
  0x84   :  { %v3954_v21 = vpop.permute.xlu0 %900 }
  0x85   :  { %v3858_v56 = vpop.permute.xlu1 %905  ;;  %1386 = vperm.xlu1 %3408, %v3673_v16   ;;  %1867 = vperm.xlu0 %3434, %v3702_v22  }
  0x88   :  { %v3968_v31 = vpop.permute.xlu0 %910 }
  0x89   :  { %v3862_v57 = vpop.permute.xlu1 %915  ;;  %3409 = vset.pattern.permute.xlu1 %v5405_v38  ;;  %1871 = vperm.xlu0 %3434, %v3665_v14  }
  0x8a   :  { %1683 = vperm.xlu1 %3409, %v3688_v19  }
  0x8c   :  { %v3993_v36 = vpop.permute.xlu0 %920 }
  0x8d   :  { %v3867_v58 = vpop.permute.xlu1 %925  ;;  %1891 = vperm.xlu0 %3434, %v3732_v29  }
  0x8e   :  { %1655 = vperm.xlu1 %3409, %v3639_v9  }
  0x90   :  { %v4008_v50 = vpop.permute.xlu0 %930 }
  0x91   :  { %v3871_v59 = vpop.permute.xlu1 %935  ;;  %3437 = vset.pattern.permute.xlu0 %v5403_v47  ;;  %5433 = vst [vmem:[#allocation25_spill] sm:$0xff] %v4008_v50 }
  0x92   :  { %5416 = vst [vmem:[#allocation8_spill] sm:$0xff] %v3871_v59  ;;  %3410 = vset.pattern.permute.xlu1 %v5406_v42  ;;  %2027 = vperm.xlu0 %3437, %v3673_v16  }
  0x93   :  { %1855 = vperm.xlu1 %3410, %v3631_v7  }
  0x95   :  { %v3877_v60 = vpop.permute.xlu1 %945 }
  0x96   :  { %5417 = vst [vmem:[#allocation9_spill] sm:$0xff] %v3877_v60  ;;  %2031 = vperm.xlu0 %3437, %v3631_v7  }
  0x97   :  { %3411 = vset.pattern.permute.xlu1 %v5409_v39 }
  0x98   :  { %1213 = vperm.xlu1 %3411, %v3631_v7  }
  0x99   :  { %v3882_v61 = vpop.permute.xlu1 %955 }
  0x9a   :  { %5418 = vst [vmem:[#allocation10_spill] sm:$0xff] %v3882_v61  ;;  %2011 = vperm.xlu0 %3437, %v3604_v0  }
  0x9c   :  { %1217 = vperm.xlu1 %3411, %v3688_v19  }
  0x9e   :  { %v3886_v62 = vpop.permute.xlu1 %1012  ;;  %2039 = vperm.xlu0 %3437, %v3649_v11  }
  0x9f   :  { %5419 = vst [vmem:[#allocation11_spill] sm:$0xff] %v3886_v62  ;;  %v5441_v62 = vmov 7  }
  0xa0   :  { %3412 = vset.pattern.permute.xlu1 %v5406_v42 }
  0xa1   :  { %1835 = vperm.xlu1 %3412, %v3604_v0  }
  0xa2   :  { %v3891_v63 = vpop.permute.xlu1 %1020  ;;  %2059 = vperm.xlu0 %3437, %v3725_v27  }
  0xa5   :  { %3413 = vset.pattern.permute.xlu1 %v5403_v47 }
  0xa6   :  { %v3895_v1 = vpop.permute.xlu1 %1024  ;;  %2035 = vperm.xlu1 %3413, %v3688_v19   ;;  %2063 = vperm.xlu0 %3437, %v3694_v20  }
  0xaa   :  { %v3899_v2 = vpop.permute.xlu1 %1032  ;;  %3414 = vset.pattern.permute.xlu1 %v5409_v39  ;;  %3439 = vset.pattern.permute.xlu0 %v5407_v48 }
  0xab   :  { %5420 = vst [vmem:[#allocation12_spill] sm:$0xff] %v3899_v2  ;;  %1193 = vperm.xlu1 %3414, %v3604_v0   ;;  %1374 = vperm.xlu0 %3439, %v3613_v3  }
  0xae   :  { %v3905_v4 = vpop.permute.xlu1 %1040 }
  0xaf   :  { %5421 = vst [vmem:[#allocation13_spill] sm:$0xff] %v3905_v4  ;;  %3415 = vset.pattern.permute.xlu1 %v5407_v48  ;;  %1390 = vperm.xlu0 %3439, %v3631_v7  }
  0xb0   :  { %1394 = vperm.xlu1 %3415, %v3688_v19  }
  0xb2   :  { %v3910_v6 = vpop.permute.xlu1 %1048 }
  0xb3   :  { %5422 = vst [vmem:[#allocation14_spill] sm:$0xff] %v3910_v6  ;;  %1402 = vperm.xlu0 %3439, %v3702_v22  }
  0xb4   :  { %3416 = vset.pattern.permute.xlu1 %v5403_v47 }
  0xb5   :  { %2007 = vperm.xlu1 %3416, %v3639_v9  }
  0xb6   :  { %v3915_v8 = vpop.permute.xlu1 %1056 }
  0xb7   :  { %5423 = vst [vmem:[#allocation15_spill] sm:$0xff] %v3915_v8  ;;  %1406 = vperm.xlu0 %3439, %v3665_v14  }
  0xb9   :  { %3417 = vset.pattern.permute.xlu1 %v5407_v48 }
  0xba   :  { %v3919_v3 = vpop.permute.xlu1 %1064  ;;  %1366 = vperm.xlu1 %3417, %v3639_v9  }
  0xbb   :  { %5424 = vst [vmem:[#allocation16_spill] sm:$0xff] %v3919_v3  ;;  %1426 = vperm.xlu0 %3439, %v3732_v29  }
  0xbe   :  { %1370 = vperm.xlu1 %3417, %v3604_v0   ;;  %v3924_v7 = vpop.permute.xlu1 %1072 }
  0xbf   :  { %5425 = vst [vmem:[#allocation17_spill] sm:$0xff] %v3924_v7  ;;  %3443 = vset.pattern.permute.xlu0 %v5401_v10 }
  0xc0   :  { %1559 = vperm.xlu0 %3443, %v3622_v5  }
  0xc2   :  { %3418 = vset.pattern.permute.xlu1 %v5405_v38 }
  0xc3   :  { %1691 = vperm.xlu1 %3418, %v3702_v22   ;;  %v3930_v12 = vpop.permute.xlu1 %1663 }
  0xc4   :  { %1571 = vperm.xlu0 %3443, %v3688_v19   ;;  %v312_v19 = vlaneseq }
  0xc6   :  { %v3958_v23 = vshrl.u32 %v312_v19, 7 }
  0xc7   :  { %3419 = vset.pattern.permute.xlu1 %v5406_v42  ;;  %v3935_v9 = vpop.permute.xlu1 %1667 }
  0xc8   :  { %1863 = vperm.xlu1 %3419, %v3649_v11   ;;  %5426 = vst [vmem:[#allocation18_spill] sm:$0xff] %v3935_v9  ;;  %1547 = vperm.xlu0 %3443, %v3604_v0   ;;  %5429 = vst [vmem:[#allocation21_spill] sm:$0xff] %v3958_v23  ;;  %v5398_v28 = vsub.s32 0, %v3958_v23  ;;  %v5396_v35 = vsub.s32 2, %v3958_v23 }
  0xca   :  { %v3981_v33 = vrot.slane %v3974_v32, %v5398_v28  ;;  %v4002_v44 = vrot.slane %v3974_v32, %v5396_v35 }
  0xcc   :  { %3420 = vset.pattern.permute.xlu1 %v5409_v39  ;;  %v3939_v13 = vpop.permute.xlu1 %1843  ;;  %1579 = vperm.xlu0 %3443, %v3702_v22  }
  0xcd   :  { %5427 = vst [vmem:[#allocation19_spill] sm:$0xff] %v3939_v13  ;;  %1221 = vperm.xlu1 %3420, %v3649_v11  }
  0xd0   :  { %1583 = vperm.xlu0 %3443, %v3665_v14  }
  0xd1   :  { %1225 = vperm.xlu1 %3420, %v3702_v22   ;;  %v3944_v5 = vpop.permute.xlu1 %1197 }
  0xd4   :  { %1591 = vperm.xlu0 %3443, %v3680_v17  }
  0xd5   :  { %3421 = vset.pattern.permute.xlu1 %v5403_v47 }
  0xd6   :  { %2043 = vperm.xlu1 %3421, %v3702_v22   ;;  %v3951_v18 = vpop.permute.xlu1 %2015 }
  0xd8   :  { %1599 = vperm.xlu0 %3443, %v3694_v20  }
  0xda   :  { %3422 = vset.pattern.permute.xlu1 %v5407_v48  ;;  %v3961_v25 = vpop.permute.xlu1 %2019 }
  0xdb   :  { %1398 = vperm.xlu1 %3422, %v3649_v11   ;;  %5430 = vst [vmem:[#allocation22_spill] sm:$0xff] %v3961_v25  ;;  %v5397_v11 = vsub.s32 1, %v3958_v23 }
  0xdc   :  { %3449 = vset.pattern.permute.xlu0 %v5399_v26 }
  0xdd   :  { %2187 = vperm.xlu0 %3449, %v3604_v0   ;;  %v3990_v0 = vrot.slane %v3974_v32, %v5397_v11 }
  0xdf   :  { %3423 = vset.pattern.permute.xlu1 %v5405_v38  ;;  %v3966_v30 = vpop.permute.xlu1 %1378 }
  0xe0   :  { %1695 = vperm.xlu1 %3423, %v3665_v14  }
  0xe1   :  { %2203 = vperm.xlu0 %3449, %v3673_v16  }
  0xe4   :  { %1699 = vperm.xlu1 %3423, %v3712_v24   ;;  %v3985_v34 = vpop.permute.xlu1 %1671 }
  0xe5   :  { %5431 = vst [vmem:[#allocation23_spill] sm:$0xff] %v3985_v34  ;;  %2219 = vperm.xlu0 %3449, %v3702_v22  }
  0xe6   :  { %v249_v37 = vpop.f32.mrf.mxu0 }
  0xe7   :  { %v316_v40 = vmul.f32 %v3981_v33, %v249_v37 }
  0xe8   :  { %v251_v41 = vpop.f32.mrf.mxu0  ;;  %3424 = vset.pattern.permute.xlu1 %v5406_v42 }
  0xe9   :  { %v336_v43 = vadd.f32 %v3990_v0, %v316_v40  ;;  %1875 = vperm.xlu1 %3424, %v3712_v24   ;;  %v4005_v45 = vpop.permute.xlu1 %1847  ;;  %2235 = vperm.xlu0 %3449, %v3725_v27  }
  0xea   :  { %5432 = vst [vmem:[#allocation24_spill] sm:$0xff] %v4005_v45  ;;  %v252_v46 = vpop.f32.mrf.mxu0 }
  0xeb   :  { %v317_v49 = vmul.f32 %v3981_v33, %v252_v46  ;;  %v372_v52 = vmul.f32 %v4002_v44, %v336_v43  ;;  %vm352_vm1 = vcmp.ge.f32.partialorder %v336_v43, 0.0 }
  0xec   :  { %v254_v22 = vpop.f32.mrf.mxu0 }
  0xed   :  { %v337_v51 = vadd.f32 %v3990_v0, %v317_v49  ;;  %3425 = vset.pattern.permute.xlu1 %v5409_v39  ;;  %v4015_v19 = vpop.permute.xlu1 %1851  ;;  %v388_v22 = vsel %vm352_vm1, %v336_v43, %v372_v52 }
  0xee   :  { %v257_v53 = vpop.f32.mrf.mxu0  ;;  %1229 = vperm.xlu1 %3425, %v3665_v14   ;;  %5434 = vst [vmem:[#allocation26_spill] sm:$0xff] %v4015_v19 }
  0xef   :  { %v318_v37 = vmul.f32 %v3981_v33, %v257_v53  ;;  %vm353_vm2 = vcmp.ge.f32.partialorder %v337_v51, 0.0  ;;  %v373_v40 = vmul.f32 %v4002_v44, %v337_v51 }
  0xf0   :  { %v259_v41 = vpop.f32.mrf.mxu0 }
  0xf1   :  { %v338_v46 = vadd.f32 %v3990_v0, %v318_v37  ;;  %v389_v49 = vsel %vm353_vm2, %v337_v51, %v373_v40 }
  0xf2   :  { %v260_v35 = vpop.f32.mrf.mxu0  ;;  %v404_v11 = vpack.c.bf16 %v389_v49, %v388_v22  ;;  %3426 = vset.pattern.permute.xlu1 %v5403_v47  ;;  %v4021_v28 = vpop.permute.xlu1 %1209 }
  0xf3   :  { %5435 = vst [vmem:[#allocation27_spill] sm:$0xff] %v4021_v28  ;;  %v319_v26 = vmul.f32 %v3981_v33, %v260_v35  ;;  %2047 = vperm.xlu1 %3426, %v3665_v14   ;;  %v374_v41 = vmul.f32 %v4002_v44, %v338_v46  ;;  %vm354_vm4 = vcmp.ge.f32.partialorder %v338_v46, 0.0 }
  0xf4   :  { %v262_v53 = vpop.f32.mrf.mxu0  ;;  %3303 = vmatprep.mubr.msk.bf16.mxu1 %vm460_vm3, %v404_v11 }
  0xf5   :  { %v339_v37 = vadd.f32 %v3990_v0, %v319_v26  ;;  %v390_v14 = vsel %vm354_vm4, %v338_v46, %v374_v41 }
  0xf6   :  { %v265_v43 = vpop.f32.mrf.mxu0 }
  0xf7   :  { %vm355_vm5 = vcmp.ge.f32.partialorder %v339_v37, 0.0  ;;  %v375_v51 = vmul.f32 %v4002_v44, %v339_v37  ;;  %v320_v52 = vmul.f32 %v3981_v33, %v265_v43  ;;  %2051 = vperm.xlu1 %3426, %v3712_v24   ;;  %v4031_v40 = vpop.permute.xlu1 %2023 }
  0xf8   :  { %5436 = vst [vmem:[#allocation28_spill] sm:$0xff] %v4031_v40  ;;  %v267_v35 = vpop.f32.mrf.mxu0 }
  0xf9   :  { %v391_v22 = vsel %vm355_vm5, %v339_v37, %v375_v51  ;;  %v340_v11 = vadd.f32 %v3990_v0, %v320_v52 }
  0xfa   :  { %v268_v49 = vpop.f32.mrf.mxu0  ;;  %v405_v53 = vpack.c.bf16 %v391_v22, %v390_v14 }
  0xfb   :  { %v376_v26 = vmul.f32 %v4002_v44, %v340_v11  ;;  %v321_v10 = vmul.f32 %v3981_v33, %v268_v49  ;;  %3427 = vset.pattern.permute.xlu1 %v5407_v48  ;;  %vm356_vm6 = vcmp.ge.f32.partialorder %v340_v11, 0.0 }
  0xfc   :  { %v270_v47 = vpop.f32.mrf.mxu0  ;;  %3304 = vmatmul.mubr.msk.bf16.vlgmr.msra.gmra.mxu1 %vm460_vm3, %v405_v53  ;;  %1410 = vperm.xlu1 %3427, %v3712_v24   ;;  %v4039_v43 = vpop.permute.xlu1 %1382 }
  0xfd   :  { %5437 = vst [vmem:[#allocation29_spill] sm:$0xff] %v4039_v43  ;;  %v341_v46 = vadd.f32 %v3990_v0, %v321_v10  ;;  %v392_v37 = vsel %vm356_vm6, %v340_v11, %v376_v26 }
  0xfe   :  { %v273_v41 = vpop.f32.mrf.mxu0 }
  0xff   :  { %vm357_vm7 = vcmp.ge.f32.partialorder %v341_v46, 0.0  ;;  %v377_v51 = vmul.f32 %v4002_v44, %v341_v46  ;;  %v322_v52 = vmul.f32 %v3981_v33, %v273_v41 }
 0x100   :  { %v275_v35 = vpop.f32.mrf.mxu0  ;;  %3428 = vset.pattern.permute.xlu1 %v5405_v38  ;;  %v4045_v14 = vpop.permute.xlu1 %1386 }
 0x101   :  { %5438 = vst [vmem:[#allocation30_spill] sm:$0xff] %v4045_v14  ;;  %v393_v47 = vsel %vm357_vm7, %v341_v46, %v377_v51  ;;  %v342_v22 = vadd.f32 %v3990_v0, %v322_v52  ;;  %1703 = vperm.xlu1 %3428, %v3680_v17  }
 0x102   :  { %v276_v49 = vpop.f32.mrf.mxu0  ;;  %v406_v53 = vpack.c.bf16 %v393_v47, %v392_v37 }
 0x103   :  { %v378_v10 = vmul.f32 %v4002_v44, %v342_v22  ;;  %v323_v11 = vmul.f32 %v3981_v33, %v276_v49  ;;  %vm358_vm8 = vcmp.ge.f32.partialorder %v342_v22, 0.0 }
 0x104   :  { %v278_v26 = vpop.f32.mrf.mxu0  ;;  %3307 = vmatprep.mubr.msk.bf16.mxu1 %vm460_vm3, %v406_v53 }
 0x105   :  { %v343_v41 = vadd.f32 %v3990_v0, %v323_v11  ;;  %3429 = vset.pattern.permute.xlu1 %v5406_v42  ;;  %v4054_v35 = vpop.permute.xlu1 %1683  ;;  %v394_v51 = vsel %vm358_vm8, %v342_v22, %v378_v10 }
 0x106   :  { %5439 = vst [vmem:[#allocation31_spill] sm:$0xff] %v4054_v35  ;;  %v281_v46 = vpop.f32.mrf.mxu0  ;;  %1879 = vperm.xlu1 %3429, %v3680_v17  }
 0x107   :  { %vm359_vm9 = vcmp.ge.f32.partialorder %v343_v41, 0.0  ;;  %v379_v37 = vmul.f32 %v4002_v44, %v343_v41  ;;  %v324_v52 = vmul.f32 %v3981_v33, %v281_v46 }
 0x108   :  { %v283_v47 = vpop.f32.mrf.mxu0 }
 0x109   :  { %v395_v49 = vsel %vm359_vm9, %v343_v41, %v379_v37  ;;  %v344_v26 = vadd.f32 %v3990_v0, %v324_v52  ;;  %v4061_v11 = vpop.permute.xlu1 %1655 }
 0x10a   :  { %v284_v53 = vpop.f32.mrf.mxu0  ;;  %v407_v38 = vpack.c.bf16 %v395_v49, %v394_v51  ;;  %1883 = vperm.xlu1 %3429, %v3725_v27  }
 0x10b   :  { %v380_v42 = vmul.f32 %v4002_v44, %v344_v26  ;;  %v325_v48 = vmul.f32 %v3981_v33, %v284_v53  ;;  %vm360_vm10 = vcmp.ge.f32.partialorder %v344_v26, 0.0 }
 0x10c   :  { %v286_v22 = vpop.f32.mrf.mxu0  ;;  %3308 = vmatmul.mubr.msk.bf16.gmra.mxu1 %vm460_vm3, %v407_v38 }
 0x10d   :  { %v345_v10 = vadd.f32 %v3990_v0, %v325_v48  ;;  %v396_v51 = vsel %vm360_vm10, %v344_v26, %v380_v42 }
 0x10e   :  { %v289_v46 = vpop.f32.mrf.mxu0  ;;  %3431 = vset.pattern.permute.xlu1 %v5409_v39  ;;  %v4068_v41 = vpop.permute.xlu1 %1855 }
 0x10f   :  { %5440 = vst [vmem:[#allocation32_spill] sm:$0xff] %v4068_v41  ;;  %vm361_vm11 = vcmp.ge.f32.partialorder %v345_v10, 0.0  ;;  %v381_v37 = vmul.f32 %v4002_v44, %v345_v10  ;;  %v326_v52 = vmul.f32 %v3981_v33, %v289_v46  ;;  %1241 = vperm.xlu1 %3431, %v3725_v27  }
 0x110   :  { %v291_v47 = vpop.f32.mrf.mxu0 }
 0x111   :  { %v397_v49 = vsel %vm361_vm11, %v345_v10, %v381_v37  ;;  %v346_v53 = vadd.f32 %v3990_v0, %v326_v52 }
 0x112   :  { %v292_v38 = vpop.f32.mrf.mxu0  ;;  %v408_v22 = vpack.c.bf16 %v397_v49, %v396_v51  ;;  %v5443_v49 = vmov 3  }
 0x113   :  { %v382_v48 = vmul.f32 %v4002_v44, %v346_v53  ;;  %v327_v39 = vmul.f32 %v3981_v33, %v292_v38  ;;  %3432 = vset.pattern.permute.xlu1 %v5441_v62  ;;  %v4077_v42 = vpop.permute.xlu1 %1213  ;;  %vm362_vm12 = vcmp.ge.f32.partialorder %v346_v53, 0.0 }
 0x114   :  { %5442 = vst [vmem:[#allocation33_spill] sm:$0xff] %v4077_v42  ;;  %v294_v26 = vpop.f32.mrf.mxu0  ;;  %3311 = vmatprep.mubr.msk.bf16.mxu1 %vm460_vm3, %v408_v22  ;;  %2055 = vperm.xlu1 %3432, %v3680_v17  }
 0x115   :  { %v347_v10 = vadd.f32 %v3990_v0, %v327_v39  ;;  %v398_v37 = vsel %vm362_vm12, %v346_v53, %v382_v48  ;;  %v4089_v39 = vpop.permute.xlu0 %940 }
 0x116   :  { %v297_v46 = vpop.f32.mrf.mxu0  ;;  %5445 = vst [vmem:[#allocation35_spill] sm:$0xff] %v4089_v39 }
 0x117   :  { %vm363_vm13 = vcmp.ge.f32.partialorder %v347_v10, 0.0  ;;  %v383_v51 = vmul.f32 %v4002_v44, %v347_v10  ;;  %v328_v52 = vmul.f32 %v3981_v33, %v297_v46  ;;  %v4085_v38 = vpop.permute.xlu1 %1217 }
 0x118   :  { %v299_v47 = vpop.f32.mrf.mxu0  ;;  %3433 = vset.pattern.permute.xlu1 %v5443_v49  ;;  %5444 = vst [vmem:[#allocation34_spill] sm:$0xff] %v4085_v38 }
 0x119   :  { %v399_v3 = vsel %vm363_vm13, %v347_v10, %v383_v51  ;;  %v348_v26 = vadd.f32 %v3990_v0, %v328_v52  ;;  %1414 = vperm.xlu1 %3433, %v3680_v17   ;;  %v4100_v6 = vpop.permute.xlu0 %950 }
 0x11a   :  { %v300_v22 = vpop.f32.mrf.mxu0  ;;  %v409_v7 = vpack.c.bf16 %v399_v3, %v398_v37  ;;  %5446 = vst [vmem:[#allocation36_spill] sm:$0xff] %v4100_v6 }
 0x11b   :  { %v384_v53 = vmul.f32 %v4002_v44, %v348_v26  ;;  %v329_v48 = vmul.f32 %v3981_v33, %v300_v22  ;;  %vm364_vm14 = vcmp.ge.f32.partialorder %v348_v26, 0.0 }
 0x11c   :  { %v302_v46 = vpop.f32.mrf.mxu0  ;;  %3312 = vmatmul.mubr.msk.bf16.gmra.mxu1 %vm460_vm3, %v409_v7  ;;  %v4094_v47 = vpop.permute.xlu1 %1835  ;;  %v5447_v7 = vmov 5  }
 0x11d   :  { %v349_v10 = vadd.f32 %v3990_v0, %v329_v48  ;;  %1418 = vperm.xlu1 %3433, %v3725_v27   ;;  %v400_v17 = vsel %vm364_vm14, %v348_v26, %v384_v53 }
 0x11e   :  { %v305_v51 = vpop.f32.mrf.mxu0 }
 0x11f   :  { %vm365_vm15 = vcmp.ge.f32.partialorder %v349_v10, 0.0  ;;  %v385_v3 = vmul.f32 %v4002_v44, %v349_v10  ;;  %v330_v37 = vmul.f32 %v3981_v33, %v305_v51 }
 0x120   :  { %v307_v52 = vpop.f32.mrf.mxu0 }
 0x121   :  { %v401_v22 = vsel %vm365_vm15, %v349_v10, %v385_v3  ;;  %v350_v46 = vadd.f32 %v3990_v0, %v330_v37  ;;  %3435 = vset.pattern.permute.xlu1 %v5447_v7  ;;  %v4104_v8 = vpop.permute.xlu1 %2035  ;;  %v5449_v3 = vmov 6   ;;  %v4114_v52 = vpop.permute.xlu0 %960 }
 0x122   :  { %5448 = vst [vmem:[#allocation37_spill] sm:$0xff] %v4104_v8  ;;  %v308_v48 = vpop.f32.mrf.mxu0  ;;  %v410_v35 = vpack.c.bf16 %v401_v22, %v400_v17  ;;  %1715 = vperm.xlu1 %3435, %v3732_v29   ;;  %5450 = vst [vmem:[#allocation38_spill] sm:$0xff] %v4114_v52  ;;  %v5469_v8 = vmov 8  }
 0x123   :  { %v386_v26 = vmul.f32 %v4002_v44, %v350_v46  ;;  %v331_v53 = vmul.f32 %v3981_v33, %v308_v48  ;;  %vm366_vm0 = vcmp.ge.f32.partialorder %v350_v46, 0.0 }
 0x124   :  { %3315 = vmatprep.mubr.msk.bf16.mxu1 %vm460_vm3, %v410_v35  ;;  %v310_v51 = vpop.f32.mrf.mxu0  ;;  %v5451_v35 = vmov 2  }
 0x125   :  { %v351_v10 = vadd.f32 %v3990_v0, %v331_v53  ;;  %v402_v7 = vsel %vm366_vm0, %v350_v46, %v386_v26  ;;  %v4118_v48 = vpop.permute.xlu0 %1016 }
 0x126   :  { %3436 = vset.pattern.permute.xlu1 %v5449_v3  ;;  %v4112_v37 = vpop.permute.xlu1 %1193  ;;  %v5458_v3 = vmov 4  }
 0x127   :  { %vm367_vm1 = vcmp.ge.f32.partialorder %v351_v10, 0.0  ;;  %v387_v17 = vmul.f32 %v4002_v44, %v351_v10  ;;  %1887 = vperm.xlu1 %3436, %v3694_v20  }
 0x129   :  { %v403_v22 = vsel %vm367_vm1, %v351_v10, %v387_v17  ;;  %v4128_v46 = vpop.permute.xlu0 %1028 }
 0x12a   :  { %v411_v33 = vpack.c.bf16 %v403_v22, %v402_v7 }
 0x12b   :  { %3438 = vset.pattern.permute.xlu1 %v5451_v35  ;;  %v4121_v51 = vpop.permute.xlu1 %1394  ;;  %v3515_v35 = vld [vmem:[%s5394_s6 + $0x30] sm:$0xff] }
 0x12c   :  { %5452 = vst [vmem:[#allocation39_spill] sm:$0xff] %v4121_v51  ;;  %3316 = vmatmul.mubr.msk.bf16.gmra.mxu1 %vm460_vm3, %v411_v33  ;;  %1245 = vperm.xlu1 %3438, %v3694_v20  }
 0x12d   :  { %v4134_v26 = vpop.permute.xlu0 %1036 }
 0x12e   :  { %5455 = vst [vmem:[#allocation42_spill] sm:$0xff] %v4134_v26 }
 0x130   :  { %1249 = vperm.xlu1 %3438, %v3732_v29   ;;  %v4126_v0 = vpop.permute.xlu1 %2007 }
 0x131   :  { %5453 = vst [vmem:[#allocation40_spill] sm:$0xff] %v4126_v0  ;;  %v4140_v10 = vpop.permute.xlu0 %1044 }
 0x132   :  { %5457 = vst [vmem:[#allocation44_spill] sm:$0xff] %v4140_v10 }
 0x134   :  { %3440 = vset.pattern.permute.xlu1 %v5441_v62  ;;  %v3513_v62 = vld [vmem:[%s5394_s6 + $0x10] sm:$0xff] }
 0x135   :  { %2067 = vperm.xlu1 %3440, %v3732_v29   ;;  %v4132_v44 = vpop.permute.xlu1 %1366  ;;  %v4148_v17 = vpop.permute.xlu0 %1052 }
 0x136   :  { %5454 = vst [vmem:[#allocation41_spill] sm:$0xff] %v4132_v44  ;;  %5460 = vst [vmem:[#allocation46_spill] sm:$0xff] %v4148_v17  ;;  %v3516_v17 = vld [vmem:[%s5394_s6] sm:$0xff] }
 0x139   :  { %3441 = vset.pattern.permute.xlu1 %v5443_v49  ;;  %v4138_v53 = vpop.permute.xlu1 %1370  ;;  %v3514_v49 = vld [vmem:[%s5394_s6 + $0x18] sm:$0xff]  ;;  %v4158_v33 = vpop.permute.xlu0 %1060 }
 0x13a   :  { %1422 = vperm.xlu1 %3441, %v3694_v20   ;;  %5456 = vst [vmem:[#allocation43_spill] sm:$0xff] %v4138_v53  ;;  %5463 = vst [vmem:[#allocation49_spill] sm:$0xff] %v4158_v33  ;;  %v3517_v33 = vld [vmem:[%s5394_s6 + $0x40] sm:$0xff] }
 0x13e   :  { %3442 = vset.pattern.permute.xlu1 %v5458_v3  ;;  %v4143_v7 = vpop.permute.xlu1 %1691 }
 0x13f   :  { %5459 = vst [vmem:[#allocation45_spill] sm:$0xff] %v4143_v7  ;;  %1551 = vperm.xlu1 %3442, %v3513_v62   ;;  %v4165_v7 = vpop.permute.xlu0 %1068 }
 0x140   :  { %5465 = vst [vmem:[#allocation51_spill] sm:$0xff] %v4165_v7 }
 0x143   :  { %1555 = vperm.xlu1 %3442, %v3514_v49   ;;  %v4153_v20 = vpop.permute.xlu1 %1863 }
 0x144   :  { %5461 = vst [vmem:[#allocation47_spill] sm:$0xff] %v4153_v20 }
 0x147   :  { %1563 = vperm.xlu1 %3442, %v3673_v16   ;;  %v4172_v16 = vpop.permute.xlu0 %1189 }
 0x148   :  { %v4156_v22 = vpop.permute.xlu1 %1221  ;;  %5467 = vst [vmem:[#allocation53_spill] sm:$0xff] %v4172_v16 }
 0x149   :  { %5462 = vst [vmem:[#allocation48_spill] sm:$0xff] %v4156_v22 }
 0x14b   :  { %1567 = vperm.xlu1 %3442, %v3515_v35   ;;  %v4180_v7 = vpop.permute.xlu0 %1201 }
 0x14c   :  { %v4163_v44 = vpop.permute.xlu1 %1225 }
 0x14d   :  { %5464 = vst [vmem:[#allocation50_spill] sm:$0xff] %v4163_v44 }
 0x14f   :  { %1543 = vperm.xlu1 %3442, %v3516_v17   ;;  %v4184_v42 = vpop.permute.xlu0 %1205 }
 0x150   :  { %5471 = vst [vmem:[#allocation56_spill] sm:$0xff] %v4184_v42 }
 0x151   :  { %v4170_v20 = vpop.permute.xlu1 %2043 }
 0x152   :  { %5466 = vst [vmem:[#allocation52_spill] sm:$0xff] %v4170_v20 }
 0x153   :  { %1575 = vperm.xlu1 %3442, %v3517_v33   ;;  %v4191_v14 = vpop.permute.xlu0 %1233 }
 0x154   :  { %5474 = vst [vmem:[#allocation59_spill] sm:$0xff] %v4191_v14 }
 0x156   :  { %v4177_v22 = vpop.permute.xlu1 %1398 }
 0x157   :  { %5468 = vst [vmem:[#allocation54_spill] sm:$0xff] %v4177_v22  ;;  %3444 = vset.pattern.permute.xlu1 %v5469_v8 }
 0x158   :  { %2183 = vperm.xlu1 %3444, %v3516_v17  }
 0x15b   :  { %v4182_v44 = vpop.permute.xlu1 %1695 }
 0x15c   :  { %5470 = vst [vmem:[#allocation55_spill] sm:$0xff] %v4182_v44  ;;  %2191 = vperm.xlu1 %3444, %v3513_v62   ;;  %v3518_v62 = vld [vmem:[%s5394_s6 + $0x20] sm:$0xff]  ;;  %v4200_v44 = vpop.permute.xlu0 %1237 }
 0x15d   :  { %5476 = vst [vmem:[#allocation61_spill] sm:$0xff] %v4200_v44 }
 0x15f   :  { %v4186_v20 = vpop.permute.xlu1 %1699 }
 0x160   :  { %5472 = vst [vmem:[#allocation57_spill] sm:$0xff] %v4186_v20  ;;  %2195 = vperm.xlu1 %3444, %v3514_v49   ;;  %v4204_v20 = vpop.permute.xlu0 %1675 }
 0x161   :  { %5478 = vst [vmem:[#allocation63_spill] sm:$0xff] %v4204_v20 }
 0x164   :  { %3445 = vset.pattern.permute.xlu1 %v5458_v3  ;;  %v4189_v16 = vpop.permute.xlu1 %1875 }
 0x165   :  { %5473 = vst [vmem:[#allocation58_spill] sm:$0xff] %v4189_v16  ;;  %1587 = vperm.xlu1 %3445, %v3712_v24   ;;  %v3519_v16 = vld [vmem:[%s5394_s6 + $0x38] sm:$0xff] }
 0x169   :  { %3446 = vset.pattern.permute.xlu1 %v5469_v8  ;;  %v4195_v17 = vpop.permute.xlu1 %1229 }
 0x16a   :  { %5475 = vst [vmem:[#allocation60_spill] sm:$0xff] %v4195_v17  ;;  %2199 = vperm.xlu1 %3446, %v3518_v62   ;;  %v4212_v17 = vpop.permute.xlu0 %1679 }
 0x16b   :  { %5480 = vst [vmem:[#allocation65_spill] sm:$0xff] %v4212_v17 }
 0x16e   :  { %2207 = vperm.xlu1 %3446, %v3515_v35   ;;  %v4202_v49 = vpop.permute.xlu1 %2047  ;;  %v4220_v62 = vpop.permute.xlu0 %1659 }
 0x16f   :  { %5477 = vst [vmem:[#allocation62_spill] sm:$0xff] %v4202_v49 }
 0x172   :  { %2211 = vperm.xlu1 %3446, %v3519_v16   ;;  %v4209_v14 = vpop.permute.xlu1 %2051  ;;  %v3520_v16 = vld [vmem:[%s5394_s6 + $0x50] sm:$0xff] }
 0x173   :  { %5479 = vst [vmem:[#allocation64_spill] sm:$0xff] %v4209_v14  ;;  %v4227_v14 = vpop.permute.xlu0 %1687 }
 0x174   :  { %5484 = vst [vmem:[#allocation69_spill] sm:$0xff] %v4227_v14 }
 0x176   :  { %3447 = vset.pattern.permute.xlu1 %v5458_v3 }
 0x177   :  { %v4214_v22 = vpop.permute.xlu1 %1410  ;;  %1595 = vperm.xlu1 %3447, %v3725_v27   ;;  %v4233_v27 = vpop.permute.xlu0 %1707 }
 0x178   :  { %5481 = vst [vmem:[#allocation66_spill] sm:$0xff] %v4214_v22  ;;  %5486 = vst [vmem:[#allocation71_spill] sm:$0xff] %v4233_v27 }
 0x17b   :  { %3448 = vset.pattern.permute.xlu1 %v5469_v8 }
 0x17c   :  { %v4218_v35 = vpop.permute.xlu1 %1703  ;;  %2215 = vperm.xlu1 %3448, %v3517_v33  }
 0x17d   :  { %5482 = vst [vmem:[#allocation67_spill] sm:$0xff] %v4218_v35 }
 0x180   :  { %2223 = vperm.xlu1 %3448, %v3520_v16   ;;  %v3521_v16 = vld [vmem:[%s5394_s6 + $0x60] sm:$0xff] }
 0x181   :  { %v4225_v44 = vpop.permute.xlu1 %1879 }
 0x182   :  { %5483 = vst [vmem:[#allocation68_spill] sm:$0xff] %v4225_v44  ;;  %v4242_v44 = vpop.permute.xlu0 %1711 }
 0x183   :  { %5488 = vst [vmem:[#allocation73_spill] sm:$0xff] %v4242_v44 }
 0x184   :  { %2227 = vperm.xlu1 %3448, %v3712_v24  }
 0x185   :  { %v4230_v49 = vpop.permute.xlu1 %1883 }
 0x186   :  { %5485 = vst [vmem:[#allocation70_spill] sm:$0xff] %v4230_v49  ;;  %v4251_v49 = vpop.permute.xlu0 %1839 }
 0x188   :  { %3450 = vset.pattern.permute.xlu1 %v5458_v3  ;;  %v3522_v3 = vld [vmem:[%s5394_s6 + $0x70] sm:$0xff]  ;;  %s3555_s6 = smov 96  }
 0x189   :  { %1603 = vperm.xlu1 %3450, %v3732_v29  }
 0x18a   :  { %v4236_v33 = vpop.permute.xlu1 %1241 }
 0x18b   :  { %5487 = vst [vmem:[#allocation72_spill] sm:$0xff] %v4236_v33  ;;  %v4256_v33 = vpop.permute.xlu0 %1859 }
 0x18c   :  { %5492 = vst [vmem:[#allocation77_spill] sm:$0xff] %v4256_v33 }
 0x18d   :  { %3451 = vset.pattern.permute.xlu1 %v5469_v8 }
 0x18e   :  { %2231 = vperm.xlu1 %3451, %v3521_v16  }
 0x18f   :  { %v4244_v24 = vpop.permute.xlu1 %2055  ;;  %v4260_v27 = vpop.permute.xlu0 %1831 }
 0x190   :  { %5489 = vst [vmem:[#allocation74_spill] sm:$0xff] %v4244_v24  ;;  %5494 = vst [vmem:[#allocation79_spill] sm:$0xff] %v4260_v27 }
 0x192   :  { %2239 = vperm.xlu1 %3451, %v3522_v3  }
 0x193   :  { %v4264_v44 = vpop.permute.xlu0 %1867 }
 0x194   :  { %v4249_v35 = vpop.permute.xlu1 %1414  ;;  %5496 = vst [vmem:[#allocation81_spill] sm:$0xff] %v4264_v44 }
 0x195   :  { %5490 = vst [vmem:[#allocation75_spill] sm:$0xff] %v4249_v35 }
 0x196   :  { %2243 = vperm.xlu1 %3451, %v3732_v29   ;;  %v5410_v29 = vsub.s32 3, %v3958_v23 }
 0x197   :  { %v4268_v3 = vpop.permute.xlu0 %1871 }
 0x198   :  { %v4254_v8 = vpop.permute.xlu1 %1418  ;;  %5498 = vst [vmem:[#allocation83_spill] sm:$0xff] %v4268_v3 }
 0x199   :  { %5491 = vst [vmem:[#allocation76_spill] sm:$0xff] %v4254_v8 }
 0x19b   :  { %v4272_v22 = vpop.permute.xlu0 %1891 }
 0x19c   :  { %5500 = vst [vmem:[#allocation85_spill] sm:$0xff] %v4272_v22 }
 0x19d   :  { %v4258_v16 = vpop.permute.xlu1 %1715 }
 0x19e   :  { %5493 = vst [vmem:[#allocation78_spill] sm:$0xff] %v4258_v16  ;;  %v604_v16 = vsub.s32 4, %v3958_v23 }
 0x19f   :  { %v4278_v33 = vpop.permute.xlu0 %2027 }
 0x1a0   :  { %5502 = vst [vmem:[#allocation87_spill] sm:$0xff] %v4278_v33  ;;  %v4287_v44 = vrot.slane %v3974_v32, %v604_v16 }
 0x1a2   :  { %v4262_v24 = vpop.permute.xlu1 %1887 }
 0x1a3   :  { %5495 = vst [vmem:[#allocation80_spill] sm:$0xff] %v4262_v24  ;;  %v4283_v24 = vrot.slane %v3974_v32, %v5410_v29  ;;  %v4295_v28 = vpop.permute.xlu0 %2031 }
 0x1a4   :  { %5504 = vst [vmem:[#allocation89_spill] sm:$0xff] %v4295_v28 }
 0x1a7   :  { %v4266_v14 = vpop.permute.xlu1 %1245 }
 0x1a8   :  { %5497 = vst [vmem:[#allocation82_spill] sm:$0xff] %v4266_v14  ;;  %v640_v14 = vsub.s32 5, %v3958_v23 }
 0x1ab   :  { %v4270_v35 = vpop.permute.xlu1 %1249 }
 0x1ac   :  { %5499 = vst [vmem:[#allocation84_spill] sm:$0xff] %v4270_v35 }
 0x1b0   :  { %v4275_v8 = vpop.permute.xlu1 %2067 }
 0x1b1   :  { %5501 = vst [vmem:[#allocation86_spill] sm:$0xff] %v4275_v8  ;;  %v4293_v8 = vrot.slane %v3974_v32, %v640_v14 }
 0x1b5   :  { %v4289_v22 = vpop.permute.xlu1 %1422 }
 0x1b6   :  { %5503 = vst [vmem:[#allocation88_spill] sm:$0xff] %v4289_v22 }
 0x1bc   :  { %v3305_v35 = vpop.f32.mrf.mxu1 }
 0x1bd   :  { %v588_v3 = vmul.f32 %v3305_v35, %v4283_v24  ;;  %v4302_v35 = vpop.permute.xlu1 %1551 }
 0x1be   :  { %v519_v40 = vpop.f32.mrf.mxu1 }
 0x1bf   :  { %v608_v45 = vadd.f32 %v4287_v44, %v588_v3  ;;  %v586_v29 = vmul.f32 %v4283_v24, %v519_v40  ;;  %v4311_v40 = vpop.permute.xlu0 %2011 }
 0x1c0   :  { %v3306_v19 = vpop.f32.mrf.mxu1 }
 0x1c1   :  { %v644_v23 = vmul.f32 %v4293_v8, %v608_v45  ;;  %v606_v16 = vadd.f32 %v4287_v44, %v586_v29  ;;  %v589_v34 = vmul.f32 %v3306_v19, %v4283_v24  ;;  %vm624_vm2 = vcmp.ge.f32.partialorder %v608_v45, 0.0 }
 0x1c2   :  { %v522_v22 = vpop.f32.mrf.mxu1 }
 0x1c3   :  { %v642_v32 = vmul.f32 %v4293_v8, %v606_v16  ;;  %v609_v14 = vadd.f32 %v4287_v44, %v589_v34  ;;  %v587_v20 = vmul.f32 %v4283_v24, %v522_v22  ;;  %v4307_v3 = vsel %vm624_vm2, %v608_v45, %v644_v23  ;;  %v4324_v45 = vpop.permute.xlu1 %1555 }
 0x1c4   :  { %5505 = vst [vmem:[#allocation90_spill] sm:$0xff] %v4307_v3  ;;  %694 = vrot.lane.b32.xlu1 %v4307_v3, %s3555_s6  ;;  %vm622_vm3 = vcmp.ge.f32.partialorder %v606_v16, 0.0  ;;  %vm818_vm2 = vcmask 261120  }
 0x1c5   :  { %v645_v19 = vmul.f32 %v4293_v8, %v609_v14  ;;  %v607_v29 = vadd.f32 %v4287_v44, %v587_v20  ;;  %v4315_v26 = vsel %vm622_vm3, %v606_v16, %v642_v32  ;;  %vm625_vm4 = vcmp.ge.f32.partialorder %v609_v14, 0.0  ;;  %v4330_v20 = vpop.permute.xlu0 %2039 }
 0x1c6   :  { %690 = vrot.lane.b32.xlu0 %v4315_v26, %s3555_s6  ;;  %5506 = vst [vmem:[#allocation91_spill] sm:$0xff] %v4330_v20  ;;  %vm1155_vm3 = vcmask 523520  }
 0x1c7   :  { %v643_v23 = vmul.f32 %v4293_v8, %v607_v29  ;;  %v4320_v34 = vsel %vm625_vm4, %v609_v14, %v645_v19  ;;  %vm623_vm5 = vcmp.ge.f32.partialorder %v607_v29, 0.0  ;;  %v4333_v61 = vpop.permute.xlu1 %1563  ;;  %vm1332_vm4 = vcmask 785920  }
 0x1c8   :  { %696 = vrot.lane.b32.xlu1 %v4320_v34, %s3555_s6 }
 0x1c9   :  { %v4326_v22 = vsel %vm623_vm5, %v607_v29, %v643_v23  ;;  %v4337_v6 = vpop.permute.xlu0 %2059  ;;  %vm1509_vm5 = vcmask 1048320  }
 0x1ca   :  { %692 = vrot.lane.b32.xlu0 %v4326_v22, %s3555_s6  ;;  %5507 = vst [vmem:[#allocation92_spill] sm:$0xff] %v4337_v6 }
 0x1cc   :  { %v3309_v16 = vpop.f32.mrf.mxu1 }
 0x1cd   :  { %v592_v32 = vmul.f32 %v3309_v16, %v4283_v24  ;;  %v4355_v17 = vpop.permute.xlu0 %2063 }
 0x1ce   :  { %v535_v28 = vpop.f32.mrf.mxu1  ;;  %5508 = vst [vmem:[#allocation93_spill] sm:$0xff] %v4355_v17 }
 0x1cf   :  { %v612_v14 = vadd.f32 %v4287_v44, %v592_v32  ;;  %v590_v19 = vmul.f32 %v4283_v24, %v535_v28  ;;  %v4347_v28 = vpop.permute.xlu1 %1567 }
 0x1d0   :  { %v3310_v15 = vpop.f32.mrf.mxu1 }
 0x1d1   :  { %v648_v29 = vmul.f32 %v4293_v8, %v612_v14  ;;  %v610_v23 = vadd.f32 %v4287_v44, %v590_v19  ;;  %v593_v52 = vmul.f32 %v3310_v15, %v4283_v24  ;;  %vm628_vm6 = vcmp.ge.f32.partialorder %v612_v14, 0.0 }
 0x1d2   :  { %v538_v20 = vpop.f32.mrf.mxu1 }
 0x1d3   :  { %v646_v16 = vmul.f32 %v4293_v8, %v610_v23  ;;  %v613_v41 = vadd.f32 %v4287_v44, %v593_v52  ;;  %v4344_v51 = vsel %vm628_vm6, %v612_v14, %v648_v29  ;;  %v591_v32 = vmul.f32 %v4283_v24, %v538_v20  ;;  %v4366_v29 = vpop.permute.xlu1 %1543 }
 0x1d4   :  { %702 = vrot.lane.b32.xlu0 %v4344_v51, %s3555_s6  ;;  %vm626_vm7 = vcmp.ge.f32.partialorder %v610_v23, 0.0 }
 0x1d5   :  { %v649_v19 = vmul.f32 %v4293_v8, %v613_v41  ;;  %v611_v15 = vadd.f32 %v4287_v44, %v591_v32  ;;  %v4353_v6 = vsel %vm626_vm7, %v610_v23, %v646_v16  ;;  %vm629_vm8 = vcmp.ge.f32.partialorder %v613_v41, 0.0  ;;  %v4370_v16 = vpop.permute.xlu0 %1374 }
 0x1d7   :  { %v647_v52 = vmul.f32 %v4293_v8, %v611_v15  ;;  %v4358_v14 = vsel %vm629_vm8, %v613_v41, %v649_v19  ;;  %vm627_vm9 = vcmp.ge.f32.partialorder %v611_v15, 0.0  ;;  %v4375_v38 = vpop.permute.xlu1 %1575 }
 0x1d8   :  { %698 = vrot.lane.b32.xlu0 %v4353_v6, %s3555_s6  ;;  %704 = vrot.lane.b32.xlu1 %v4358_v14, %s3555_s6  ;;  %5509 = vst [vmem:[#allocation94_spill] sm:$0xff] %v4375_v38 }
 0x1d9   :  { %v4364_v20 = vsel %vm627_vm9, %v611_v15, %v647_v52  ;;  %v4380_v42 = vpop.permute.xlu0 %1390 }
 0x1da   :  { %5510 = vst [vmem:[#allocation95_spill] sm:$0xff] %v4380_v42 }
 0x1db   :  { %v4389_v38 = vpop.permute.xlu1 %2183 }
 0x1dc   :  { %700 = vrot.lane.b32.xlu1 %v4364_v20, %s3555_s6  ;;  %v3313_v23 = vpop.f32.mrf.mxu1 }
 0x1dd   :  { %v596_v41 = vmul.f32 %v3313_v23, %v4283_v24 }
 0x1de   :  { %v551_v32 = vpop.f32.mrf.mxu1 }
 0x1df   :  { %v616_v19 = vadd.f32 %v4287_v44, %v596_v41  ;;  %v594_v17 = vmul.f32 %v4283_v24, %v551_v32 }
 0x1e0   :  { %v3314_v54 = vpop.f32.mrf.mxu1 }
 0x1e1   :  { %v652_v15 = vmul.f32 %v4293_v8, %v616_v19  ;;  %v614_v52 = vadd.f32 %v4287_v44, %v594_v17  ;;  %v597_v10 = vmul.f32 %v3314_v54, %v4283_v24  ;;  %vm632_vm10 = vcmp.ge.f32.partialorder %v616_v19, 0.0 }
 0x1e2   :  { %v554_v43 = vpop.f32.mrf.mxu1 }
 0x1e3   :  { %v650_v23 = vmul.f32 %v4293_v8, %v614_v52  ;;  %v617_v25 = vadd.f32 %v4287_v44, %v597_v10  ;;  %v4384_v41 = vsel %vm632_vm10, %v616_v19, %v652_v15  ;;  %v595_v32 = vmul.f32 %v4283_v24, %v554_v43  ;;  %v4402_v43 = vpop.permute.xlu0 %1402  ;;  %v4406_v15 = vpop.permute.xlu1 %2191 }
 0x1e4   :  { %710 = vrot.lane.b32.xlu0 %v4384_v41, %s3555_s6  ;;  %vm630_vm11 = vcmp.ge.f32.partialorder %v614_v52, 0.0  ;;  %5511 = vst [vmem:[#allocation96_spill] sm:$0xff] %v4402_v43  ;;  %vm2844_vm10 = vcmask 523264  }
 0x1e5   :  { %v653_v54 = vmul.f32 %v4293_v8, %v617_v25  ;;  %v615_v17 = vadd.f32 %v4287_v44, %v595_v32  ;;  %v4393_v59 = vsel %vm630_vm11, %v614_v52, %v650_v23  ;;  %vm633_vm12 = vcmp.ge.f32.partialorder %v617_v25, 0.0 }
 0x1e7   :  { %v651_v42 = vmul.f32 %v4293_v8, %v615_v17  ;;  %v4396_v10 = vsel %vm633_vm12, %v617_v25, %v653_v54  ;;  %vm631_vm13 = vcmp.ge.f32.partialorder %v615_v17, 0.0  ;;  %v4411_v23 = vpop.permute.xlu0 %1406  ;;  %v4415_v2 = vpop.permute.xlu1 %2195 }
 0x1e8   :  { %706 = vrot.lane.b32.xlu0 %v4393_v59, %s3555_s6  ;;  %712 = vrot.lane.b32.xlu1 %v4396_v10, %s3555_s6  ;;  %5512 = vst [vmem:[#allocation97_spill] sm:$0xff] %v4411_v23 }
 0x1e9   :  { %v4404_v19 = vsel %vm631_vm13, %v615_v17, %v651_v42 }
 0x1eb   :  { %v4429_v9 = vpop.permute.xlu1 %1587 }
 0x1ec   :  { %708 = vrot.lane.b32.xlu1 %v4404_v19, %s3555_s6  ;;  %v3317_v52 = vpop.f32.mrf.mxu1  ;;  %5514 = vst [vmem:[#allocation99_spill] sm:$0xff] %v4429_v9 }
 0x1ed   :  { %v600_v25 = vmul.f32 %v3317_v52, %v4283_v24 }
 0x1ee   :  { %v567_v32 = vpop.f32.mrf.mxu1 }
 0x1ef   :  { %v620_v54 = vadd.f32 %v4287_v44, %v600_v25  ;;  %v598_v60 = vmul.f32 %v4283_v24, %v567_v32  ;;  %v4425_v32 = vpop.permute.xlu0 %1426 }
 0x1f0   :  { %v3318_v39 = vpop.f32.mrf.mxu1  ;;  %5513 = vst [vmem:[#allocation98_spill] sm:$0xff] %v4425_v32 }
 0x1f1   :  { %v656_v42 = vmul.f32 %v4293_v8, %v620_v54  ;;  %v618_v17 = vadd.f32 %v4287_v44, %v598_v60  ;;  %v601_v43 = vmul.f32 %v3318_v39, %v4283_v24  ;;  %vm636_vm14 = vcmp.ge.f32.partialorder %v620_v54, 0.0 }
 0x1f2   :  { %v570_v13 = vpop.f32.mrf.mxu1 }
 0x1f3   :  { %v654_v52 = vmul.f32 %v4293_v8, %v618_v17  ;;  %v621_v23 = vadd.f32 %v4287_v44, %v601_v43  ;;  %v4422_v4 = vsel %vm636_vm14, %v620_v54, %v656_v42  ;;  %v599_v25 = vmul.f32 %v4283_v24, %v570_v13  ;;  %v4444_v24 = vpop.permute.xlu0 %1559  ;;  %v4446_v42 = vpop.permute.xlu1 %2199 }
 0x1f4   :  { %718 = vrot.lane.b32.xlu0 %v4422_v4, %s3555_s6  ;;  %vm634_vm15 = vcmp.ge.f32.partialorder %v618_v17, 0.0 }
 0x1f5   :  { %v657_v60 = vmul.f32 %v4293_v8, %v621_v23  ;;  %v619_v39 = vadd.f32 %v4287_v44, %v599_v25  ;;  %v4433_v50 = vsel %vm634_vm15, %v618_v17, %v654_v52  ;;  %vm637_vm0 = vcmp.ge.f32.partialorder %v621_v23, 0.0 }
 0x1f7   :  { %v655_v43 = vmul.f32 %v4293_v8, %v619_v39  ;;  %v4436_v54 = vsel %vm637_vm0, %v621_v23, %v657_v60  ;;  %vm635_vm1 = vcmp.ge.f32.partialorder %v619_v39, 0.0  ;;  %v4450_v44 = vpop.permute.xlu0 %1571  ;;  %v4452_v8 = vpop.permute.xlu1 %2207 }
 0x1f8   :  { %714 = vrot.lane.b32.xlu0 %v4433_v50, %s3555_s6  ;;  %720 = vrot.lane.b32.xlu1 %v4436_v54, %s3555_s6  ;;  %5516 = vst [vmem:[#allocation101_spill] sm:$0xff] %v4452_v8 }
 0x1f9   :  { %v4442_v13 = vsel %vm635_vm1, %v619_v39, %v655_v43 }
 0x1fa   :  { %5515 = vst [vmem:[#allocation100_spill] sm:$0xff] %v4442_v13 }
 0x1fb   :  { %v4454_v23 = vpop.permute.xlu0 %1547  ;;  %v4456_v17 = vpop.permute.xlu1 %2211 }
 0x1fc   :  { %716 = vrot.lane.b32.xlu1 %v4442_v13, %s3555_s6  ;;  %5517 = vst [vmem:[#allocation102_spill] sm:$0xff] %v4456_v17 }
 0x1ff   :  { %v4458_v52 = vpop.permute.xlu1 %1595  ;;  %v4460_v25 = vpop.permute.xlu0 %1579 }
 0x200   :  { %5518 = vst [vmem:[#allocation103_spill] sm:$0xff] %v4458_v52  ;;  %5519 = vst [vmem:[#allocation104_spill] sm:$0xff] %v4460_v25 }
 0x203   :  { %v4462_v60 = vpop.permute.xlu1 %2215  ;;  %v4464_v39 = vpop.permute.xlu0 %1583 }
 0x204   :  { %5520 = vst [vmem:[#allocation105_spill] sm:$0xff] %v4462_v60  ;;  %5521 = vst [vmem:[#allocation106_spill] sm:$0xff] %v4464_v39 }
 0x207   :  { %v4466_v43 = vpop.permute.xlu1 %2223  ;;  %v4468_v32 = vpop.permute.xlu0 %1591 }
 0x208   :  { %5522 = vst [vmem:[#allocation107_spill] sm:$0xff] %v4466_v43  ;;  %5523 = vst [vmem:[#allocation108_spill] sm:$0xff] %v4468_v32 }
 0x20b   :  { %v4470_v9 = vpop.permute.xlu1 %2227  ;;  %v4472_v0 = vpop.permute.xlu0 %1599 }
 0x20c   :  { %5524 = vst [vmem:[#allocation109_spill] sm:$0xff] %v4470_v9  ;;  %5525 = vst [vmem:[#allocation110_spill] sm:$0xff] %v4472_v0 }
 0x20f   :  { %v4474_v33 = vpop.permute.xlu1 %1603  ;;  %v4476_v8 = vpop.permute.xlu0 %2187 }
 0x210   :  { %5526 = vst [vmem:[#allocation111_spill] sm:$0xff] %v4474_v33 }
 0x213   :  { %v4478_v17 = vpop.permute.xlu1 %2231  ;;  %v4480_v52 = vpop.permute.xlu0 %2203 }
 0x214   :  { %5527 = vst [vmem:[#allocation112_spill] sm:$0xff] %v4478_v17 }
 0x217   :  { %v4482_v25 = vpop.permute.xlu1 %2239  ;;  %v4484_v60 = vpop.permute.xlu0 %2219 }
 0x218   :  { %5528 = vst [vmem:[#allocation113_spill] sm:$0xff] %v4482_v25 }
 0x21b   :  { %v4486_v39 = vpop.permute.xlu1 %2243  ;;  %v4488_v43 = vpop.permute.xlu0 %2235 }
 0x21c   :  { %5529 = vst [vmem:[#allocation114_spill] sm:$0xff] %v4488_v43 }
 0x236   :  { %v695_v32 = vpop.permute.xlu1 %694 }
 0x237   :  { %v740_v9 = vadd.f32 %v695_v32, %v4307_v3 }
 0x238   :  { %v691_v0 = vpop.permute.xlu0 %690 }
 0x239   :  { %774 = vrot.lane.b32.xlu0 %v740_v9, %s3555_s6  ;;  %v738_v27 = vadd.f32 %v691_v0, %v4315_v26 }
 0x23a   :  { %v697_v33 = vpop.permute.xlu1 %696 }
 0x23b   :  { %v741_v17 = vadd.f32 %v697_v33, %v4320_v34 }
 0x23c   :  { %v693_v53 = vpop.permute.xlu0 %692 }
 0x23d   :  { %770 = vrot.lane.b32.xlu0 %v738_v27, %s3555_s6  ;;  %776 = vrot.lane.b32.xlu1 %v741_v17, %s3555_s6  ;;  %v739_v25 = vadd.f32 %v693_v53, %v4326_v22 }
 0x241   :  { %772 = vrot.lane.b32.xlu1 %v739_v25, %s3555_s6 }
 0x246   :  { %v703_v43 = vpop.permute.xlu0 %702 }
 0x247   :  { %v744_v32 = vadd.f32 %v703_v43, %v4344_v51 }
 0x249   :  { %782 = vrot.lane.b32.xlu0 %v744_v32, %s3555_s6 }
 0x24a   :  { %v699_v9 = vpop.permute.xlu0 %698  ;;  %v705_v3 = vpop.permute.xlu1 %704 }
 0x24b   :  { %v742_v0 = vadd.f32 %v699_v9, %v4353_v6  ;;  %v745_v33 = vadd.f32 %v705_v3, %v4358_v14 }
 0x24d   :  { %778 = vrot.lane.b32.xlu0 %v742_v0, %s3555_s6  ;;  %784 = vrot.lane.b32.xlu1 %v745_v33, %s3555_s6 }
 0x24e   :  { %v701_v27 = vpop.permute.xlu1 %700 }
 0x24f   :  { %v743_v53 = vadd.f32 %v701_v27, %v4364_v20 }
 0x251   :  { %780 = vrot.lane.b32.xlu1 %v743_v53, %s3555_s6 }
 0x256   :  { %v711_v17 = vpop.permute.xlu0 %710 }
 0x257   :  { %v748_v25 = vadd.f32 %v711_v17, %v4384_v41 }
 0x259   :  { %790 = vrot.lane.b32.xlu0 %v748_v25, %s3555_s6 }
 0x25a   :  { %v707_v43 = vpop.permute.xlu0 %706  ;;  %v713_v32 = vpop.permute.xlu1 %712 }
 0x25b   :  { %v746_v9 = vadd.f32 %v707_v43, %v4393_v59  ;;  %v749_v3 = vadd.f32 %v713_v32, %v4396_v10 }
 0x25d   :  { %786 = vrot.lane.b32.xlu0 %v746_v9, %s3555_s6  ;;  %792 = vrot.lane.b32.xlu1 %v749_v3, %s3555_s6 }
 0x25e   :  { %v709_v0 = vpop.permute.xlu1 %708 }
 0x25f   :  { %v747_v33 = vadd.f32 %v709_v0, %v4404_v19 }
 0x261   :  { %788 = vrot.lane.b32.xlu1 %v747_v33, %s3555_s6 }
 0x266   :  { %v719_v27 = vpop.permute.xlu0 %718 }
 0x267   :  { %v752_v53 = vadd.f32 %v719_v27, %v4422_v4 }
 0x269   :  { %798 = vrot.lane.b32.xlu0 %v752_v53, %s3555_s6 }
 0x26a   :  { %v715_v17 = vpop.permute.xlu0 %714  ;;  %v721_v25 = vpop.permute.xlu1 %720 }
 0x26b   :  { %v750_v43 = vadd.f32 %v715_v17, %v4433_v50  ;;  %v753_v32 = vadd.f32 %v721_v25, %v4436_v54 }
 0x26d   :  { %794 = vrot.lane.b32.xlu0 %v750_v43, %s3555_s6  ;;  %800 = vrot.lane.b32.xlu1 %v753_v32, %s3555_s6 }
 0x26e   :  { %v717_v9 = vpop.permute.xlu1 %716 }
 0x26f   :  { %v751_v3 = vadd.f32 %v717_v9, %v4442_v13 }
 0x271   :  { %796 = vrot.lane.b32.xlu1 %v751_v3, %s3555_s6 }
 0x2ab   :  { %v775_v0 = vpop.permute.xlu0 %774 }
 0x2ac   :  { %821 = vst.msk [vmem:[#allocation2 + $0x10] sm:$0xff] %vm818_vm2, %v775_v0  ;;  %837 = vst.msk [vmem:[#allocation2 + $0x90] sm:$0xff] %vm818_vm2, %v775_v0 }
 0x2af   :  { %v771_v33 = vpop.permute.xlu0 %770  ;;  %v777_v27 = vpop.permute.xlu1 %776 }
 0x2b0   :  { %819 = vst.msk [vmem:[#allocation2] sm:$0xff] %vm818_vm2, %v771_v33  ;;  %835 = vst.msk [vmem:[#allocation2 + $0x80] sm:$0xff] %vm818_vm2, %v771_v33 }
 0x2b1   :  { %822 = vst.msk [vmem:[#allocation2 + $0x18] sm:$0xff] %vm818_vm2, %v777_v27  ;;  %838 = vst.msk [vmem:[#allocation2 + $0x98] sm:$0xff] %vm818_vm2, %v777_v27 }
 0x2b3   :  { %v773_v53 = vpop.permute.xlu1 %772  ;;  %v1991_v17 = vld [vmem:[#allocation2 + $0x10] sm:$0xff] }
 0x2b4   :  { %v998_v25 = vld [vmem:[#allocation2 + $0x90] sm:$0xff]  ;;  %820 = vst.msk [vmem:[#allocation2 + $0x8] sm:$0xff] %vm818_vm2, %v773_v53  ;;  %836 = vst.msk [vmem:[#allocation2 + $0x88] sm:$0xff] %vm818_vm2, %v773_v53  ;;  %v2071_v43 = vmul.f32 %v4311_v40, %v1991_v17  ;;  %v1608_v9 = vmul.f32 %v1991_v17, %v4302_v35 }
 0x2b5   :  { %v1078_v32 = vmul.f32 %v3895_v1, %v998_v25 }
 0x2b6   :  { %2104 = vrot.lane.b32.xlu0 %v2071_v43, %s3555_s6  ;;  %1624 = vst.msk [vmem:[#allocation3 + $0x38] sm:$0xff] %vm818_vm2, %v1608_v9 }
 0x2b7   :  { %1113 = vrot.lane.b32.xlu1 %v1078_v32, %s3556_s19  ;;  %v996_v0 = vld [vmem:[#allocation2 + $0x80] sm:$0xff] }
 0x2b8   :  { %v2167_v3 = vld [vmem:[#allocation2 + $0x11] sm:$0xff]  ;;  %v1076_v53 = vmul.f32 %v4118_v48, %v996_v0  ;;  %v1526_v17 = vld [vmem:[#allocation2] sm:$0xff] }
 0x2b9   :  { %v999_v33 = vld [vmem:[#allocation2 + $0x98] sm:$0xff]  ;;  %v2247_v27 = vmul.f32 %v4476_v8, %v2167_v3  ;;  %v1606_v43 = vmul.f32 %v4366_v29, %v1526_v17  ;;  %v1720_v29 = vmul.f32 %v2167_v3, %v3930_v12 }
 0x2ba   :  { %v1079_v40 = vmul.f32 %v4128_v46, %v999_v33  ;;  %v1352_v13 = vld [vmem:[#allocation2 + $0x97] sm:$0xff] }
 0x2bb   :  { %v1175_v1 = vld [vmem:[#allocation2 + $0x91] sm:$0xff]  ;;  %v967_v35 = vmul.f32 %v1352_v13, %v3858_v56  ;;  %2263 = vst.msk [vmem:[#allocation3 + $0x28] sm:$0xff] %vm818_vm2, %v2247_v27  ;;  %1109 = vrot.lane.b32.xlu1 %v1076_v53, %s3556_s19  ;;  %v2166_v32 = vld [vmem:[#allocation2 + $0x9] sm:$0xff]  ;;  %v4545_v48 = vld [vmem:[#allocation2 + $0x81] sm:$0xff]  ;;  %v783_v46 = vpop.permute.xlu0 %782 }
 0x2bc   :  { %v1992_v25 = vld [vmem:[#allocation2 + $0x18] sm:$0xff]  ;;  %1115 = vrot.lane.b32.xlu0 %v1079_v40, %s3556_s19  ;;  %v2246_v9 = vmul.f32 %v4389_v38, %v2166_v32  ;;  %v2261_v56 = vmul.f32 %v4486_v39, %v4545_v48  ;;  %825 = vst.msk [vmem:[#allocation2 + $0x30] sm:$0xff] %vm818_vm2, %v783_v46  ;;  %841 = vst.msk [vmem:[#allocation2 + $0xb0] sm:$0xff] %vm818_vm2, %v783_v46  ;;  %v1255_v0 = vmul.f32 %v4180_v7, %v1175_v1  ;;  %v4559_v27 = vld [vmem:[#allocation2 + $0x87] sm:$0xff] }
 0x2bd   :  { %v1609_v8 = vmul.f32 %v1992_v25, %v4324_v45  ;;  %983 = vst.msk [vmem:[#allocation3 + $0x60] sm:$0xff] %vm818_vm2, %v967_v35  ;;  %v4555_v45 = vld [vmem:[#allocation2 + $0x8f] sm:$0xff]  ;;  %1622 = vst.msk [vmem:[#allocation3 + $0x8] sm:$0xff] %vm818_vm2, %v1606_v43  ;;  %v1816_v33 = vld [vmem:[#allocation2 + $0x17] sm:$0xff]  ;;  %v965_v3 = vmul.f32 %v4559_v27, %v3854_v55  ;;  %v1432_v40 = vmul.f32 %v3966_v30, %v1352_v13 }
 0x2be   :  { %2262 = vst.msk [vmem:[#allocation3 + $0x10] sm:$0xff] %vm818_vm2, %v2246_v9  ;;  %2277 = vst.msk [vmem:[#allocation3 + $0x178] sm:$0xff] %vm818_vm2, %v2261_v56  ;;  %v4565_v38 = vld [vmem:[#allocation2 + $0x8] sm:$0xff]  ;;  %v966_v39 = vmul.f32 %v4555_v45, %v3954_v21  ;;  %v1896_v1 = vmul.f32 %v4251_v49, %v1816_v33  ;;  %v3491_v55 = vld [vmem:[%s5391_s3 + $0x78] sm:$0xff]   ;;  %v2072_v30 = vmul.f32 %v3951_v18, %v1992_v25 }
 0x2bf   :  { %1625 = vst.msk [vmem:[#allocation3 + $0x50] sm:$0xff] %vm818_vm2, %v1609_v8  ;;  %1754 = vrot.lane.b32.xlu1 %v1720_v29, %s3556_s19  ;;  %v779_v12 = vpop.permute.xlu0 %778  ;;  %v785_v7 = vpop.permute.xlu1 %784  ;;  %v1607_v53 = vmul.f32 %v4565_v38, %v4454_v23  ;;  %v997_v35 = vld [vmem:[#allocation2 + $0x88] sm:$0xff]  ;;  %981 = vst.msk [vmem:[#allocation3 + $0x30] sm:$0xff] %vm818_vm2, %v965_v3  ;;  %3363 = vmatprep.subr.bf16.mxu1 %v3491_v55  ;;  %v3492_v43 = vld [vmem:[%s5391_s3 + $0x38] sm:$0xff]   ;;  %v1719_v9 = vmul.f32 %v2166_v32, %v4220_v62 }
 0x2c0   :  { %1290 = vrot.lane.b32.xlu0 %v1255_v0, %s3557_s20  ;;  %823 = vst.msk [vmem:[#allocation2 + $0x20] sm:$0xff] %vm818_vm2, %v779_v12  ;;  %839 = vst.msk [vmem:[#allocation2 + $0xa0] sm:$0xff] %vm818_vm2, %v779_v12  ;;  %v1077_v49 = vmul.f32 %v3891_v63, %v997_v35  ;;  %3205 = vmatprep.subr.bf16.mxu0 %v3491_v55  ;;  %v1174_v17 = vld [vmem:[#allocation2 + $0x89] sm:$0xff]  ;;  %v1431_v33 = vmul.f32 %v4370_v16, %v4555_v45 }
 0x2c1   :  { %826 = vst.msk [vmem:[#allocation2 + $0x38] sm:$0xff] %vm818_vm2, %v785_v7  ;;  %842 = vst.msk [vmem:[#allocation2 + $0xb8] sm:$0xff] %vm818_vm2, %v785_v7  ;;  %v3493_v18 = vld [vmem:[%s5391_s3 + $0x70] sm:$0xff]   ;;  %3371 = vmatpush3.bf16.msra.mxu1 %v3492_v43  ;;  %3206 = vmatpush3.bf16.msra.mxu0 %v3492_v43  ;;  %v1254_v46 = vmul.f32 %v3944_v5, %v1174_v17  ;;  %v1638_v7 = vld [vmem:[#allocation2 + $0x1] sm:$0xff] }
 0x2c2   :  { %982 = vst.msk [vmem:[#allocation3 + $0x48] sm:$0xff] %vm818_vm2, %v966_v39  ;;  %1623 = vst.msk [vmem:[#allocation3 + $0x20] sm:$0xff] %vm818_vm2, %v1607_v53  ;;  %3364 = vmatprep.subr.bf16.mxu1 %v3493_v18  ;;  %v1815_v56 = vld [vmem:[#allocation2 + $0xf] sm:$0xff]  ;;  %3207 = vmatprep.subr.bf16.mxu0 %v3493_v18  ;;  %v1718_v35 = vmul.f32 %v4061_v11, %v1638_v7  ;;  %v3498_v43 = vld [vmem:[%s5391_s3 + $0x20] sm:$0xff]  }
 0x2c3   :  { %1930 = vrot.lane.b32.xlu1 %v1896_v1, %s3557_s20  ;;  %v781_v21 = vpop.permute.xlu1 %780  ;;  %v4587_v23 = vld [vmem:[#allocation2 + $0x30] sm:$0xff]  ;;  %v1895_v12 = vmul.f32 %v4094_v47, %v1815_v56  ;;  %v1253_v47 = vmul.f32 %v4545_v48, %v4112_v37  ;;  %v3495_v45 = vld [vmem:[%s5391_s3 + $0x68] sm:$0xff]   ;;  %v5532_v18 = vld [vmem:[#allocation106_spill] sm:$0xff] }
 0x2c4   :  { %1467 = vrot.lane.b32.xlu0 %v1432_v40, %s3555_s6  ;;  %824 = vst.msk [vmem:[#allocation2 + $0x28] sm:$0xff] %vm818_vm2, %v781_v21  ;;  %840 = vst.msk [vmem:[#allocation2 + $0xa8] sm:$0xff] %vm818_vm2, %v781_v21  ;;  %v1612_v13 = vmul.f32 %v4587_v23, %v4347_v28  ;;  %v3496_v11 = vld [vmem:[%s5391_s3 + $0x28] sm:$0xff]   ;;  %v1002_v7 = vld [vmem:[#allocation2 + $0xb0] sm:$0xff] }
 0x2c5   :  { %v1814_v21 = vld [vmem:[#allocation2 + $0x7] sm:$0xff] }
 0x2c6   :  { %1628 = vst.msk [vmem:[#allocation3 + $0x98] sm:$0xff] %vm818_vm2, %v1612_v13  ;;  %v5531_v13 = vld [vmem:[#allocation79_spill] sm:$0xff] }
 0x2c7   :  { %2106 = vrot.lane.b32.xlu1 %v2072_v30, %s3555_s6  ;;  %v4604_v63 = vld [vmem:[#allocation2 + $0x19] sm:$0xff]  ;;  %v1894_v17 = vmul.f32 %v5531_v13, %v1814_v21 }
 0x2c8   :  { %1111 = vrot.lane.b32.xlu0 %v1077_v49, %s3556_s19  ;;  %v4606_v25 = vld [vmem:[#allocation2 + $0x31] sm:$0xff]  ;;  %v2248_v28 = vmul.f32 %v4406_v15, %v4604_v63  ;;  %v4614_v0 = vld [vmem:[#allocation2 + $0x9f] sm:$0xff] }
 0x2c9   :  { %v2251_v8 = vmul.f32 %v4480_v52, %v4606_v25  ;;  %v968_v62 = vmul.f32 %v4614_v0, %v3968_v31  ;;  %v4635_v39 = vld [vmem:[#allocation2 + $0x20] sm:$0xff]  ;;  %v4637_v3 = vld [vmem:[#allocation2 + $0xb7] sm:$0xff] }
 0x2ca   :  { %2264 = vst.msk [vmem:[#allocation3 + $0x40] sm:$0xff] %vm818_vm2, %v2248_v28  ;;  %v4639_v31 = vld [vmem:[#allocation2 + $0x38] sm:$0xff]  ;;  %v971_v37 = vmul.f32 %v4637_v3, %v3867_v58  ;;  %v1610_v58 = vmul.f32 %v4635_v39, %v4444_v24  ;;  %v3497_v30 = vld [vmem:[%s5391_s3 + $0x60] sm:$0xff]  }
 0x2cb   :  { %2267 = vst.msk [vmem:[#allocation3 + $0x88] sm:$0xff] %vm818_vm2, %v2251_v8  ;;  %1288 = vrot.lane.b32.xlu1 %v1254_v46, %s3557_s20  ;;  %v4620_v15 = vld [vmem:[#allocation2 + $0x21] sm:$0xff]  ;;  %v4622_v52 = vld [vmem:[#allocation2 + $0x29] sm:$0xff]  ;;  %v791_v5 = vpop.permute.xlu0 %790  ;;  %984 = vst.msk [vmem:[#allocation3 + $0x78] sm:$0xff] %vm818_vm2, %v968_v62 }
 0x2cc   :  { %1752 = vrot.lane.b32.xlu0 %v1719_v9, %s3556_s19  ;;  %v2249_v32 = vmul.f32 %v4415_v2, %v4620_v15  ;;  %v2250_v29 = vmul.f32 %v4446_v42, %v4622_v52  ;;  %829 = vst.msk [vmem:[#allocation2 + $0x50] sm:$0xff] %vm818_vm2, %v791_v5  ;;  %845 = vst.msk [vmem:[#allocation2 + $0xd0] sm:$0xff] %vm818_vm2, %v791_v5  ;;  %v4641_v2 = vld [vmem:[#allocation2 + $0x28] sm:$0xff]  ;;  %v3494_v42 = vld [vmem:[%s5391_s3 + $0x30] sm:$0xff]  }
 0x2cd   :  { %v4643_v53 = vld [vmem:[#allocation2 + $0xa7] sm:$0xff]  ;;  %v4652_v16 = vld [vmem:[#allocation2 + $0xaf] sm:$0xff]  ;;  %3372 = vmatpush3.bf16.msra.mxu1 %v3494_v42  ;;  %3208 = vmatpush3.bf16.msra.mxu0 %v3494_v42  ;;  %987 = vst.msk [vmem:[#allocation3 + $0xc0] sm:$0xff] %vm818_vm2, %v971_v37  ;;  %1626 = vst.msk [vmem:[#allocation3 + $0x68] sm:$0xff] %vm818_vm2, %v1610_v58 }
 0x2ce   :  { %2265 = vst.msk [vmem:[#allocation3 + $0x58] sm:$0xff] %vm818_vm2, %v2249_v32  ;;  %2266 = vst.msk [vmem:[#allocation3 + $0x70] sm:$0xff] %vm818_vm2, %v2250_v29  ;;  %v970_v55 = vmul.f32 %v4652_v16, %v3993_v36  ;;  %v969_v48 = vmul.f32 %v4643_v53, %v3862_v57  ;;  %v1611_v36 = vmul.f32 %v4641_v2, %v4333_v61  ;;  %3365 = vmatprep.subr.bf16.mxu1 %v3495_v45  ;;  %v3499_v8 = vld [vmem:[%s5391_s3 + $0x58] sm:$0xff]   ;;  %v5533_v9 = vld [vmem:[#allocation101_spill] sm:$0xff] }
 0x2cf   :  { %1465 = vrot.lane.b32.xlu1 %v1431_v33, %s3555_s6  ;;  %v787_v40 = vpop.permute.xlu0 %786  ;;  %v793_v1 = vpop.permute.xlu1 %792  ;;  %v1613_v57 = vmul.f32 %v4639_v31, %v4450_v44  ;;  %3209 = vmatprep.subr.bf16.mxu0 %v3495_v45  ;;  %v5530_v44 = vld [vmem:[#allocation43_spill] sm:$0xff]  ;;  %v5535_v29 = vld [vmem:[#allocation40_spill] sm:$0xff]  ;;  %v5536_v45 = vld [vmem:[#allocation25_spill] sm:$0xff] }
 0x2d0   :  { %1928 = vrot.lane.b32.xlu0 %v1895_v12, %s3557_s20  ;;  %827 = vst.msk [vmem:[#allocation2 + $0x40] sm:$0xff] %vm818_vm2, %v787_v40  ;;  %843 = vst.msk [vmem:[#allocation2 + $0xc0] sm:$0xff] %vm818_vm2, %v787_v40  ;;  %v1430_v49 = vmul.f32 %v5530_v44, %v4559_v27  ;;  %v5534_v62 = vld [vmem:[#allocation87_spill] sm:$0xff]  ;;  %v2070_v33 = vmul.f32 %v5535_v29, %v4565_v38  ;;  %v3500_v12 = vld [vmem:[%s5391_s3 + $0x18] sm:$0xff]  }
 0x2d1   :  { %830 = vst.msk [vmem:[#allocation2 + $0x58] sm:$0xff] %vm818_vm2, %v793_v1  ;;  %846 = vst.msk [vmem:[#allocation2 + $0xd8] sm:$0xff] %vm818_vm2, %v793_v1  ;;  %3373 = vmatpush3.bf16.msra.mxu1 %v3496_v11  ;;  %3210 = vmatpush3.bf16.msra.mxu0 %v3496_v11  ;;  %v2075_v32 = vmul.f32 %v5534_v62, %v4587_v23  ;;  %v1817_v42 = vld [vmem:[#allocation2 + $0x1f] sm:$0xff]  ;;  %v5544_v29 = vld [vmem:[#allocation9_spill] sm:$0xff] }
 0x2d2   :  { %986 = vst.msk [vmem:[#allocation3 + $0xa8] sm:$0xff] %vm818_vm2, %v970_v55  ;;  %985 = vst.msk [vmem:[#allocation3 + $0x90] sm:$0xff] %vm818_vm2, %v969_v48  ;;  %3366 = vmatprep.subr.bf16.mxu1 %v3497_v30  ;;  %3211 = vmatprep.subr.bf16.mxu0 %v3497_v30  ;;  %v5537_v1 = vld [vmem:[#allocation102_spill] sm:$0xff]  ;;  %v5538_v55 = vld [vmem:[#allocation105_spill] sm:$0xff] }
 0x2d3   :  { %1750 = vrot.lane.b32.xlu1 %v1718_v35, %s3556_s19  ;;  %1627 = vst.msk [vmem:[#allocation3 + $0x80] sm:$0xff] %vm818_vm2, %v1611_v36  ;;  %1629 = vst.msk [vmem:[#allocation3 + $0xb0] sm:$0xff] %vm818_vm2, %v1613_v57  ;;  %v789_v61 = vpop.permute.xlu1 %788  ;;  %v4691_v24 = vld [vmem:[#allocation2 + $0x50] sm:$0xff]  ;;  %v5539_v48 = vld [vmem:[#allocation18_spill] sm:$0xff] }
 0x2d4   :  { %1286 = vrot.lane.b32.xlu0 %v1253_v47, %s3557_s20  ;;  %828 = vst.msk [vmem:[#allocation2 + $0x48] sm:$0xff] %vm818_vm2, %v789_v61  ;;  %844 = vst.msk [vmem:[#allocation2 + $0xc8] sm:$0xff] %vm818_vm2, %v789_v61  ;;  %v1616_v28 = vmul.f32 %v4691_v24, %v5532_v18  ;;  %v1721_v11 = vmul.f32 %v4604_v63, %v5539_v48  ;;  %v5540_v36 = vld [vmem:[#allocation13_spill] sm:$0xff]  ;;  %v1000_v57 = vld [vmem:[#allocation2 + $0xa0] sm:$0xff] }
 0x2d5   :  { %3374 = vmatpush3.bf16.msra.mxu1 %v3498_v43  ;;  %3212 = vmatpush3.bf16.msra.mxu0 %v3498_v43  ;;  %v1082_v58 = vmul.f32 %v5540_v36, %v1002_v7  ;;  %v5541_v63 = vld [vmem:[#allocation19_spill] sm:$0xff]  ;;  %v3501_v43 = vld [vmem:[%s5391_s3 + $0x50] sm:$0xff]   ;;  %v5545_v7 = vld [vmem:[#allocation8_spill] sm:$0xff] }
 0x2d6   :  { %1632 = vst.msk [vmem:[#allocation3 + $0xf8] sm:$0xff] %vm818_vm2, %v1616_v28  ;;  %3367 = vmatprep.subr.bf16.mxu1 %v3499_v8  ;;  %3213 = vmatprep.subr.bf16.mxu0 %v3499_v8  ;;  %v1897_v13 = vmul.f32 %v5541_v63, %v1817_v42  ;;  %v3502_v18 = vld [vmem:[%s5391_s3 + $0x10] sm:$0xff]   ;;  %v5543_v62 = vld [vmem:[#allocation35_spill] sm:$0xff]  ;;  %v5546_v42 = vld [vmem:[#allocation104_spill] sm:$0xff] }
 0x2d7   :  { %1926 = vrot.lane.b32.xlu1 %v1894_v17, %s3557_s20  ;;  %v4709_v27 = vld [vmem:[#allocation2 + $0x39] sm:$0xff]  ;;  %v5550_v63 = vld [vmem:[#allocation56_spill] sm:$0xff] }
 0x2d8   :  { %1463 = vrot.lane.b32.xlu0 %v1430_v49, %s3555_s6  ;;  %v4711_v46 = vld [vmem:[#allocation2 + $0x51] sm:$0xff]  ;;  %v2252_v56 = vmul.f32 %v5533_v9, %v4709_v27  ;;  %v4724_v47 = vld [vmem:[#allocation2 + $0xbf] sm:$0xff]  ;;  %v5542_v9 = vld [vmem:[#allocation12_spill] sm:$0xff] }
 0x2d9   :  { %v2255_v5 = vmul.f32 %v4484_v60, %v4711_v46  ;;  %v972_v40 = vmul.f32 %v4724_v47, %v5536_v45  ;;  %v4745_v21 = vld [vmem:[#allocation2 + $0x40] sm:$0xff]  ;;  %v4747_v30 = vld [vmem:[#allocation2 + $0xd7] sm:$0xff]  ;;  %3375 = vmatpush3.bf16.msra.mxu1 %v3500_v12  ;;  %3214 = vmatpush3.bf16.msra.mxu0 %v3500_v12 }
 0x2da   :  { %2268 = vst.msk [vmem:[#allocation3 + $0xa0] sm:$0xff] %vm818_vm2, %v2252_v56  ;;  %v4749_v61 = vld [vmem:[#allocation2 + $0x58] sm:$0xff]  ;;  %v1080_v56 = vmul.f32 %v5542_v9, %v1000_v57  ;;  %3368 = vmatprep.subr.bf16.mxu1 %v3501_v43  ;;  %3215 = vmatprep.subr.bf16.mxu0 %v3501_v43  ;;  %v3505_v36 = vld [vmem:[%s5391_s3 + $0x40] sm:$0xff]  }
 0x2db   :  { %2271 = vst.msk [vmem:[#allocation3 + $0xe8] sm:$0xff] %vm818_vm2, %v2255_v5  ;;  %2102 = vrot.lane.b32.xlu1 %v2070_v33, %s3555_s6  ;;  %v4730_v60 = vld [vmem:[#allocation2 + $0x41] sm:$0xff]  ;;  %v4732_v38 = vld [vmem:[#allocation2 + $0x49] sm:$0xff]  ;;  %v799_v23 = vpop.permute.xlu0 %798  ;;  %988 = vst.msk [vmem:[#allocation3 + $0xd8] sm:$0xff] %vm818_vm2, %v972_v40  ;;  %v975_v33 = vmul.f32 %v4747_v30, %v5544_v29 }
 0x2dc   :  { %2112 = vrot.lane.b32.xlu0 %v2075_v32, %s3555_s6  ;;  %v2253_v35 = vmul.f32 %v5537_v1, %v4730_v60  ;;  %v2254_v37 = vmul.f32 %v5538_v55, %v4732_v38  ;;  %833 = vst.msk [vmem:[#allocation2 + $0x70] sm:$0xff] %vm818_vm2, %v799_v23  ;;  %849 = vst.msk [vmem:[#allocation2 + $0xf0] sm:$0xff] %vm818_vm2, %v799_v23  ;;  %v4751_v44 = vld [vmem:[#allocation2 + $0x48] sm:$0xff]  ;;  %v5547_v40 = vld [vmem:[#allocation94_spill] sm:$0xff] }
 0x2dd   :  { %v4753_v49 = vld [vmem:[#allocation2 + $0xc7] sm:$0xff]  ;;  %v4761_v17 = vld [vmem:[#allocation2 + $0xcf] sm:$0xff]  ;;  %v1615_v45 = vmul.f32 %v4751_v44, %v5546_v42  ;;  %v1614_v1 = vmul.f32 %v4745_v21, %v5547_v40  ;;  %v1176_v12 = vld [vmem:[#allocation2 + $0x99] sm:$0xff]  ;;  %3376 = vmatpush3.bf16.msra.mxu1 %v3502_v18  ;;  %991 = vst.msk [vmem:[#allocation3 + $0x120] sm:$0xff] %vm818_vm2, %v975_v33  ;;  %3216 = vmatpush3.bf16.msra.mxu0 %v3502_v18 }
 0x2de   :  { %2269 = vst.msk [vmem:[#allocation3 + $0xb8] sm:$0xff] %vm818_vm2, %v2253_v35  ;;  %2270 = vst.msk [vmem:[#allocation3 + $0xd0] sm:$0xff] %vm818_vm2, %v2254_v37  ;;  %v3503_v5 = vld [vmem:[%s5391_s3 + $0x48] sm:$0xff]   ;;  %v974_v32 = vmul.f32 %v4761_v17, %v5543_v62  ;;  %v973_v23 = vmul.f32 %v4753_v49, %v5545_v7  ;;  %v5548_v35 = vld [vmem:[#allocation99_spill] sm:$0xff] }
 0x2df   :  { %1121 = vrot.lane.b32.xlu1 %v1082_v58, %s3556_s19  ;;  %v795_v28 = vpop.permute.xlu0 %794  ;;  %v801_v8 = vpop.permute.xlu1 %800  ;;  %v1617_v55 = vmul.f32 %v4749_v61, %v5548_v35  ;;  %v3504_v37 = vld [vmem:[%s5391_s3 + $0x8] sm:$0xff]   ;;  %1631 = vst.msk [vmem:[#allocation3 + $0xe0] sm:$0xff] %vm818_vm2, %v1615_v45  ;;  %1630 = vst.msk [vmem:[#allocation3 + $0xc8] sm:$0xff] %vm818_vm2, %v1614_v1  ;;  %3369 = vmatprep.subr.bf16.mxu1 %v3503_v5  ;;  %v5549_v58 = vld [vmem:[#allocation22_spill] sm:$0xff] }
 0x2e0   :  { %1756 = vrot.lane.b32.xlu0 %v1721_v11, %s3556_s19  ;;  %831 = vst.msk [vmem:[#allocation2 + $0x60] sm:$0xff] %vm818_vm2, %v795_v28  ;;  %847 = vst.msk [vmem:[#allocation2 + $0xe0] sm:$0xff] %vm818_vm2, %v795_v28  ;;  %v2073_v57 = vmul.f32 %v5549_v58, %v4635_v39  ;;  %3217 = vmatprep.subr.bf16.mxu0 %v3503_v5  ;;  %v5551_v43 = vld [vmem:[#allocation110_spill] sm:$0xff]  ;;  %v3506_v9 = vld [vmem:[%s5391_s3] sm:$0xff]  }
 0x2e1   :  { %834 = vst.msk [vmem:[#allocation2 + $0x78] sm:$0xff] %vm818_vm2, %v801_v8  ;;  %850 = vst.msk [vmem:[#allocation2 + $0xf8] sm:$0xff] %vm818_vm2, %v801_v8  ;;  %v1003_v8 = vld [vmem:[#allocation2 + $0xb8] sm:$0xff]  ;;  %3377 = vmatpush3.bf16.msra.mxu1 %v3504_v37  ;;  %v5552_v5 = vld [vmem:[#allocation29_spill] sm:$0xff]  ;;  %3218 = vmatpush3.bf16.msra.mxu0 %v3504_v37 }
 0x2e2   :  { %990 = vst.msk [vmem:[#allocation3 + $0x108] sm:$0xff] %vm818_vm2, %v974_v32  ;;  %989 = vst.msk [vmem:[#allocation3 + $0xf0] sm:$0xff] %vm818_vm2, %v973_v23  ;;  %v1433_v62 = vmul.f32 %v5552_v5, %v4614_v0  ;;  %3370 = vmatprep.subr.bf16.mxu1 %v3505_v36  ;;  %v5553_v32 = vld [vmem:[#allocation107_spill] sm:$0xff]  ;;  %v5554_v33 = vld [vmem:[#allocation114_spill] sm:$0xff]  ;;  %3219 = vmatprep.subr.bf16.mxu0 %v3505_v36 }
 0x2e3   :  { %1117 = vrot.lane.b32.xlu1 %v1080_v56, %s3556_s19  ;;  %1633 = vst.msk [vmem:[#allocation3 + $0x110] sm:$0xff] %vm818_vm2, %v1617_v55  ;;  %v797_v48 = vpop.permute.xlu1 %796  ;;  %v4800_v11 = vld [vmem:[#allocation2 + $0x70] sm:$0xff]  ;;  %v5556_v45 = vld [vmem:[#allocation44_spill] sm:$0xff]  ;;  %v5557_v55 = vld [vmem:[#allocation7_spill] sm:$0xff] }
 0x2e4   :  { %1932 = vrot.lane.b32.xlu0 %v1897_v13, %s3557_s20  ;;  %832 = vst.msk [vmem:[#allocation2 + $0x68] sm:$0xff] %vm818_vm2, %v797_v48  ;;  %848 = vst.msk [vmem:[#allocation2 + $0xe8] sm:$0xff] %vm818_vm2, %v797_v48  ;;  %v1256_v13 = vmul.f32 %v5550_v63, %v1176_v12  ;;  %v1620_v28 = vmul.f32 %v4800_v11, %v5551_v43  ;;  %v5555_v23 = vld [vmem:[#allocation113_spill] sm:$0xff]  ;;  %v1083_v40 = vmul.f32 %v5556_v45, %v1003_v8  ;;  %v5559_v58 = vld [vmem:[#allocation112_spill] sm:$0xff] }
 0x2e5   :  { %v1179_v35 = vld [vmem:[#allocation2 + $0xb1] sm:$0xff]  ;;  %3378 = vmatpush3.bf16.msra.mxu1 %v3506_v9  ;;  %3220 = vmatpush3.bf16.msra.mxu0 %v3506_v9 }
 0x2e6   :  { %1636 = vst.msk [vmem:[#allocation3 + $0x158] sm:$0xff] %vm818_vm2, %v1620_v28  ;;  %v5558_v48 = vld [vmem:[#allocation109_spill] sm:$0xff]  ;;  %v5560_v63 = vld [vmem:[#allocation34_spill] sm:$0xff] }
 0x2e7   :  { %1292 = vrot.lane.b32.xlu1 %v1256_v13, %s3557_s20  ;;  %v4818_v18 = vld [vmem:[#allocation2 + $0x59] sm:$0xff]  ;;  %v1259_v13 = vmul.f32 %v5560_v63, %v1179_v35  ;;  %v5561_v43 = vld [vmem:[#allocation65_spill] sm:$0xff] }
 0x2e8   :  { %2108 = vrot.lane.b32.xlu0 %v2073_v57, %s3555_s6  ;;  %v4820_v39 = vld [vmem:[#allocation2 + $0x71] sm:$0xff]  ;;  %v4822_v56 = vld [vmem:[#allocation2 + $0x79] sm:$0xff]  ;;  %v2256_v29 = vmul.f32 %v5553_v32, %v4818_v18  ;;  %v1724_v28 = vmul.f32 %v4606_v25, %v5561_v43 }
 0x2e9   :  { %v2259_v7 = vmul.f32 %v5554_v33, %v4820_v39  ;;  %v2260_v42 = vmul.f32 %v5555_v23, %v4822_v56  ;;  %v4833_v1 = vld [vmem:[#allocation2 + $0x7f] sm:$0xff]  ;;  %v1820_v8 = vld [vmem:[#allocation2 + $0x37] sm:$0xff] }
 0x2ea   :  { %v964_v0 = vmul.f32 %v5557_v55, %v4833_v1  ;;  %2272 = vst.msk [vmem:[#allocation3 + $0x100] sm:$0xff] %vm818_vm2, %v2256_v29  ;;  %v4854_v5 = vld [vmem:[#allocation2 + $0xdf] sm:$0xff]  ;;  %v4858_v32 = vld [vmem:[#allocation2 + $0x77] sm:$0xff]  ;;  %v5565_v55 = vld [vmem:[#allocation36_spill] sm:$0xff] }
 0x2eb   :  { %2275 = vst.msk [vmem:[#allocation3 + $0x148] sm:$0xff] %vm818_vm2, %v2259_v7  ;;  %2276 = vst.msk [vmem:[#allocation3 + $0x160] sm:$0xff] %vm818_vm2, %v2260_v42  ;;  %1469 = vrot.lane.b32.xlu1 %v1433_v62, %s3555_s6  ;;  %v4842_v12 = vld [vmem:[#allocation2 + $0x61] sm:$0xff]  ;;  %v4844_v37 = vld [vmem:[#allocation2 + $0x69] sm:$0xff] }
 0x2ec   :  { %1123 = vrot.lane.b32.xlu0 %v1083_v40, %s3556_s19  ;;  %980 = vst.msk [vmem:[#allocation3 + $0x18] sm:$0xff] %vm818_vm2, %v964_v0  ;;  %v2257_v36 = vmul.f32 %v5558_v48, %v4842_v12  ;;  %v2258_v57 = vmul.f32 %v5559_v58, %v4844_v37  ;;  %v4856_v62 = vld [vmem:[#allocation2 + $0x78] sm:$0xff]  ;;  %v4864_v9 = vld [vmem:[#allocation2 + $0x68] sm:$0xff]  ;;  %v4870_v33 = vld [vmem:[#allocation2 + $0x60] sm:$0xff]  ;;  %v976_v0 = vmul.f32 %v4854_v5, %v5565_v55 }
 0x2ed   :  { %v4866_v29 = vld [vmem:[#allocation2 + $0xe7] sm:$0xff]  ;;  %v4868_v25 = vld [vmem:[#allocation2 + $0xef] sm:$0xff]  ;;  %v5564_v40 = vld [vmem:[#allocation38_spill] sm:$0xff] }
 0x2ee   :  { %2273 = vst.msk [vmem:[#allocation3 + $0x118] sm:$0xff] %vm818_vm2, %v2257_v36  ;;  %2274 = vst.msk [vmem:[#allocation3 + $0x130] sm:$0xff] %vm818_vm2, %v2258_v57  ;;  %v5562_v7 = vld [vmem:[#allocation39_spill] sm:$0xff]  ;;  %v5563_v42 = vld [vmem:[#allocation32_spill] sm:$0xff]  ;;  %v978_v35 = vmul.f32 %v4868_v25, %v5564_v40 }
 0x2ef   :  { %1762 = vrot.lane.b32.xlu1 %v1724_v28, %s3556_s19  ;;  %v1436_v23 = vmul.f32 %v5562_v7, %v4637_v3  ;;  %v1900_v45 = vmul.f32 %v5563_v42, %v1820_v8  ;;  %v1001_v48 = vld [vmem:[#allocation2 + $0xa8] sm:$0xff]  ;;  %v5567_v57 = vld [vmem:[#allocation10_spill] sm:$0xff]  ;;  %v5569_v28 = vld [vmem:[#allocation103_spill] sm:$0xff]  ;;  %992 = vst.msk [vmem:[#allocation3 + $0x138] sm:$0xff] %vm818_vm2, %v976_v0 }
 0x2f0   :  { %1298 = vrot.lane.b32.xlu0 %v1259_v13, %s3557_s20  ;;  %v5566_v36 = vld [vmem:[#allocation20_spill] sm:$0xff]  ;;  %v977_v63 = vmul.f32 %v4866_v29, %v5567_v57  ;;  %v5568_v13 = vld [vmem:[#allocation111_spill] sm:$0xff]  ;;  %v1619_v3 = vmul.f32 %v4864_v9, %v5569_v28  ;;  %994 = vst.msk [vmem:[#allocation3 + $0x168] sm:$0xff] %vm818_vm2, %v978_v35  ;;  %v5571_v42 = vld [vmem:[#allocation89_spill] sm:$0xff] }
 0x2f1   :  { %v963_v58 = vmul.f32 %v4858_v32, %v5566_v36  ;;  %v1621_v43 = vmul.f32 %v5568_v13, %v4856_v62  ;;  %v5570_v8 = vld [vmem:[#allocation108_spill] sm:$0xff]  ;;  %v5572_v40 = vld [vmem:[#allocation42_spill] sm:$0xff]  ;;  %v5573_v35 = vld [vmem:[#allocation63_spill] sm:$0xff] }
 0x2f2   :  { %v1618_v7 = vmul.f32 %v4870_v33, %v5570_v8  ;;  %993 = vst.msk [vmem:[#allocation3 + $0x150] sm:$0xff] %vm818_vm2, %v977_v63  ;;  %1635 = vst.msk [vmem:[#allocation3 + $0x140] sm:$0xff] %vm818_vm2, %v1619_v3  ;;  %v1723_v55 = vmul.f32 %v4622_v52, %v5573_v35  ;;  %v5574_v0 = vld [vmem:[#allocation23_spill] sm:$0xff]  ;;  %v5576_v63 = vld [vmem:[#allocation24_spill] sm:$0xff] }
 0x2f3   :  { %1938 = vrot.lane.b32.xlu1 %v1900_v45, %s3557_s20  ;;  %979 = vst.msk [vmem:[#allocation3] sm:$0xff] %vm818_vm2, %v963_v58  ;;  %1637 = vst.msk [vmem:[#allocation3 + $0x170] sm:$0xff] %vm818_vm2, %v1621_v43  ;;  %v1081_v45 = vmul.f32 %v5572_v40, %v1001_v48  ;;  %v1722_v36 = vmul.f32 %v4620_v15, %v5574_v0  ;;  %v1819_v58 = vld [vmem:[#allocation2 + $0x2f] sm:$0xff]  ;;  %v1818_v57 = vld [vmem:[#allocation2 + $0x27] sm:$0xff] }
 0x2f4   :  { %1475 = vrot.lane.b32.xlu0 %v1436_v23, %s3555_s6  ;;  %v2076_v23 = vmul.f32 %v5571_v42, %v4639_v31  ;;  %1634 = vst.msk [vmem:[#allocation3 + $0x128] sm:$0xff] %vm818_vm2, %v1618_v7  ;;  %v5575_v31 = vld [vmem:[#allocation26_spill] sm:$0xff]  ;;  %v1898_v13 = vmul.f32 %v5576_v63, %v1818_v57  ;;  %v1177_v43 = vld [vmem:[#allocation2 + $0xa1] sm:$0xff]  ;;  %v1178_v8 = vld [vmem:[#allocation2 + $0xa9] sm:$0xff] }
 0x2f5   :  { %v1899_v48 = vmul.f32 %v5575_v31, %v1819_v58  ;;  %v5577_v28 = vld [vmem:[#allocation27_spill] sm:$0xff]  ;;  %v5578_v3 = vld [vmem:[#allocation28_spill] sm:$0xff]  ;;  %v5579_v7 = vld [vmem:[#allocation30_spill] sm:$0xff] }
 0x2f6   :  { %v1257_v52 = vmul.f32 %v5577_v28, %v1177_v43  ;;  %v2074_v15 = vmul.f32 %v5578_v3, %v4641_v2  ;;  %v1434_v42 = vmul.f32 %v5579_v7, %v4643_v53  ;;  %v1006_v0 = vld [vmem:[#allocation2 + $0xd0] sm:$0xff]  ;;  %v5584_v58 = vld [vmem:[#allocation15_spill] sm:$0xff] }
 0x2f7   :  { %2114 = vrot.lane.b32.xlu1 %v2076_v23, %s3555_s6  ;;  %v5580_v23 = vld [vmem:[#allocation33_spill] sm:$0xff]  ;;  %v1086_v57 = vmul.f32 %v5584_v58, %v1006_v0  ;;  %v1821_v31 = vld [vmem:[#allocation2 + $0x3f] sm:$0xff]  ;;  %v1005_v58 = vld [vmem:[#allocation2 + $0xc8] sm:$0xff] }
 0x2f8   :  { %1119 = vrot.lane.b32.xlu0 %v1081_v45, %s3556_s19  ;;  %v1258_v40 = vmul.f32 %v5580_v23, %v1178_v8  ;;  %v5581_v45 = vld [vmem:[#allocation52_spill] sm:$0xff]  ;;  %v1180_v43 = vld [vmem:[#allocation2 + $0xb9] sm:$0xff]  ;;  %v5587_v28 = vld [vmem:[#allocation37_spill] sm:$0xff] }
 0x2f9   :  { %v2079_v35 = vmul.f32 %v5581_v45, %v4691_v24  ;;  %v5585_v24 = vld [vmem:[#allocation77_spill] sm:$0xff]  ;;  %v5589_v8 = vld [vmem:[#allocation54_spill] sm:$0xff]  ;;  %v5591_v45 = vld [vmem:[#allocation59_spill] sm:$0xff] }
 0x2fa   :  { %v1901_v63 = vmul.f32 %v5585_v24, %v1821_v31  ;;  %v1437_v7 = vmul.f32 %v5589_v8, %v4724_v47  ;;  %v5593_v0 = vld [vmem:[#allocation66_spill] sm:$0xff]  ;;  %v5600_v8 = vld [vmem:[#allocation47_spill] sm:$0xff] }
 0x2fb   :  { %1758 = vrot.lane.b32.xlu1 %v1722_v36, %s3556_s19  ;;  %v5583_v36 = vld [vmem:[#allocation31_spill] sm:$0xff]  ;;  %v1440_v47 = vmul.f32 %v5593_v0, %v4747_v30  ;;  %v5603_v0 = vld [vmem:[#allocation96_spill] sm:$0xff] }
 0x2fc   :  { %1760 = vrot.lane.b32.xlu0 %v1723_v55, %s3556_s19  ;;  %v5582_v55 = vld [vmem:[#allocation95_spill] sm:$0xff]  ;;  %v1725_v53 = vmul.f32 %v4709_v27, %v5583_v36  ;;  %v2077_v27 = vmul.f32 %v5587_v28, %v4745_v21  ;;  %v1823_v28 = vld [vmem:[#allocation2 + $0x4f] sm:$0xff] }
 0x2fd   :  { %v1435_v2 = vmul.f32 %v5582_v55, %v4652_v16  ;;  %v5592_v21 = vld [vmem:[#allocation55_spill] sm:$0xff] }
 0x2fe   :  { %v1728_v55 = vmul.f32 %v4711_v46, %v5592_v21  ;;  %v5594_v36 = vld [vmem:[#allocation83_spill] sm:$0xff]  ;;  %v1182_v21 = vld [vmem:[#allocation2 + $0xc9] sm:$0xff] }
 0x2ff   :  { %1934 = vrot.lane.b32.xlu1 %v1898_v13, %s3557_s20  ;;  %v5586_v13 = vld [vmem:[#allocation14_spill] sm:$0xff] }
 0x300   :  { %1936 = vrot.lane.b32.xlu0 %v1899_v48, %s3557_s20  ;;  %v1004_v48 = vld [vmem:[#allocation2 + $0xc0] sm:$0xff] }
 0x301   :  { %v1084_v16 = vmul.f32 %v5586_v13, %v1004_v48  ;;  %v5596_v48 = vld [vmem:[#allocation46_spill] sm:$0xff] }
 0x302   :  { %v1085_v46 = vmul.f32 %v5596_v48, %v1005_v58  ;;  %v5606_v48 = vld [vmem:[#allocation97_spill] sm:$0xff] }
 0x303   :  { %2110 = vrot.lane.b32.xlu1 %v2074_v15, %s3555_s6  ;;  %v1007_v15 = vld [vmem:[#allocation2 + $0xd8] sm:$0xff] }
 0x304   :  { %1294 = vrot.lane.b32.xlu0 %v1257_v52, %s3557_s20  ;;  %v5588_v52 = vld [vmem:[#allocation48_spill] sm:$0xff] }
 0x305   :  { %v1260_v3 = vmul.f32 %v5588_v52, %v1180_v43 }
 0x307   :  { %1296 = vrot.lane.b32.xlu1 %v1258_v40, %s3557_s20  ;;  %v1183_v40 = vld [vmem:[#allocation2 + $0xd1] sm:$0xff] }
 0x308   :  { %1471 = vrot.lane.b32.xlu0 %v1434_v42, %s3555_s6  ;;  %v5590_v42 = vld [vmem:[#allocation49_spill] sm:$0xff] }
 0x309   :  { %v1087_v23 = vmul.f32 %v5590_v42, %v1007_v15 }
 0x30b   :  { %1473 = vrot.lane.b32.xlu1 %v1435_v2, %s3555_s6  ;;  %v1824_v2 = vld [vmem:[#allocation2 + $0x57] sm:$0xff] }
 0x30c   :  { %2120 = vrot.lane.b32.xlu0 %v2079_v35, %s3555_s6  ;;  %v1263_v35 = vmul.f32 %v5591_v45, %v1183_v40  ;;  %v5602_v45 = vld [vmem:[#allocation91_spill] sm:$0xff] }
 0x30f   :  { %1129 = vrot.lane.b32.xlu1 %v1086_v57, %s3556_s19  ;;  %v5595_v57 = vld [vmem:[#allocation62_spill] sm:$0xff] }
 0x310   :  { %1764 = vrot.lane.b32.xlu0 %v1725_v53, %s3556_s19  ;;  %v1904_v53 = vmul.f32 %v5594_v36, %v1824_v2  ;;  %v2080_v31 = vmul.f32 %v5595_v57, %v4749_v61  ;;  %v1822_v61 = vld [vmem:[#allocation2 + $0x47] sm:$0xff] }
 0x311   :  { %v5604_v36 = vld [vmem:[#allocation60_spill] sm:$0xff] }
 0x312   :  { %v5605_v57 = vld [vmem:[#allocation92_spill] sm:$0xff] }
 0x313   :  { %1125 = vrot.lane.b32.xlu1 %v1084_v16, %s3556_s19  ;;  %v5598_v16 = vld [vmem:[#allocation69_spill] sm:$0xff] }
 0x314   :  { %1940 = vrot.lane.b32.xlu0 %v1901_v63, %s3557_s20  ;;  %v5597_v63 = vld [vmem:[#allocation45_spill] sm:$0xff]  ;;  %v1726_v43 = vmul.f32 %v4730_v60, %v5598_v16 }
 0x315   :  { %v1727_v13 = vmul.f32 %v4732_v38, %v5597_v63  ;;  %v1181_v38 = vld [vmem:[#allocation2 + $0xc1] sm:$0xff] }
 0x317   :  { %1300 = vrot.lane.b32.xlu1 %v1260_v3, %s3557_s20  ;;  %v5599_v3 = vld [vmem:[#allocation81_spill] sm:$0xff] }
 0x318   :  { %2116 = vrot.lane.b32.xlu0 %v2077_v27, %s3555_s6  ;;  %v1903_v15 = vmul.f32 %v5599_v3, %v1823_v28 }
 0x31b   :  { %1477 = vrot.lane.b32.xlu1 %v1437_v7, %s3555_s6  ;;  %v1902_v7 = vmul.f32 %v5600_v8, %v1822_v61 }
 0x31c   :  { %1131 = vrot.lane.b32.xlu0 %v1087_v23, %s3556_s19  ;;  %v5601_v23 = vld [vmem:[#allocation50_spill] sm:$0xff] }
 0x31d   :  { %v1261_v40 = vmul.f32 %v5601_v23, %v1181_v38  ;;  %v5612_v23 = vld [vmem:[#allocation61_spill] sm:$0xff] }
 0x31f   :  { %1770 = vrot.lane.b32.xlu1 %v1728_v55, %s3556_s19 }
 0x320   :  { %1306 = vrot.lane.b32.xlu0 %v1263_v35, %s3557_s20  ;;  %v2078_v35 = vmul.f32 %v5602_v45, %v4751_v44 }
 0x323   :  { %1946 = vrot.lane.b32.xlu1 %v1904_v53, %s3557_s20  ;;  %v1262_v53 = vmul.f32 %v5604_v36, %v1182_v21 }
 0x324   :  { %1483 = vrot.lane.b32.xlu0 %v1440_v47, %s3555_s6  ;;  %v1438_v47 = vmul.f32 %v5603_v0, %v4753_v49  ;;  %v1010_v49 = vld [vmem:[#allocation2 + $0xf0] sm:$0xff] }
 0x327   :  { %2122 = vrot.lane.b32.xlu1 %v2080_v31, %s3555_s6  ;;  %v2083_v31 = vmul.f32 %v5605_v57, %v4800_v11  ;;  %v1008_v11 = vld [vmem:[#allocation2 + $0xe0] sm:$0xff] }
 0x328   :  { %1127 = vrot.lane.b32.xlu0 %v1085_v46, %s3556_s19  ;;  %v4963_v24 = vpop.permute.xlu0 %2104  ;;  %v1439_v46 = vmul.f32 %v5606_v48, %v4761_v17  ;;  %v1825_v17 = vld [vmem:[#allocation2 + $0x5f] sm:$0xff] }
 0x329   :  { %v1114_v30 = vpop.permute.xlu1 %1113 }
 0x32a   :  { %1159 = vst.msk [vmem:[#allocation3 + $0x48] sm:$0xff] %vm1155_vm3, %v1114_v30 }
 0x32b   :  { %1766 = vrot.lane.b32.xlu1 %v1726_v43, %s3556_s19  ;;  %v5608_v43 = vld [vmem:[#allocation17_spill] sm:$0xff] }
 0x32c   :  { %1768 = vrot.lane.b32.xlu0 %v1727_v13, %s3556_s19  ;;  %v5607_v13 = vld [vmem:[#allocation57_spill] sm:$0xff]  ;;  %v1090_v28 = vmul.f32 %v5608_v43, %v1010_v49  ;;  %v5620_v43 = vld [vmem:[#allocation51_spill] sm:$0xff] }
 0x32d   :  { %v1110_v52 = vpop.permute.xlu1 %1109  ;;  %v1729_v16 = vmul.f32 %v4818_v18, %v5607_v13  ;;  %v1184_v18 = vld [vmem:[#allocation2 + $0xd9] sm:$0xff] }
 0x32e   :  { %v1116_v27 = vpop.permute.xlu0 %1115  ;;  %1157 = vst.msk [vmem:[#allocation3 + $0x18] sm:$0xff] %vm1155_vm3, %v1110_v52  ;;  %v5609_v52 = vld [vmem:[#allocation58_spill] sm:$0xff] }
 0x32f   :  { %1160 = vst.msk [vmem:[#allocation3 + $0x60] sm:$0xff] %vm1155_vm3, %v1116_v27  ;;  %1942 = vrot.lane.b32.xlu1 %v1902_v7, %s3557_s20  ;;  %v1905_v3 = vmul.f32 %v5609_v52, %v1825_v17  ;;  %v5619_v13 = vld [vmem:[#allocation78_spill] sm:$0xff]  ;;  %v5621_v52 = vld [vmem:[#allocation85_spill] sm:$0xff] }
 0x330   :  { %1944 = vrot.lane.b32.xlu0 %v1903_v15, %s3557_s20  ;;  %v5610_v15 = vld [vmem:[#allocation16_spill] sm:$0xff] }
 0x331   :  { %v1755_v42 = vpop.permute.xlu1 %1754  ;;  %v1088_v8 = vmul.f32 %v5610_v15, %v1008_v11 }
 0x332   :  { %v1291_v60 = vpop.permute.xlu0 %1290  ;;  %1800 = vst.msk [vmem:[#allocation3 + $0x38] sm:$0xff] %vm1155_vm3, %v1755_v42 }
 0x333   :  { %1336 = vst.msk [vmem:[#allocation3 + $0x48] sm:$0xff] %vm1332_vm4, %v1291_v60  ;;  %2118 = vrot.lane.b32.xlu1 %v2078_v35, %s3555_s6  ;;  %v5611_v60 = vld [vmem:[#allocation64_spill] sm:$0xff]  ;;  %v5613_v35 = vld [vmem:[#allocation75_spill] sm:$0xff] }
 0x334   :  { %1302 = vrot.lane.b32.xlu0 %v1261_v40, %s3557_s20  ;;  %v2081_v42 = vmul.f32 %v5611_v60, %v4870_v33  ;;  %v1264_v40 = vmul.f32 %v5612_v23, %v1184_v18  ;;  %v1441_v21 = vmul.f32 %v5613_v35, %v4854_v5  ;;  %v5625_v35 = vld [vmem:[#allocation72_spill] sm:$0xff] }
 0x335   :  { %v1931_v2 = vpop.permute.xlu1 %1930 }
 0x336   :  { %v1468_v55 = vpop.permute.xlu0 %1467  ;;  %1976 = vst.msk [vmem:[#allocation3 + $0x38] sm:$0xff] %vm1332_vm4, %v1931_v2 }
 0x337   :  { %1513 = vst.msk [vmem:[#allocation3 + $0x48] sm:$0xff] %vm1509_vm5, %v1468_v55  ;;  %1304 = vrot.lane.b32.xlu1 %v1262_v53, %s3557_s20  ;;  %v5614_v55 = vld [vmem:[#allocation11_spill] sm:$0xff]  ;;  %v5616_v53 = vld [vmem:[#allocation73_spill] sm:$0xff] }
 0x338   :  { %1479 = vrot.lane.b32.xlu0 %v1438_v47, %s3555_s6  ;;  %v1075_v2 = vmul.f32 %v5614_v55, %v4856_v62  ;;  %v5615_v47 = vld [vmem:[#allocation53_spill] sm:$0xff]  ;;  %v1732_v5 = vmul.f32 %v4820_v39, %v5616_v53  ;;  %v1009_v39 = vld [vmem:[#allocation2 + $0xe8] sm:$0xff] }
 0x339   :  { %v2107_v58 = vpop.permute.xlu1 %2106  ;;  %v1252_v36 = vmul.f32 %v4822_v56, %v5615_v47  ;;  %v5626_v55 = vld [vmem:[#allocation68_spill] sm:$0xff] }
 0x33a   :  { %v1112_v44 = vpop.permute.xlu0 %1111  ;;  %2152 = vst.msk [vmem:[#allocation3 + $0x38] sm:$0xff] %vm1509_vm5, %v2107_v58 }
 0x33b   :  { %1158 = vst.msk [vmem:[#allocation3 + $0x30] sm:$0xff] %vm1155_vm3, %v1112_v44  ;;  %1481 = vrot.lane.b32.xlu1 %v1439_v46, %s3555_s6  ;;  %v5042_v44 = vld [vmem:[%s5391_s3 + $0x88] sm:$0xff]  }
 0x33c   :  { %2128 = vrot.lane.b32.xlu0 %v2083_v31, %s3555_s6  ;;  %v5617_v31 = vld [vmem:[#allocation41_spill] sm:$0xff]  ;;  %v5618_v46 = vld [vmem:[#allocation80_spill] sm:$0xff]  ;;  %3319 = vmatprep.subr.bf16.mxu0 %v5042_v44 }
 0x33d   :  { %v1289_v63 = vpop.permute.xlu1 %1288  ;;  %v1429_v48 = vmul.f32 %v5617_v31, %v4833_v1  ;;  %v1908_v49 = vmul.f32 %v5618_v46, %v4858_v32 }
 0x33e   :  { %v1753_v30 = vpop.permute.xlu0 %1752  ;;  %1335 = vst.msk [vmem:[#allocation3 + $0x30] sm:$0xff] %vm1332_vm4, %v1289_v63 }
 0x33f   :  { %1799 = vst.msk [vmem:[#allocation3 + $0x20] sm:$0xff] %vm1155_vm3, %v1753_v30  ;;  %1137 = vrot.lane.b32.xlu1 %v1090_v28, %s3556_s19  ;;  %v1089_v28 = vmul.f32 %v5620_v43, %v1009_v39 }
 0x340   :  { %1772 = vrot.lane.b32.xlu0 %v1729_v16, %s3556_s19  ;;  %v1733_v16 = vmul.f32 %v4822_v56, %v5619_v13  ;;  %v5622_v56 = vld [vmem:[#allocation71_spill] sm:$0xff] }
 0x341   :  { %v1466_v27 = vpop.permute.xlu1 %1465  ;;  %v1731_v15 = vmul.f32 %v4844_v37, %v5622_v56  ;;  %v1826_v37 = vld [vmem:[#allocation2 + $0x67] sm:$0xff] }
 0x342   :  { %v1929_v61 = vpop.permute.xlu0 %1928  ;;  %1512 = vst.msk [vmem:[#allocation3 + $0x30] sm:$0xff] %vm1509_vm5, %v1466_v27  ;;  %v5633_v56 = vld [vmem:[#allocation88_spill] sm:$0xff] }
 0x343   :  { %1975 = vst.msk [vmem:[#allocation3 + $0x20] sm:$0xff] %vm1332_vm4, %v1929_v61  ;;  %1133 = vrot.lane.b32.xlu1 %v1088_v8, %s3556_s19  ;;  %v1827_v8 = vld [vmem:[#allocation2 + $0x6f] sm:$0xff] }
 0x344   :  { %2151 = vst.msk [vmem:[#allocation3 + $0x20] sm:$0xff] %vm1509_vm5, %v4963_v24  ;;  %1948 = vrot.lane.b32.xlu0 %v1905_v3, %s3557_s20  ;;  %v1909_v3 = vmul.f32 %v5621_v52, %v4833_v1  ;;  %v1185_v1 = vld [vmem:[#allocation2 + $0xe1] sm:$0xff] }
 0x345   :  { %v1751_v38 = vpop.permute.xlu1 %1750 }
 0x346   :  { %v1287_v7 = vpop.permute.xlu0 %1286  ;;  %1798 = vst.msk [vmem:[#allocation3 + $0x8] sm:$0xff] %vm1155_vm3, %v1751_v38  ;;  %v5623_v38 = vld [vmem:[#allocation70_spill] sm:$0xff] }
 0x347   :  { %1334 = vst.msk [vmem:[#allocation3 + $0x18] sm:$0xff] %vm1332_vm4, %v1287_v7  ;;  %1308 = vrot.lane.b32.xlu1 %v1264_v40, %s3557_s20  ;;  %v1907_v60 = vmul.f32 %v5623_v38, %v1827_v8  ;;  %v5634_v8 = vld [vmem:[#allocation98_spill] sm:$0xff] }
 0x348   :  { %2124 = vrot.lane.b32.xlu0 %v2081_v42, %s3555_s6  ;;  %v5624_v42 = vld [vmem:[#allocation67_spill] sm:$0xff] }
 0x349   :  { %v1927_v45 = vpop.permute.xlu1 %1926  ;;  %v1730_v23 = vmul.f32 %v4842_v12, %v5624_v42  ;;  %v2284_v40 = vld [vmem:[#allocation3 + $0x30] sm:$0xff] }
 0x34a   :  { %v1464_v24 = vpop.permute.xlu0 %1463  ;;  %1974 = vst.msk [vmem:[#allocation3 + $0x8] sm:$0xff] %vm1332_vm4, %v1927_v45 }
 0x34b   :  { %1511 = vst.msk [vmem:[#allocation3 + $0x18] sm:$0xff] %vm1509_vm5, %v1464_v24  ;;  %1485 = vrot.lane.b32.xlu1 %v1441_v21, %s3555_s6  ;;  %v2282_v32 = vld [vmem:[#allocation3 + $0x20] sm:$0xff]  ;;  %v1265_v21 = vmul.f32 %v5625_v35, %v1185_v1 }
 0x34c   :  { %1107 = vrot.lane.b32.xlu0 %v1075_v2, %s3556_s19  ;;  %v1906_v2 = vmul.f32 %v5626_v55, %v1826_v37 }
 0x34d   :  { %v2103_v0 = vpop.permute.xlu1 %2102 }
 0x34e   :  { %v5030_v33 = vpop.permute.xlu0 %2112  ;;  %2150 = vst.msk [vmem:[#allocation3 + $0x8] sm:$0xff] %vm1509_vm5, %v2103_v0  ;;  %v2285_v0 = vld [vmem:[#allocation3 + $0x38] sm:$0xff] }
 0x34f   :  { %1284 = vrot.lane.b32.xlu1 %v1252_v36, %s3557_s20  ;;  %v2287_v36 = vld [vmem:[#allocation3 + $0x48] sm:$0xff] }
 0x350   :  { %1778 = vrot.lane.b32.xlu0 %v1732_v5, %s3556_s19  ;;  %v2329_v53 = vpack.c.bf16 %v2287_v36, %v2284_v40 }
 0x351   :  { %v1122_v57 = vpop.permute.xlu1 %1121 }
 0x352   :  { %v1757_v58 = vpop.permute.xlu0 %1756  ;;  %1163 = vst.msk [vmem:[#allocation3 + $0xa8] sm:$0xff] %vm1155_vm3, %v1122_v57  ;;  %v5627_v57 = vld [vmem:[#allocation93_spill] sm:$0xff] }
 0x353   :  { %1801 = vst.msk [vmem:[#allocation3 + $0x50] sm:$0xff] %vm1155_vm3, %v1757_v58  ;;  %1461 = vrot.lane.b32.xlu1 %v1429_v48, %s3555_s6  ;;  %v2084_v31 = vmul.f32 %v5627_v57, %v4856_v62  ;;  %v5628_v48 = vld [vmem:[#allocation74_spill] sm:$0xff]  ;;  %v1186_v62 = vld [vmem:[#allocation2 + $0xe9] sm:$0xff] }
 0x354   :  { %1954 = vrot.lane.b32.xlu0 %v1908_v49, %s3557_s20  ;;  %v2082_v46 = vmul.f32 %v5628_v48, %v4864_v9  ;;  %v1187_v49 = vld [vmem:[#allocation2 + $0xf1] sm:$0xff]  ;;  %v2005_v9 = vld [vmem:[#allocation2 + $0x80] sm:$0xff] }
 0x355   :  { %v1118_v63 = vpop.permute.xlu1 %1117  ;;  %v2279_v17 = vld [vmem:[#allocation3 + $0x8] sm:$0xff] }
 0x356   :  { %v1933_v30 = vpop.permute.xlu0 %1932  ;;  %1161 = vst.msk [vmem:[#allocation3 + $0x78] sm:$0xff] %vm1155_vm3, %v1118_v63  ;;  %v2327_v11 = vpack.c.bf16 %v2282_v32, %v2279_v17  ;;  %v5629_v63 = vld [vmem:[#allocation76_spill] sm:$0xff]  ;;  %v5631_v32 = vld [vmem:[#allocation82_spill] sm:$0xff] }
 0x357   :  { %1977 = vst.msk [vmem:[#allocation3 + $0x50] sm:$0xff] %vm1332_vm4, %v1933_v30  ;;  %1780 = vrot.lane.b32.xlu1 %v1733_v16, %s3556_s19  ;;  %v1442_v13 = vmul.f32 %v5629_v63, %v4866_v29  ;;  %v5630_v16 = vld [vmem:[#allocation84_spill] sm:$0xff]  ;;  %v1364_v29 = vld [vmem:[#allocation2 + $0xf7] sm:$0xff] }
 0x358   :  { %1135 = vrot.lane.b32.xlu0 %v1089_v28, %s3556_s19  ;;  %2550 = vmatprep.mubr.bf16.mxu0 %v2327_v11  ;;  %v1267_v43 = vmul.f32 %v5630_v16, %v1187_v49  ;;  %v1266_v11 = vmul.f32 %v5631_v32, %v1186_v62 }
 0x359   :  { %v1293_v27 = vpop.permute.xlu1 %1292 }
 0x35a   :  { %v2109_v61 = vpop.permute.xlu0 %2108  ;;  %1337 = vst.msk [vmem:[#allocation3 + $0x60] sm:$0xff] %vm1332_vm4, %v1293_v27 }
 0x35b   :  { %2153 = vst.msk [vmem:[#allocation3 + $0x50] sm:$0xff] %vm1509_vm5, %v2109_v61  ;;  %1956 = vrot.lane.b32.xlu1 %v1909_v3, %s3557_s20  ;;  %v5632_v61 = vld [vmem:[#allocation86_spill] sm:$0xff] }
 0x35c   :  { %1776 = vrot.lane.b32.xlu0 %v1731_v15, %s3556_s19  ;;  %v2085_v27 = vmul.f32 %v5632_v61, %v2005_v9  ;;  %v1443_v15 = vmul.f32 %v5633_v56, %v4868_v25 }
 0x35d   :  { %v1470_v7 = vpop.permute.xlu1 %1469 }
 0x35e   :  { %v1124_v18 = vpop.permute.xlu0 %1123  ;;  %1514 = vst.msk [vmem:[#allocation3 + $0x60] sm:$0xff] %vm1509_vm5, %v1470_v7 }
 0x35f   :  { %1164 = vst.msk [vmem:[#allocation3 + $0xc0] sm:$0xff] %vm1155_vm3, %v1124_v18  ;;  %1774 = vrot.lane.b32.xlu1 %v1730_v23, %s3556_s19  ;;  %v1444_v18 = vmul.f32 %v5634_v8, %v1364_v29 }
 0x360   :  { %1952 = vrot.lane.b32.xlu0 %v1907_v60, %s3557_s20 }
 0x361   :  { %v1763_v45 = vpop.permute.xlu1 %1762 }
 0x362   :  { %v1299_v24 = vpop.permute.xlu0 %1298  ;;  %v2288_v47 = vld [vmem:[#allocation3 + $0x50] sm:$0xff]  ;;  %1804 = vst.msk [vmem:[#allocation3 + $0x98] sm:$0xff] %vm1155_vm3, %v1763_v45 }
 0x363   :  { %1340 = vst.msk [vmem:[#allocation3 + $0xa8] sm:$0xff] %vm1332_vm4, %v1299_v24  ;;  %v2330_v12 = vpack.c.bf16 %v2288_v47, %v2285_v0  ;;  %1950 = vrot.lane.b32.xlu1 %v1906_v2, %s3557_s20 }
 0x364   :  { %1310 = vrot.lane.b32.xlu0 %v1265_v21, %s3557_s20 }
 0x365   :  { %2558 = vmatprep.mubr.bf16.mxu1 %v2330_v12  ;;  %v1939_v58 = vpop.permute.xlu1 %1938  ;;  %v2290_v45 = vld [vmem:[#allocation3 + $0x60] sm:$0xff] }
 0x366   :  { %v1476_v5 = vpop.permute.xlu0 %1475  ;;  %2559 = vmatmul.mubr.bf16.vlgmr.msra.gmra.mxu1 %v2329_v53  ;;  %1980 = vst.msk [vmem:[#allocation3 + $0x98] sm:$0xff] %vm1332_vm4, %v1939_v58 }
 0x367   :  { %1517 = vst.msk [vmem:[#allocation3 + $0xa8] sm:$0xff] %vm1509_vm5, %v1476_v5  ;;  %2126 = vrot.lane.b32.xlu1 %v2082_v46, %s3555_s6 }
 0x368   :  { %2130 = vrot.lane.b32.xlu0 %v2084_v31, %s3555_s6 }
 0x369   :  { %v2115_v30 = vpop.permute.xlu1 %2114 }
 0x36a   :  { %v1120_v39 = vpop.permute.xlu0 %1119  ;;  %2156 = vst.msk [vmem:[#allocation3 + $0x98] sm:$0xff] %vm1509_vm5, %v2115_v30 }
 0x36b   :  { %1162 = vst.msk [vmem:[#allocation3 + $0x90] sm:$0xff] %vm1155_vm3, %v1120_v39  ;;  %1314 = vrot.lane.b32.xlu1 %v1267_v43, %s3557_s20 }
 0x36c   :  { %1487 = vrot.lane.b32.xlu0 %v1442_v13, %s3555_s6 }
 0x36d   :  { %v1759_v17 = vpop.permute.xlu1 %1758 }
 0x36e   :  { %v1761_v28 = vpop.permute.xlu0 %1760  ;;  %1802 = vst.msk [vmem:[#allocation3 + $0x68] sm:$0xff] %vm1155_vm3, %v1759_v17  ;;  %v2299_v46 = vld [vmem:[#allocation3 + $0xa8] sm:$0xff] }
 0x36f   :  { %1803 = vst.msk [vmem:[#allocation3 + $0x80] sm:$0xff] %vm1155_vm3, %v1761_v28  ;;  %2132 = vrot.lane.b32.xlu1 %v2085_v27, %s3555_s6 }
 0x370   :  { %1312 = vrot.lane.b32.xlu0 %v1266_v11, %s3557_s20 }
 0x371   :  { %v1935_v3 = vpop.permute.xlu1 %1934  ;;  %v2297_v57 = vld [vmem:[#allocation3 + $0x98] sm:$0xff] }
 0x372   :  { %v1937_v52 = vpop.permute.xlu0 %1936  ;;  %1978 = vst.msk [vmem:[#allocation3 + $0x68] sm:$0xff] %vm1332_vm4, %v1935_v3 }
 0x373   :  { %1979 = vst.msk [vmem:[#allocation3 + $0x80] sm:$0xff] %vm1332_vm4, %v1937_v52  ;;  %1491 = vrot.lane.b32.xlu1 %v1444_v18, %s3555_s6 }
 0x374   :  { %2155 = vst.msk [vmem:[#allocation3 + $0x80] sm:$0xff] %vm1509_vm5, %v5030_v33  ;;  %1489 = vrot.lane.b32.xlu0 %v1443_v15, %s3555_s6 }
 0x375   :  { %v2111_v38 = vpop.permute.xlu1 %2110 }
 0x376   :  { %v1295_v7 = vpop.permute.xlu0 %1294  ;;  %2154 = vst.msk [vmem:[#allocation3 + $0x68] sm:$0xff] %vm1509_vm5, %v2111_v38 }
 0x377   :  { %1338 = vst.msk [vmem:[#allocation3 + $0x78] sm:$0xff] %vm1332_vm4, %v1295_v7 }
 0x379   :  { %v1297_v60 = vpop.permute.xlu1 %1296 }
 0x37a   :  { %v1472_v25 = vpop.permute.xlu0 %1471  ;;  %1339 = vst.msk [vmem:[#allocation3 + $0x90] sm:$0xff] %vm1332_vm4, %v1297_v60 }
 0x37b   :  { %1515 = vst.msk [vmem:[#allocation3 + $0x78] sm:$0xff] %vm1509_vm5, %v1472_v25  ;;  %v2294_v33 = vld [vmem:[#allocation3 + $0x80] sm:$0xff] }
 0x37d   :  { %v1474_v23 = vpop.permute.xlu1 %1473  ;;  %v2291_v1 = vld [vmem:[#allocation3 + $0x68] sm:$0xff] }
 0x37e   :  { %v2121_v42 = vpop.permute.xlu0 %2120  ;;  %1516 = vst.msk [vmem:[#allocation3 + $0x90] sm:$0xff] %vm1509_vm5, %v1474_v23  ;;  %v2333_v37 = vpack.c.bf16 %v2294_v33, %v2291_v1 }
 0x380   :  { %2566 = vmatprep.mubr.bf16.mxu1 %v2333_v37 }
 0x381   :  { %v1130_v24 = vpop.permute.xlu1 %1129 }
 0x382   :  { %v1765_v40 = vpop.permute.xlu0 %1764  ;;  %v2293_v35 = vld [vmem:[#allocation3 + $0x78] sm:$0xff]  ;;  %1167 = vst.msk [vmem:[#allocation3 + $0x108] sm:$0xff] %vm1155_vm3, %v1130_v24 }
 0x383   :  { %1805 = vst.msk [vmem:[#allocation3 + $0xb0] sm:$0xff] %vm1155_vm3, %v1765_v40  ;;  %v2332_v21 = vpack.c.bf16 %v2293_v35, %v2290_v45 }
 0x385   :  { %2567 = vmatmul.mubr.bf16.gmra.mxu1 %v2332_v21  ;;  %v1126_v2 = vpop.permute.xlu1 %1125  ;;  %v2296_v53 = vld [vmem:[#allocation3 + $0x90] sm:$0xff] }
 0x386   :  { %v1941_v55 = vpop.permute.xlu0 %1940  ;;  %1165 = vst.msk [vmem:[#allocation3 + $0xd8] sm:$0xff] %vm1155_vm3, %v1126_v2  ;;  %v2335_v49 = vpack.c.bf16 %v2299_v46, %v2296_v53  ;;  %v3508_v46 = vld [vmem:[%s5391_s3 + $0x80] sm:$0xff]  }
 0x387   :  { %1981 = vst.msk [vmem:[#allocation3 + $0xb0] sm:$0xff] %vm1332_vm4, %v1941_v55 }
 0x389   :  { %v1301_v47 = vpop.permute.xlu1 %1300 }
 0x38a   :  { %v2117_v0 = vpop.permute.xlu0 %2116  ;;  %1341 = vst.msk [vmem:[#allocation3 + $0xc0] sm:$0xff] %vm1332_vm4, %v1301_v47 }
 0x38b   :  { %2157 = vst.msk [vmem:[#allocation3 + $0xb0] sm:$0xff] %vm1509_vm5, %v2117_v0 }
 0x38d   :  { %v1478_v36 = vpop.permute.xlu1 %1477 }
 0x38e   :  { %v1132_v12 = vpop.permute.xlu0 %1131  ;;  %1518 = vst.msk [vmem:[#allocation3 + $0xc0] sm:$0xff] %vm1509_vm5, %v1478_v36  ;;  %v2280_v36 = vld [vmem:[#allocation3 + $0x10] sm:$0xff] }
 0x38f   :  { %1168 = vst.msk [vmem:[#allocation3 + $0x120] sm:$0xff] %vm1155_vm3, %v1132_v12 }
 0x391   :  { %v1771_v58 = vpop.permute.xlu1 %1770 }
 0x392   :  { %v1307_v5 = vpop.permute.xlu0 %1306  ;;  %v2300_v31 = vld [vmem:[#allocation3 + $0xb0] sm:$0xff]  ;;  %1808 = vst.msk [vmem:[#allocation3 + $0xf8] sm:$0xff] %vm1155_vm3, %v1771_v58 }
 0x393   :  { %1344 = vst.msk [vmem:[#allocation3 + $0x108] sm:$0xff] %vm1332_vm4, %v1307_v5  ;;  %v2336_v48 = vpack.c.bf16 %v2300_v31, %v2297_v57  ;;  %v2281_v57 = vld [vmem:[#allocation3 + $0x18] sm:$0xff] }
 0x395   :  { %2574 = vmatprep.mubr.bf16.mxu1 %v2336_v48  ;;  %v1947_v30 = vpop.permute.xlu1 %1946  ;;  %v2302_v8 = vld [vmem:[#allocation3 + $0xc0] sm:$0xff]  ;;  %v2283_v48 = vld [vmem:[#allocation3 + $0x28] sm:$0xff] }
 0x396   :  { %v1484_v39 = vpop.permute.xlu0 %1483  ;;  %2575 = vmatmul.mubr.bf16.gmra.mxu1 %v2335_v49  ;;  %1984 = vst.msk [vmem:[#allocation3 + $0xf8] sm:$0xff] %vm1332_vm4, %v1947_v30  ;;  %v2328_v49 = vpack.c.bf16 %v2283_v48, %v2280_v36  ;;  %v3511_v48 = vld [vmem:[%s5392_s4 + $0x8] sm:$0xff]  }
 0x397   :  { %1521 = vst.msk [vmem:[#allocation3 + $0x108] sm:$0xff] %vm1509_vm5, %v1484_v39 }
 0x399   :  { %v2123_v13 = vpop.permute.xlu1 %2122 }
 0x39a   :  { %v1128_v63 = vpop.permute.xlu0 %1127  ;;  %2160 = vst.msk [vmem:[#allocation3 + $0xf8] sm:$0xff] %vm1509_vm5, %v2123_v13  ;;  %v2292_v13 = vld [vmem:[#allocation3 + $0x70] sm:$0xff] }
 0x39b   :  { %1166 = vst.msk [vmem:[#allocation3 + $0xf0] sm:$0xff] %vm1155_vm3, %v1128_v63  ;;  %v2289_v63 = vld [vmem:[#allocation3 + $0x58] sm:$0xff] }
 0x39d   :  { %v1767_v43 = vpop.permute.xlu1 %1766 }
 0x39e   :  { %v1769_v16 = vpop.permute.xlu0 %1768  ;;  %1806 = vst.msk [vmem:[#allocation3 + $0xc8] sm:$0xff] %vm1155_vm3, %v1767_v43  ;;  %v2311_v21 = vld [vmem:[#allocation3 + $0x108] sm:$0xff] }
 0x39f   :  { %1807 = vst.msk [vmem:[#allocation3 + $0xe0] sm:$0xff] %vm1155_vm3, %v1769_v16 }
 0x3a1   :  { %v1943_v9 = vpop.permute.xlu1 %1942  ;;  %v2309_v24 = vld [vmem:[#allocation3 + $0xf8] sm:$0xff] }
 0x3a2   :  { %v1945_v62 = vpop.permute.xlu0 %1944  ;;  %1982 = vst.msk [vmem:[#allocation3 + $0xc8] sm:$0xff] %vm1332_vm4, %v1943_v9  ;;  %v2295_v9 = vld [vmem:[#allocation3 + $0x88] sm:$0xff] }
 0x3a3   :  { %1983 = vst.msk [vmem:[#allocation3 + $0xe0] sm:$0xff] %vm1332_vm4, %v1945_v62  ;;  %v2286_v62 = vld [vmem:[#allocation3 + $0x40] sm:$0xff] }
 0x3a4   :  { %2159 = vst.msk [vmem:[#allocation3 + $0xe0] sm:$0xff] %vm1509_vm5, %v2121_v42 }
 0x3a5   :  { %v2119_v17 = vpop.permute.xlu1 %2118 }
 0x3a6   :  { %v1303_v28 = vpop.permute.xlu0 %1302  ;;  %2158 = vst.msk [vmem:[#allocation3 + $0xc8] sm:$0xff] %vm1509_vm5, %v2119_v17 }
 0x3a7   :  { %1342 = vst.msk [vmem:[#allocation3 + $0xd8] sm:$0xff] %vm1332_vm4, %v1303_v28  ;;  %v2334_v28 = vpack.c.bf16 %v2295_v9, %v2292_v13 }
 0x3a9   :  { %v1305_v11 = vpop.permute.xlu1 %1304 }
 0x3aa   :  { %v1480_v32 = vpop.permute.xlu0 %1479  ;;  %1343 = vst.msk [vmem:[#allocation3 + $0xf0] sm:$0xff] %vm1332_vm4, %v1305_v11  ;;  %v2301_v11 = vld [vmem:[#allocation3 + $0xb8] sm:$0xff] }
 0x3ab   :  { %1519 = vst.msk [vmem:[#allocation3 + $0xd8] sm:$0xff] %vm1509_vm5, %v1480_v32  ;;  %v2306_v52 = vld [vmem:[#allocation3 + $0xe0] sm:$0xff] }
 0x3ad   :  { %v1482_v27 = vpop.permute.xlu1 %1481  ;;  %v2303_v29 = vld [vmem:[#allocation3 + $0xc8] sm:$0xff] }
 0x3ae   :  { %v5139_v61 = vpop.permute.xlu0 %2128  ;;  %1520 = vst.msk [vmem:[#allocation3 + $0xf0] sm:$0xff] %vm1509_vm5, %v1482_v27  ;;  %v2339_v3 = vpack.c.bf16 %v2306_v52, %v2303_v29  ;;  %v3509_v27 = vld [vmem:[%s5392_s4 + $0x18] sm:$0xff]  }
 0x3af   :  { %3339 = vmatprep.subr.bf16.mxu1 %v3509_v27 }
 0x3b0   :  { %2582 = vmatprep.mubr.bf16.mxu1 %v2339_v3  ;;  %v2298_v3 = vld [vmem:[#allocation3 + $0xa0] sm:$0xff]  ;;  %3340 = vmatpush3.bf16.msra.mxu1 %v3509_v27 }
 0x3b1   :  { %v1138_v15 = vpop.permute.xlu1 %1137 }
 0x3b2   :  { %v1773_v56 = vpop.permute.xlu0 %1772  ;;  %v2305_v18 = vld [vmem:[#allocation3 + $0xd8] sm:$0xff]  ;;  %1171 = vst.msk [vmem:[#allocation3 + $0x168] sm:$0xff] %vm1155_vm3, %v1138_v15  ;;  %v2307_v15 = vld [vmem:[#allocation3 + $0xe8] sm:$0xff] }
 0x3b3   :  { %1809 = vst.msk [vmem:[#allocation3 + $0x110] sm:$0xff] %vm1155_vm3, %v1773_v56  ;;  %v2338_v7 = vpack.c.bf16 %v2305_v18, %v2302_v8  ;;  %v2337_v56 = vpack.c.bf16 %v2301_v11, %v2298_v3  ;;  %v5635_v3 = vld [vmem:[#allocation21_spill] sm:$0xff] }
 0x3b5   :  { %2583 = vmatmul.mubr.bf16.gmra.mxu1 %v2338_v7  ;;  %v1134_v25 = vpop.permute.xlu1 %1133  ;;  %v2308_v33 = vld [vmem:[#allocation3 + $0xf0] sm:$0xff] }
 0x3b6   :  { %v1949_v38 = vpop.permute.xlu0 %1948  ;;  %1169 = vst.msk [vmem:[#allocation3 + $0x138] sm:$0xff] %vm1155_vm3, %v1134_v25  ;;  %v2341_v55 = vpack.c.bf16 %v2311_v21, %v2308_v33  ;;  %v2319_v21 = vld [vmem:[#allocation3 + $0x148] sm:$0xff] }
 0x3b7   :  { %1985 = vst.msk [vmem:[#allocation3 + $0x110] sm:$0xff] %vm1332_vm4, %v1949_v38 }
 0x3b9   :  { %v1309_v42 = vpop.permute.xlu1 %1308 }
 0x3ba   :  { %v2125_v60 = vpop.permute.xlu0 %2124  ;;  %1345 = vst.msk [vmem:[#allocation3 + $0x120] sm:$0xff] %vm1332_vm4, %v1309_v42  ;;  %v2313_v42 = vld [vmem:[#allocation3 + $0x118] sm:$0xff] }
 0x3bb   :  { %2161 = vst.msk [vmem:[#allocation3 + $0x110] sm:$0xff] %vm1509_vm5, %v2125_v60 }
 0x3bd   :  { %v1486_v1 = vpop.permute.xlu1 %1485 }
 0x3be   :  { %v1108_v23 = vpop.permute.xlu0 %1107  ;;  %1522 = vst.msk [vmem:[#allocation3 + $0x120] sm:$0xff] %vm1509_vm5, %v1486_v1 }
 0x3bf   :  { %1156 = vst.msk [vmem:[#allocation3] sm:$0xff] %vm1155_vm3, %v1108_v23  ;;  %v2316_v23 = vld [vmem:[#allocation3 + $0x130] sm:$0xff] }
 0x3c1   :  { %v1285_v40 = vpop.permute.xlu1 %1284 }
 0x3c2   :  { %v1779_v37 = vpop.permute.xlu0 %1778  ;;  %v2312_v45 = vld [vmem:[#allocation3 + $0x110] sm:$0xff]  ;;  %1333 = vst.msk [vmem:[#allocation3] sm:$0xff] %vm1332_vm4, %v1285_v40 }
 0x3c3   :  { %1812 = vst.msk [vmem:[#allocation3 + $0x158] sm:$0xff] %vm1155_vm3, %v1779_v37  ;;  %v2342_v35 = vpack.c.bf16 %v2312_v45, %v2309_v24  ;;  %v2310_v24 = vld [vmem:[#allocation3 + $0x100] sm:$0xff] }
 0x3c5   :  { %2590 = vmatprep.mubr.bf16.mxu1 %v2342_v35  ;;  %v1462_v0 = vpop.permute.xlu1 %1461  ;;  %v2314_v37 = vld [vmem:[#allocation3 + $0x120] sm:$0xff]  ;;  %v2343_v35 = vpack.c.bf16 %v2313_v42, %v2310_v24 }
 0x3c6   :  { %v1955_v2 = vpop.permute.xlu0 %1954  ;;  %2591 = vmatmul.mubr.bf16.gmra.mxu1 %v2341_v55  ;;  %1510 = vst.msk [vmem:[#allocation3] sm:$0xff] %vm1509_vm5, %v1462_v0  ;;  %v2346_v55 = vpack.c.bf16 %v2319_v21, %v2316_v23  ;;  %v5217_v21 = vld [vmem:[%s5393_s5 + $0x8] sm:$0xf] }
 0x3c7   :  { %1988 = vst.msk [vmem:[#allocation3 + $0x158] sm:$0xff] %vm1332_vm4, %v1955_v2 }
 0x3c9   :  { %v1781_v12 = vpop.permute.xlu1 %1780 }
 0x3ca   :  { %v1136_v47 = vpop.permute.xlu0 %1135  ;;  %1813 = vst.msk [vmem:[#allocation3 + $0x170] sm:$0xff] %vm1155_vm3, %v1781_v12  ;;  %v2322_v12 = vld [vmem:[#allocation3 + $0x160] sm:$0xff] }
 0x3cb   :  { %1170 = vst.msk [vmem:[#allocation3 + $0x150] sm:$0xff] %vm1155_vm3, %v1136_v47 }
 0x3cd   :  { %v1957_v5 = vpop.permute.xlu1 %1956  ;;  %v2278_v58 = vld [vmem:[#allocation3] sm:$0xff] }
 0x3ce   :  { %v1777_v53 = vpop.permute.xlu0 %1776  ;;  %1989 = vst.msk [vmem:[#allocation3 + $0x170] sm:$0xff] %vm1332_vm4, %v1957_v5  ;;  %v2326_v31 = vpack.c.bf16 %v2281_v57, %v2278_v58  ;;  %v2325_v5 = vld [vmem:[#allocation3 + $0x178] sm:$0xff] }
 0x3cf   :  { %1811 = vst.msk [vmem:[#allocation3 + $0x140] sm:$0xff] %vm1155_vm3, %v1777_v53  ;;  %v2349_v57 = vpack.c.bf16 %v2325_v5, %v2322_v12 }
 0x3d0   :  { %2551 = vmatmul.mubr.bf16.vlgmr.msra.gmra.mxu0 %v2326_v31  ;;  %v3510_v31 = vld [vmem:[%s5392_s4 + $0x10] sm:$0xff]  }
 0x3d1   :  { %3320 = vmatpush3.bf16.msra.mxu0 %v5042_v44  ;;  %3323 = vmatprep.mubr.msk.bf16.mxu0 %vm818_vm2, %v2328_v49  ;;  %v1775_v30 = vpop.permute.xlu1 %1774  ;;  %v2331_v44 = vpack.c.bf16 %v2289_v63, %v2286_v62 }
 0x3d2   :  { %v1953_v39 = vpop.permute.xlu0 %1952  ;;  %1810 = vst.msk [vmem:[#allocation3 + $0x128] sm:$0xff] %vm1155_vm3, %v1775_v30  ;;  %3321 = vmatprep.subr.bf16.mxu0 %v3508_v46  ;;  %3341 = vmatprep.subr.bf16.mxu1 %v3510_v31 }
 0x3d3   :  { %1987 = vst.msk [vmem:[#allocation3 + $0x140] sm:$0xff] %vm1332_vm4, %v1953_v39  ;;  %3342 = vmatpush3.bf16.msra.mxu1 %v3510_v31 }
 0x3d4   :  { %2163 = vst.msk [vmem:[#allocation3 + $0x140] sm:$0xff] %vm1509_vm5, %v5139_v61  ;;  %v2304_v61 = vld [vmem:[#allocation3 + $0xd0] sm:$0xff]  ;;  %3343 = vmatprep.subr.bf16.mxu1 %v3511_v48 }
 0x3d5   :  { %3322 = vmatpush3.bf16.msra.mxu0 %v3508_v46  ;;  %v1951_v43 = vpop.permute.xlu1 %1950  ;;  %v2340_v8 = vpack.c.bf16 %v2307_v15, %v2304_v61  ;;  %v3512_v46 = vld [vmem:[%s5392_s4] sm:$0xff]  }
 0x3d6   :  { %v1311_v16 = vpop.permute.xlu0 %1310  ;;  %1986 = vst.msk [vmem:[#allocation3 + $0x128] sm:$0xff] %vm1332_vm4, %v1951_v43 }
 0x3d7   :  { %1346 = vst.msk [vmem:[#allocation3 + $0x138] sm:$0xff] %vm1332_vm4, %v1311_v16  ;;  %3344 = vmatpush3.bf16.msra.mxu1 %v3511_v48 }
 0x3d8   :  { %3324 = vmatmul.mubr.msk.bf16.vlgmr.msra.gmra.mxu0 %vm818_vm2, %v2331_v44  ;;  %3345 = vmatprep.subr.bf16.mxu1 %v3512_v46 }
 0x3d9   :  { %3327 = vmatprep.mubr.msk.bf16.mxu0 %vm818_vm2, %v2334_v28  ;;  %v2127_v32 = vpop.permute.xlu1 %2126 }
 0x3da   :  { %v2131_v17 = vpop.permute.xlu0 %2130  ;;  %2162 = vst.msk [vmem:[#allocation3 + $0x128] sm:$0xff] %vm1509_vm5, %v2127_v32 }
 0x3db   :  { %2164 = vst.msk [vmem:[#allocation3 + $0x158] sm:$0xff] %vm1509_vm5, %v2131_v17  ;;  %v2318_v25 = vld [vmem:[#allocation3 + $0x140] sm:$0xff]  ;;  %3346 = vmatpush3.bf16.msra.mxu1 %v3512_v46 }
 0x3dd   :  { %v1315_v52 = vpop.permute.xlu1 %1314 }
 0x3de   :  { %v1488_v29 = vpop.permute.xlu0 %1487  ;;  %1348 = vst.msk [vmem:[#allocation3 + $0x168] sm:$0xff] %vm1332_vm4, %v1315_v52 }
 0x3df   :  { %1523 = vst.msk [vmem:[#allocation3 + $0x138] sm:$0xff] %vm1509_vm5, %v1488_v29 }
 0x3e0   :  { %3328 = vmatmul.mubr.msk.bf16.gmra.mxu0 %vm818_vm2, %v2337_v56  ;;  %v2714_v56 = vsub.s32 6, %v5635_v3 }
 0x3e1   :  { %3331 = vmatprep.mubr.msk.bf16.mxu0 %vm818_vm2, %v2340_v8  ;;  %v2133_v7 = vpop.permute.xlu1 %2132  ;;  %v2315_v38 = vld [vmem:[#allocation3 + $0x128] sm:$0xff] }
 0x3e2   :  { %v1313_v18 = vpop.permute.xlu0 %1312  ;;  %2165 = vst.msk [vmem:[#allocation3 + $0x170] sm:$0xff] %vm1509_vm5, %v2133_v7  ;;  %v2345_v60 = vpack.c.bf16 %v2318_v25, %v2315_v38  ;;  %v2321_v2 = vld [vmem:[#allocation3 + $0x158] sm:$0xff]  ;;  %v3523_v38 = vld [vmem:[%s5393_s5] sm:$0xff]  ;;  %s3558_s5 = smov [#allocation4]  }
 0x3e3   :  { %1347 = vst.msk [vmem:[#allocation3 + $0x150] sm:$0xff] %vm1332_vm4, %v1313_v18  ;;  %v5208_v25 = vrot.slane %v3523_v38, %v2714_v56  ;;  %s3095_s14 = sshll.u32 %s3558_s5, 4  ;;  %s3096_s14 = int_to_ptr.vmem [resolvable:$true] %s3095_s14 }
 0x3e4   :  { %2598 = vmatprep.mubr.bf16.mxu1 %v2345_v60  ;;  %v2734_v60 = vsub.s32 7, %v5635_v3  ;;  %s3524_s15 = scalar_lea.vmem %s3096_s14, 2048  ;;  %p3529_p1 = scmp.lt.s32.totalorder %s3096_s14, %s3096_s14 }
 0x3e5   :  { %v1492_v33 = vpop.permute.xlu1 %1491  ;;  %p3525_p0 = scmp.ne.s32.totalorder %s3096_s14, %s3524_s15  ;;  %p3530_p2 = scmp.lt.s32.totalorder %s3524_s15, %s3524_s15 }
 0x3e6   :  { %v1490_v1 = vpop.permute.xlu0 %1489  ;;  %v2317_v40 = vld [vmem:[#allocation3 + $0x138] sm:$0xff]  ;;  %1525 = vst.msk [vmem:[#allocation3 + $0x168] sm:$0xff] %vm1509_vm5, %v1492_v33 }
 0x3e7   :  { %1524 = vst.msk [vmem:[#allocation3 + $0x150] sm:$0xff] %vm1509_vm5, %v1490_v1  ;;  %v2344_v45 = vpack.c.bf16 %v2317_v40, %v2314_v37  ;;  %p3531_p3 = por %p3530_p2, %p3529_p1 }
 0x3e8   :  { %3332 = vmatmul.mubr.msk.bf16.gmra.mxu0 %vm818_vm2, %v2343_v35 }
 0x3e9   :  { %2599 = vmatmul.mubr.bf16.gmra.mxu1 %v2344_v45  ;;  %3335 = vmatprep.mubr.msk.bf16.mxu0 %vm818_vm2, %v2346_v55  ;;  %v2324_v0 = vld [vmem:[#allocation3 + $0x170] sm:$0xff]  ;;  %v5212_v45 = vrot.slane %v3523_v38, %v2734_v60  ;;  %p3532_p4 = pnand %p3531_p3, %p3525_p0 }
 0x3ea   :  { %v2348_v47 = vpack.c.bf16 %v2324_v0, %v2321_v2 }
 0x3ec   :  { %2606 = vmatprep.mubr.bf16.mxu1 %v2348_v47 }
 0x3ed   :  { %v2323_v53 = vld [vmem:[#allocation3 + $0x168] sm:$0xff] }
 0x3ee   :  { %v2320_v36 = vld [vmem:[#allocation3 + $0x150] sm:$0xff] }
 0x3ef   :  { %v2347_v58 = vpack.c.bf16 %v2323_v53, %v2320_v36  ;;  %v5636_v53 = vsub.s32 0, %v5635_v3 }
 0x3f0   :  { %3336 = vmatmul.mubr.msk.bf16.gmra.mxu0 %vm818_vm2, %v2349_v57 }
 0x3f1   :  { %2607 = vmatmul.mubr.bf16.gmra.mxu1 %v2347_v58  ;;  %v5224_v5 = vrot.slane %v5217_v21, %v5636_v53 }
 0x426   :  { %v3227_v49 = vpop.f32.mrf.mxu1 }
 0x428   :  { %v3228_v39 = vpop.f32.mrf.mxu1 }
 0x429   :  { %v3229_v8 = vadd.f32 %v3228_v39, %v3227_v49 }
 0x42a   :  { %v3230_v30 = vpop.f32.mrf.mxu1 }
 0x42c   :  { %v3231_v63 = vpop.f32.mrf.mxu1 }
 0x42d   :  { %v3232_v37 = vadd.f32 %v3231_v63, %v3230_v30 }
 0x445   :  { %v3233_v13 = vpop.f32.mrf.mxu1 }
 0x447   :  { %v3234_v16 = vpop.f32.mrf.mxu1 }
 0x448   :  { %v3235_v46 = vadd.f32 %v3234_v16, %v3233_v13 }
 0x449   :  { %v3236_v43 = vpop.f32.mrf.mxu1 }
 0x44b   :  { %v3237_v62 = vpop.f32.mrf.mxu1 }
 0x456   :  { %v3239_v44 = vpop.f32.mrf.mxu1 }
 0x458   :  { %v3240_v9 = vpop.f32.mrf.mxu1 }
 0x459   :  { %v3241_v58 = vadd.f32 %v3240_v9, %v3239_v44 }
 0x45a   :  { %v3242_v28 = vpop.f32.mrf.mxu1 }
 0x45c   :  { %v3243_v17 = vpop.f32.mrf.mxu1 }
 0x475   :  { %v5196_v32 = vpop.f32.mrf.mxu1 }
 0x477   :  { %v5198_v11 = vpop.f32.mrf.mxu1 }
 0x479   :  { %v5200_v29 = vpop.f32.mrf.mxu1 }
 0x47b   :  { %v5203_v18 = vpop.f32.mrf.mxu1 }
 0x486   :  { %v3251_v1 = vpop.f32.mrf.mxu1 }
 0x488   :  { %v3252_v0 = vpop.f32.mrf.mxu1 }
 0x48a   :  { %v3254_v30 = vpop.f32.mrf.mxu1 }
 0x48c   :  { %v3255_v60 = vpop.f32.mrf.mxu1 }
 0x490   :  { %v3221_v61 = vpop.f32.mrf.mxu0 }
 0x492   :  { %v3222_v27 = vpop.f32.mrf.mxu0 }
 0x493   :  { %v3223_v42 = vadd.f32 %v3222_v27, %v3221_v61 }
 0x494   :  { %v3224_v52 = vpop.f32.mrf.mxu0 }
 0x496   :  { %v3225_v15 = vpop.f32.mrf.mxu0 }
 0x497   :  { %v3226_v47 = vadd.f32 %v3225_v15, %v3224_v52  ;;  %v3244_v52 = vadd.f32 %v3243_v17, %v3242_v28  ;;  %v3238_v15 = vadd.f32 %v3237_v62, %v3236_v43 }
 0x498   :  { %v3325_v7 = vpop.f32.mrf.mxu0 }
 0x499   :  { %v2658_v23 = vadd.f32 %v3325_v7, %v3229_v8 }
 0x49a   :  { %v2649_v33 = vpop.f32.mrf.mxu0 }
 0x49b   :  { %v2650_v40 = vadd.f32 %v3223_v42, %v2649_v33  ;;  %v2718_v24 = vmul.f32 %v5208_v25, %v2658_v23  ;;  %v3253_v33 = vadd.f32 %v3252_v0, %v3251_v1 }
 0x49c   :  { %v3326_v35 = vpop.f32.mrf.mxu0 }
 0x49d   :  { %v2716_v55 = vmul.f32 %v5208_v25, %v2650_v40  ;;  %v2661_v2 = vadd.f32 %v3326_v35, %v3232_v37  ;;  %v2738_v57 = vadd.f32 %v5212_v45, %v2718_v24 }
 0x49e   :  { %v2652_v12 = vpop.f32.mrf.mxu0 }
 0x49f   :  { %v2719_v36 = vmul.f32 %v5208_v25, %v2661_v2  ;;  %v2653_v31 = vadd.f32 %v3226_v47, %v2652_v12  ;;  %v2736_v49 = vadd.f32 %v5212_v45, %v2716_v55  ;;  %v2774_v8 = vmul.f32 %v5224_v5, %v2738_v57 }
 0x4a0   :  { %v3329_v48 = vpop.f32.mrf.mxu0  ;;  %vm2754_vm9 = vcmp.ge.f32.partialorder %v2738_v57, 0.0  ;;  %v3247_v55 = vadd.f32 %v5198_v11, %v5196_v32  ;;  %v3250_v32 = vadd.f32 %v5203_v18, %v5200_v29 }
 0x4a1   :  { %v2739_v39 = vadd.f32 %v5212_v45, %v2719_v36  ;;  %v2717_v63 = vmul.f32 %v5208_v25, %v2653_v31  ;;  %v2674_v61 = vadd.f32 %v3329_v48, %v3241_v58  ;;  %v2772_v13 = vmul.f32 %v5224_v5, %v2736_v49 }
 0x4a2   :  { %v2665_v27 = vpop.f32.mrf.mxu0  ;;  %vm2752_vm7 = vcmp.ge.f32.partialorder %v2736_v49, 0.0  ;;  %v2790_v36 = vsel %vm2754_vm9, %v2738_v57, %v2774_v8  ;;  %v3256_v48 = vadd.f32 %v3255_v60, %v3254_v30 }
 0x4a3   :  { %v2666_v56 = vadd.f32 %v3235_v46, %v2665_v27  ;;  %v2775_v44 = vmul.f32 %v5224_v5, %v2739_v39  ;;  %v2737_v9 = vadd.f32 %v5212_v45, %v2717_v63  ;;  %vm2755_vm6 = vcmp.ge.f32.partialorder %v2739_v39, 0.0 }
 0x4a4   :  { %v3330_v7 = vpop.f32.mrf.mxu0  ;;  %v2722_v43 = vmul.f32 %v5208_v25, %v2674_v61  ;;  %v2788_v12 = vsel %vm2752_vm7, %v2736_v49, %v2772_v13 }
 0x4a5   :  { %v2720_v16 = vmul.f32 %v5208_v25, %v2666_v56  ;;  %v2677_v38 = vadd.f32 %v3330_v7, %v3244_v52  ;;  %vm2753_vm8 = vcmp.ge.f32.partialorder %v2737_v9, 0.0  ;;  %v2773_v28 = vmul.f32 %v5224_v5, %v2737_v9 }
 0x4a6   :  { %v2668_v62 = vpop.f32.mrf.mxu0  ;;  %v2791_v37 = vsel %vm2755_vm6, %v2739_v39, %v2775_v44  ;;  %v2742_v53 = vadd.f32 %v5212_v45, %v2722_v43 }
 0x4a7   :  { %v2740_v17 = vadd.f32 %v5212_v45, %v2720_v16  ;;  %v2723_v42 = vmul.f32 %v5208_v25, %v2677_v38  ;;  %v2669_v23 = vadd.f32 %v3238_v15, %v2668_v62  ;;  %v2789_v35 = vsel %vm2753_vm8, %v2737_v9, %v2773_v28 }
 0x4a8   :  { %v3333_v24 = vpop.f32.mrf.mxu0  ;;  %v2804_v0 = vpack.c.bf16 %v2789_v35, %v2788_v12  ;;  %v2805_v46 = vpack.c.bf16 %v2791_v37, %v2790_v36  ;;  %vm2758_vm14 = vcmp.ge.f32.partialorder %v2742_v53, 0.0  ;;  %v2778_v52 = vmul.f32 %v5224_v5, %v2742_v53 }
 0x4a9   :  { %v3257_v40 = vpop.f32.mrf.mxu1  ;;  %v2743_v2 = vadd.f32 %v5212_v45, %v2723_v42  ;;  %v2721_v47 = vmul.f32 %v5208_v25, %v2669_v23  ;;  %v2690_v58 = vadd.f32 %v3333_v24, %v3253_v33  ;;  %v2776_v39 = vmul.f32 %v5224_v5, %v2740_v17 }
 0x4aa   :  { %v2681_v1 = vpop.f32.mrf.mxu0  ;;  %vm2756_vm11 = vcmp.ge.f32.partialorder %v2740_v17, 0.0  ;;  %3347 = vmatprep.mubr.msk.bf16.mxu1 %vm2844_vm10, %v2804_v0 }
 0x4ab   :  { %v3258_v31 = vpop.f32.mrf.mxu1  ;;  %v2741_v63 = vadd.f32 %v5212_v45, %v2721_v47  ;;  %v2779_v11 = vmul.f32 %v5224_v5, %v2743_v2  ;;  %v2682_v49 = vadd.f32 %v3247_v55, %v2681_v1  ;;  %vm2759_vm12 = vcmp.ge.f32.partialorder %v2743_v2, 0.0  ;;  %3348 = vmatmul.mubr.msk.bf16.vlgmr.msra.gmra.mxu1 %vm2844_vm10, %v2805_v46 }
 0x4ac   :  { %v3334_v61 = vpop.f32.mrf.mxu0  ;;  %v2726_v29 = vmul.f32 %v5208_v25, %v2690_v58  ;;  %v2792_v9 = vsel %vm2756_vm11, %v2740_v17, %v2776_v39  ;;  %v3259_v23 = vadd.f32 %v3258_v31, %v3257_v40  ;;  %v2794_v17 = vsel %vm2758_vm14, %v2742_v53, %v2778_v52 }
 0x4ad   :  { %v3260_v57 = vpop.f32.mrf.mxu1  ;;  %vm2757_vm13 = vcmp.ge.f32.partialorder %v2741_v63, 0.0  ;;  %v2777_v30 = vmul.f32 %v5224_v5, %v2741_v63  ;;  %v2693_v27 = vadd.f32 %v3334_v61, %v3256_v48  ;;  %v2724_v18 = vmul.f32 %v5208_v25, %v2682_v49 }
 0x4ae   :  { %v2684_v15 = vpop.f32.mrf.mxu0  ;;  %v2795_v28 = vsel %vm2759_vm12, %v2743_v2, %v2779_v11  ;;  %v2746_v42 = vadd.f32 %v5212_v45, %v2726_v29 }
 0x4af   :  { %v3261_v56 = vpop.f32.mrf.mxu1  ;;  %v2727_v8 = vmul.f32 %v5208_v25, %v2693_v27  ;;  %v2685_v44 = vadd.f32 %v3250_v32, %v2684_v15  ;;  %v2793_v7 = vsel %vm2757_vm13, %v2741_v63, %v2777_v30  ;;  %v2744_v13 = vadd.f32 %v5212_v45, %v2724_v18 }
 0x4b0   :  { %v3337_v38 = vpop.f32.mrf.mxu0  ;;  %v2806_v60 = vpack.c.bf16 %v2793_v7, %v2792_v9  ;;  %v2807_v2 = vpack.c.bf16 %v2795_v28, %v2794_v17  ;;  %v3262_v12 = vadd.f32 %v3261_v56, %v3260_v57  ;;  %vm2762_vm3 = vcmp.ge.f32.partialorder %v2746_v42, 0.0 }
 0x4b1   :  { %v3263_v16 = vpop.f32.mrf.mxu1  ;;  %v2747_v43 = vadd.f32 %v5212_v45, %v2727_v8  ;;  %v2725_v62 = vmul.f32 %v5208_v25, %v2685_v44  ;;  %v2780_v33 = vmul.f32 %v5224_v5, %v2744_v13  ;;  %vm2760_vm15 = vcmp.ge.f32.partialorder %v2744_v13, 0.0 }
 0x4b2   :  { %v2697_v24 = vpop.f32.mrf.mxu0  ;;  %3351 = vmatprep.mubr.msk.bf16.mxu1 %vm2844_vm10, %v2806_v60  ;;  %v2782_v53 = vmul.f32 %v5224_v5, %v2746_v42  ;;  %v5639_v17 = vsub.s32 3, %v5635_v3 }
 0x4b3   :  { %v3264_v37 = vpop.f32.mrf.mxu1  ;;  %v2745_v35 = vadd.f32 %v5212_v45, %v2725_v62  ;;  %v2783_v47 = vmul.f32 %v5224_v5, %v2747_v43  ;;  %v2698_v36 = vadd.f32 %v3259_v23, %v2697_v24  ;;  %vm2763_vm0 = vcmp.ge.f32.partialorder %v2747_v43, 0.0  ;;  %3352 = vmatmul.mubr.msk.bf16.gmra.mxu1 %vm2844_vm10, %v2807_v2 }
 0x4b4   :  { %v3265_v55 = vadd.f32 %v3264_v37, %v3263_v16  ;;  %v3338_v1 = vpop.f32.mrf.mxu0  ;;  %v2796_v39 = vsel %vm2760_vm15, %v2744_v13, %v2780_v33  ;;  %v2798_v18 = vsel %vm2762_vm3, %v2746_v42, %v2782_v53  ;;  %v5638_v23 = vsub.s32 2, %v5635_v3 }
 0x4b5   :  { %v3266_v58 = vpop.f32.mrf.mxu1  ;;  %vm2761_vm1 = vcmp.ge.f32.partialorder %v2745_v35, 0.0  ;;  %v2781_v40 = vmul.f32 %v5224_v5, %v2745_v35  ;;  %v2728_v0 = vmul.f32 %v5208_v25, %v2698_v36  ;;  %v2799_v30 = vsel %vm2763_vm0, %v2747_v43, %v2783_v47 }
 0x4b6   :  { %v2706_v31 = vadd.f32 %v3337_v38, %v3265_v55  ;;  %v2700_v46 = vpop.f32.mrf.mxu0  ;;  %v2809_v44 = vpack.c.bf16 %v2799_v30, %v2798_v18 }
 0x4b7   :  { %v3267_v48 = vpop.f32.mrf.mxu1  ;;  %v2701_v11 = vadd.f32 %v3262_v12, %v2700_v46  ;;  %v2797_v49 = vsel %vm2761_vm1, %v2745_v35, %v2781_v40  ;;  %v2748_v57 = vadd.f32 %v5212_v45, %v2728_v0  ;;  %v5304_v35 = vrot.slane %v5217_v21, %v5639_v17  ;;  %v5640_v12 = vld [vmem:[#allocation90_spill] sm:$0xff] }
 0x4b8   :  { %v2730_v63 = vmul.f32 %v5208_v25, %v2706_v31  ;;  %v3268_v32 = vadd.f32 %v3267_v48, %v3266_v58  ;;  %v2808_v61 = vpack.c.bf16 %v2797_v49, %v2796_v39 }
 0x4b9   :  { %v2729_v29 = vmul.f32 %v5208_v25, %v2701_v11  ;;  %v2784_v56 = vmul.f32 %v5224_v5, %v2748_v57  ;;  %vm2764_vm4 = vcmp.ge.f32.partialorder %v2748_v57, 0.0 }
 0x4ba   :  { %v2750_v27 = vadd.f32 %v5212_v45, %v2730_v63  ;;  %v2709_v52 = vadd.f32 %v3338_v1, %v3268_v32  ;;  %3355 = vmatprep.mubr.msk.bf16.mxu1 %vm2844_vm10, %v2808_v61 }
 0x4bb   :  { %v2749_v8 = vadd.f32 %v5212_v45, %v2729_v29  ;;  %3356 = vmatmul.mubr.msk.bf16.gmra.mxu1 %vm2844_vm10, %v2809_v44  ;;  %v2800_v38 = vsel %vm2764_vm4, %v2748_v57, %v2784_v56 }
 0x4bc   :  { %v2731_v15 = vmul.f32 %v5208_v25, %v2709_v52  ;;  %v2786_v9 = vmul.f32 %v5224_v5, %v2750_v27  ;;  %vm2766_vm6 = vcmp.ge.f32.partialorder %v2750_v27, 0.0 }
 0x4bd   :  { %vm2765_vm5 = vcmp.ge.f32.partialorder %v2749_v8, 0.0  ;;  %v2785_v13 = vmul.f32 %v5224_v5, %v2749_v8 }
 0x4be   :  { %v2751_v7 = vadd.f32 %v5212_v45, %v2731_v15  ;;  %v2802_v28 = vsel %vm2766_vm6, %v2750_v27, %v2786_v9  ;;  %v5637_v45 = vsub.s32 1, %v5635_v3 }
 0x4bf   :  { %v2801_v60 = vsel %vm2765_vm5, %v2749_v8, %v2785_v13 }
 0x4c0   :  { %v2787_v16 = vmul.f32 %v5224_v5, %v2751_v7  ;;  %vm2767_vm7 = vcmp.ge.f32.partialorder %v2751_v7, 0.0  ;;  %v2810_v25 = vpack.c.bf16 %v2801_v60, %v2800_v38  ;;  %v5293_v42 = vrot.slane %v5217_v21, %v5637_v45 }
 0x4c1   :  { %v5298_v5 = vrot.slane %v5217_v21, %v5638_v23 }
 0x4c2   :  { %v2803_v43 = vsel %vm2767_vm7, %v2751_v7, %v2787_v16  ;;  %3359 = vmatprep.mubr.msk.bf16.mxu1 %vm2844_vm10, %v2810_v25 }
 0x4c3   :  { %v2811_v62 = vpack.c.bf16 %v2803_v43, %v2802_v28 }
 0x4c5   :  { %3360 = vmatmul.mubr.msk.bf16.gmra.mxu1 %vm2844_vm10, %v2811_v62 }
 0x56b   :  { %v3349_v33 = vpop.f32.mrf.mxu1 }
 0x56c   :  { %v2972_v37 = vmul.f32 %v3349_v33, %v5293_v42 }
 0x56d   :  { %v2903_v24 = vpop.f32.mrf.mxu1 }
 0x56e   :  { %v2992_v55 = vadd.f32 %v5298_v5, %v2972_v37  ;;  %v2970_v2 = vmul.f32 %v5293_v42, %v2903_v24 }
 0x56f   :  { %v3350_v47 = vpop.f32.mrf.mxu1 }
 0x570   :  { %v3008_v36 = vadd.f32 %v2992_v55, %v5640_v12  ;;  %v2990_v58 = vadd.f32 %v5298_v5, %v2970_v2  ;;  %v2973_v1 = vmul.f32 %v3350_v47, %v5293_v42 }
 0x571   :  { %v2906_v40 = vpop.f32.mrf.mxu1 }
 0x572   :  { %vm3024_vm8 = vcmp.ge.f32.partialorder %v3008_v36, 0.0  ;;  %v3044_v31 = vmul.f32 %v5304_v35, %v3008_v36  ;;  %v3006_v3 = vadd.f32 %v2990_v58, %v4315_v26  ;;  %v2993_v21 = vadd.f32 %v5298_v5, %v2973_v1 }
 0x573   :  { %v2971_v53 = vmul.f32 %v5293_v42, %v2906_v40  ;;  %v3353_v0 = vpop.f32.mrf.mxu1 }
 0x574   :  { %v3060_v48 = vsel %vm3024_vm8, %v3008_v36, %v3044_v31  ;;  %vm3022_vm9 = vcmp.ge.f32.partialorder %v3006_v3, 0.0  ;;  %v3042_v46 = vmul.f32 %v5304_v35, %v3006_v3  ;;  %v3009_v39 = vadd.f32 %v2993_v21, %v4320_v34 }
 0x575   :  { %3076 = vst.msk [vmem:[#allocation4 + $0x10] sm:$0xff] %vm818_vm2, %v3060_v48  ;;  %v2991_v63 = vadd.f32 %v5298_v5, %v2971_v53  ;;  %v2976_v32 = vmul.f32 %v3353_v0, %v5293_v42  ;;  %v2919_v11 = vpop.f32.mrf.mxu1 }
 0x576   :  { %v3058_v49 = vsel %vm3022_vm9, %v3006_v3, %v3042_v46  ;;  %vm3025_vm10 = vcmp.ge.f32.partialorder %v3009_v39, 0.0  ;;  %v3045_v26 = vmul.f32 %v5304_v35, %v3009_v39  ;;  %v2974_v57 = vmul.f32 %v5293_v42, %v2919_v11 }
 0x577   :  { %3074 = vst.msk [vmem:[#allocation4] sm:$0xff] %vm818_vm2, %v3058_v49  ;;  %v3007_v61 = vadd.f32 %v2991_v63, %v4326_v22  ;;  %v2996_v30 = vadd.f32 %v5298_v5, %v2976_v32  ;;  %v3354_v34 = vpop.f32.mrf.mxu1 }
 0x578   :  { %v3061_v27 = vsel %vm3025_vm10, %v3009_v39, %v3045_v26  ;;  %v2994_v52 = vadd.f32 %v5298_v5, %v2974_v57  ;;  %v2977_v29 = vmul.f32 %v3354_v34, %v5293_v42 }
 0x579   :  { %3077 = vst.msk [vmem:[#allocation4 + $0x18] sm:$0xff] %vm818_vm2, %v3061_v27  ;;  %vm3023_vm11 = vcmp.ge.f32.partialorder %v3007_v61, 0.0  ;;  %v3043_v18 = vmul.f32 %v5304_v35, %v3007_v61  ;;  %v3012_v56 = vadd.f32 %v2996_v30, %v4344_v51  ;;  %v2922_v15 = vpop.f32.mrf.mxu1 }
 0x57a   :  { %v3010_v8 = vadd.f32 %v2994_v52, %v4353_v6  ;;  %v2997_v22 = vadd.f32 %v5298_v5, %v2977_v29  ;;  %v2975_v44 = vmul.f32 %v5293_v42, %v2922_v15 }
 0x57b   :  { %v3059_v9 = vsel %vm3023_vm11, %v3007_v61, %v3043_v18  ;;  %vm3028_vm12 = vcmp.ge.f32.partialorder %v3012_v56, 0.0  ;;  %v3048_v7 = vmul.f32 %v5304_v35, %v3012_v56  ;;  %v3357_v13 = vpop.f32.mrf.mxu1 }
 0x57c   :  { %3075 = vst.msk [vmem:[#allocation4 + $0x8] sm:$0xff] %vm818_vm2, %v3059_v9  ;;  %vm3026_vm13 = vcmp.ge.f32.partialorder %v3010_v8, 0.0  ;;  %v3046_v16 = vmul.f32 %v5304_v35, %v3010_v8  ;;  %v3013_v38 = vadd.f32 %v2997_v22, %v4358_v14  ;;  %v2995_v51 = vadd.f32 %v5298_v5, %v2975_v44 }
 0x57d   :  { %v3064_v60 = vsel %vm3028_vm12, %v3012_v56, %v3048_v7  ;;  %v2980_v6 = vmul.f32 %v3357_v13, %v5293_v42  ;;  %v2935_v25 = vpop.f32.mrf.mxu1  ;;  %v5641_v56 = vld [vmem:[#allocation100_spill] sm:$0xff] }
 0x57e   :  { %3080 = vst.msk [vmem:[#allocation4 + $0x30] sm:$0xff] %vm818_vm2, %v3064_v60  ;;  %v3062_v28 = vsel %vm3026_vm13, %v3010_v8, %v3046_v16  ;;  %vm3029_vm14 = vcmp.ge.f32.partialorder %v3013_v38, 0.0  ;;  %v3049_v43 = vmul.f32 %v5304_v35, %v3013_v38  ;;  %v3011_v62 = vadd.f32 %v2995_v51, %v4364_v20 }
 0x57f   :  { %3078 = vst.msk [vmem:[#allocation4 + $0x20] sm:$0xff] %vm818_vm2, %v3062_v28  ;;  %v3000_v45 = vadd.f32 %v5298_v5, %v2980_v6  ;;  %v2978_v14 = vmul.f32 %v5293_v42, %v2935_v25  ;;  %v3358_v23 = vpop.f32.mrf.mxu1 }
 0x580   :  { %v3065_v33 = vsel %vm3029_vm14, %v3013_v38, %v3049_v43  ;;  %vm3027_vm15 = vcmp.ge.f32.partialorder %v3011_v62, 0.0  ;;  %v3047_v37 = vmul.f32 %v5304_v35, %v3011_v62  ;;  %v2981_v24 = vmul.f32 %v3358_v23, %v5293_v42 }
 0x581   :  { %3081 = vst.msk [vmem:[#allocation4 + $0x38] sm:$0xff] %vm818_vm2, %v3065_v33  ;;  %v3016_v17 = vadd.f32 %v3000_v45, %v4384_v41  ;;  %v2998_v55 = vadd.f32 %v5298_v5, %v2978_v14  ;;  %v2938_v20 = vpop.f32.mrf.mxu1 }
 0x582   :  { %v3063_v2 = vsel %vm3027_vm15, %v3011_v62, %v3047_v37  ;;  %v3001_v47 = vadd.f32 %v5298_v5, %v2981_v24  ;;  %v2979_v12 = vmul.f32 %v5293_v42, %v2938_v20 }
 0x583   :  { %3079 = vst.msk [vmem:[#allocation4 + $0x28] sm:$0xff] %vm818_vm2, %v3063_v2  ;;  %vm3032_vm0 = vcmp.ge.f32.partialorder %v3016_v17, 0.0  ;;  %v3052_v36 = vmul.f32 %v5304_v35, %v3016_v17  ;;  %v3014_v58 = vadd.f32 %v2998_v55, %v4393_v59 }
 0x584   :  { %v3017_v40 = vadd.f32 %v3001_v47, %v4396_v10  ;;  %v2999_v41 = vadd.f32 %v5298_v5, %v2979_v12 }
 0x585   :  { %v3361_v1 = vpop.f32.mrf.mxu1  ;;  %v3068_v3 = vsel %vm3032_vm0, %v3016_v17, %v3052_v36  ;;  %vm3030_vm1 = vcmp.ge.f32.partialorder %v3014_v58, 0.0  ;;  %v3050_v21 = vmul.f32 %v5304_v35, %v3014_v58 }
 0x586   :  { %v2984_v31 = vmul.f32 %v3361_v1, %v5293_v42  ;;  %3084 = vst.msk [vmem:[#allocation4 + $0x50] sm:$0xff] %vm818_vm2, %v3068_v3  ;;  %vm3033_vm3 = vcmp.ge.f32.partialorder %v3017_v40, 0.0  ;;  %v3053_v0 = vmul.f32 %v5304_v35, %v3017_v40  ;;  %v3015_v48 = vadd.f32 %v2999_v41, %v4404_v19 }
 0x587   :  { %v2951_v53 = vpop.f32.mrf.mxu1  ;;  %v3066_v46 = vsel %vm3030_vm1, %v3014_v58, %v3050_v21 }
 0x588   :  { %v3004_v59 = vadd.f32 %v5298_v5, %v2984_v31  ;;  %v2982_v10 = vmul.f32 %v5293_v42, %v2951_v53  ;;  %3082 = vst.msk [vmem:[#allocation4 + $0x40] sm:$0xff] %vm818_vm2, %v3066_v46  ;;  %v3069_v63 = vsel %vm3033_vm3, %v3017_v40, %v3053_v0  ;;  %vm3031_vm4 = vcmp.ge.f32.partialorder %v3015_v48, 0.0 }
 0x589   :  { %v3362_v39 = vpop.f32.mrf.mxu1  ;;  %v3051_v32 = vmul.f32 %v5304_v35, %v3015_v48  ;;  %3085 = vst.msk [vmem:[#allocation4 + $0x58] sm:$0xff] %vm818_vm2, %v3069_v63 }
 0x58a   :  { %v3020_v11 = vadd.f32 %v3004_v59, %v4422_v4  ;;  %v3002_v49 = vadd.f32 %v5298_v5, %v2982_v10  ;;  %v2985_v19 = vmul.f32 %v3362_v39, %v5293_v42 }
 0x58b   :  { %v2954_v26 = vpop.f32.mrf.mxu1  ;;  %v3067_v57 = vsel %vm3031_vm4, %v3015_v48, %v3051_v32 }
 0x58c   :  { %vm3036_vm5 = vcmp.ge.f32.partialorder %v3020_v11, 0.0  ;;  %v3056_v61 = vmul.f32 %v5304_v35, %v3020_v11  ;;  %v2983_v30 = vmul.f32 %v5293_v42, %v2954_v26  ;;  %3083 = vst.msk [vmem:[#allocation4 + $0x48] sm:$0xff] %vm818_vm2, %v3067_v57  ;;  %v3018_v34 = vadd.f32 %v3002_v49, %v4433_v50 }
 0x58d   :  { %v3005_v27 = vadd.f32 %v5298_v5, %v2985_v19 }
 0x58e   :  { %v3072_v4 = vsel %vm3036_vm5, %v3020_v11, %v3056_v61  ;;  %v3003_v52 = vadd.f32 %v5298_v5, %v2983_v30  ;;  %vm3034_vm6 = vcmp.ge.f32.partialorder %v3018_v34, 0.0  ;;  %v3054_v29 = vmul.f32 %v5304_v35, %v3018_v34 }
 0x58f   :  { %3088 = vst.msk [vmem:[#allocation4 + $0x70] sm:$0xff] %vm818_vm2, %v3072_v4  ;;  %v3021_v18 = vadd.f32 %v3005_v27, %v4436_v54 }
 0x590   :  { %v3019_v15 = vadd.f32 %v3003_v52, %v5641_v56  ;;  %v3070_v42 = vsel %vm3034_vm6, %v3018_v34, %v3054_v29 }
 0x591   :  { %vm3037_vm7 = vcmp.ge.f32.partialorder %v3021_v18, 0.0  ;;  %v3057_v50 = vmul.f32 %v5304_v35, %v3021_v18  ;;  %3086 = vst.msk [vmem:[#allocation4 + $0x60] sm:$0xff] %vm818_vm2, %v3070_v42 }
 0x592   :  { %vm3035_vm8 = vcmp.ge.f32.partialorder %v3019_v15, 0.0  ;;  %v3055_v5 = vmul.f32 %v5304_v35, %v3019_v15 }
 0x593   :  { %v3073_v8 = vsel %vm3037_vm7, %v3021_v18, %v3057_v50 }
 0x594   :  { %3089 = vst.msk [vmem:[#allocation4 + $0x78] sm:$0xff] %vm818_vm2, %v3073_v8  ;;  %v3071_v22 = vsel %vm3035_vm8, %v3019_v15, %v3055_v5 }
 0x595   :  { %3087 = vst.msk [vmem:[#allocation4 + $0x68] sm:$0xff] %vm818_vm2, %v3071_v22 }
 0x596   :  { %3535 = shalt.err (!%p3532_p4)
}
 0x597   :  { %s3559_s16 = smov 128   ;;  %s3560_s17 = smov 8  }
 0x598   :  { %3101 = dma.vmem_to_hbm [thread:$0]  %s3096_s14, 2048, %s5395_s7, [#allocation5], %s3559_s16, %s3559_s16, %s3560_s17  }
 0x599   :  { %3544 = dma.done.wait [#allocation5], 2048  }
 0x59a   :  { %3545 = vsyncadd [#allocation5], 4294965248 }
 0x59b   :  { %3105 = vsyncpa [#allocation5], 1 }

</bundles_post_ra>
